<compile_context>
chip_gen: v6e
topology: v6e:2x2x1
jax: 0.10.0
libtpu: 0.0.40
codegen_flags: <defaults>
</compile_context>

<pallas_src>
import jax
import jax.numpy as jnp
import numpy as np
from jax.experimental import pallas as pl
from jax.experimental.pallas import tpu as pltpu


_UNROLL_T_LIMIT = 32  # fully unroll the time loop when T is small & static


def _leaky(v):
    return jnp.where(v >= 0.0, v, 0.2 * v)


# ------------------------------ Pallas kernel -------------------------------


def encoder_kernel(x_ref, wihT_ref, whhT_ref, bih_ref, bhh_ref,
                   fc1wT_ref, fc1b_ref, fc2wT_ref, fc2b_ref,
                   out_ref, gi_ref, seq_ref):
    """Fused GRU stack + head.

    Shapes (all padded, f32):
      x_ref     : (T*Bp, Dp)         time-major flattened input
      wihT_ref  : (L, Dp, 3Hp)       pre-transposed, per-gate 128-lane slabs
      whhT_ref  : (L, Hp, 3Hp)
      bih_ref   : (L, 1, 3Hp)
      bhh_ref   : (L, 1, 3Hp)
      fc1wT_ref : (3, Hp, Hp)        blocks for [mean | max | last]
      fc1b_ref  : (1, Hp)
      fc2wT_ref : (L*L, Hp, Hp)      block (o,i) at index o*L+i
      fc2b_ref  : (L, 1, Hp)
      out_ref   : (1+L, Bp, Hp)      [glob, lasth_0, ..., lasth_{L-1}]
      gi_ref    : (T*Bp, 3Hp)        scratch: precomputed input projections
      seq_ref   : (T*Bp, Hp)         scratch: layer output sequence
    """
    L, Hp, _ = whhT_ref.shape
    Bp = out_ref.shape[1]
    T = x_ref.shape[0] // Bp

    h_finals = []
    s = m = None
    for l in range(L):
        # ---- input projection for all timesteps: ONE big MXU call ----------
        if l == 0:
            x2 = x_ref[...]                       # (T*Bp, Dp)
            w_in = wihT_ref[l]                    # (Dp, 3Hp)
        else:
            x2 = seq_ref[...]                     # (T*Bp, Hp) = prev layer out
            w_in = wihT_ref[l][:Hp, :]            # (Hp, 3Hp); rows >= Hp are 0
        gi_ref[...] = jnp.dot(x2, w_in,
                              preferred_element_type=jnp.float32) + bih_ref[l]

        # ---- recurrent weights / biases hoisted out of the time loop -------
        w_hh = whhT_ref[l]                        # (Hp, 3Hp)
        b_hh = bhh_ref[l]                         # (1, 3Hp)
        write_seq = l < L - 1                     # last layer reduced on the fly

        def step(t, carry):
            h, s_acc, m_acc = carry
            start = t * Bp
            if not isinstance(start, int):
                start = pl.multiple_of(start, Bp)
            gi = gi_ref[pl.ds(start, Bp), :]      # (Bp, 3Hp), lane-aligned slabs
            gh = jnp.dot(h, w_hh, preferred_element_type=jnp.float32) + b_hh
            r = jax.nn.sigmoid(gi[:, :Hp] + gh[:, :Hp])
            z = jax.nn.sigmoid(gi[:, Hp:2 * Hp] + gh[:, Hp:2 * Hp])
            n = jnp.tanh(gi[:, 2 * Hp:] + r * gh[:, 2 * Hp:])
            h_new = (1.0 - z) * n + z * h
            if write_seq:
                seq_ref[pl.ds(start, Bp), :] = h_new
            return h_new, s_acc + h_new, jnp.maximum(m_acc, h_new)

        carry = (jnp.zeros((Bp, Hp), jnp.float32),
                 jnp.zeros((Bp, Hp), jnp.float32),
                 jnp.full((Bp, Hp), -jnp.inf, jnp.float32))
        if T <= _UNROLL_T_LIMIT:
            for t in range(T):                    # full static unroll
                carry = step(t, carry)
        else:
            carry = jax.lax.fori_loop(0, T, step, carry, unroll=2)
        h, s, m = carry
        h_finals.append(h)

    # ---- head: mean/max over time (last layer), fc1/fc2 + LeakyReLU(0.2) ---
    h_mean = s * (1.0 / T)
    h_max = m
    h_last = h_finals[L - 1]

    glob = (jnp.dot(h_mean, fc1wT_ref[0], preferred_element_type=jnp.float32)
            + jnp.dot(h_max, fc1wT_ref[1], preferred_element_type=jnp.float32)
            + jnp.dot(h_last, fc1wT_ref[2], preferred_element_type=jnp.float32)
            + fc1b_ref[...])
    out_ref[0] = _leaky(glob)

    for o in range(L):
        acc = fc2b_ref[o] + jnp.dot(h_finals[0], fc2wT_ref[o * L],
                                    preferred_element_type=jnp.float32)
        for i in range(1, L):
            acc = acc + jnp.dot(h_finals[i], fc2wT_ref[o * L + i],
                                preferred_element_type=jnp.float32)
        out_ref[1 + o] = _leaky(acc)


# -------------------------------- Wrapper ------------------------------------


def _round_up(n, mult):
    return -(-n // mult) * mult


def _pad_to(a, shape):
    return jnp.pad(a, [(0, s - d) for d, s in zip(a.shape, shape)])


def encoder_forward(X, params):
    """X: (B, T, F) batch-first (PyTorch convention). Returns (B, H + L*H)."""
    gru = params["gru"]
    L = len(gru)
    B, T, F = X.shape
    H = gru[0][1].shape[1]

    Hp = _round_up(H, 128)                 # one 128-wide lane slab per gate
    Bp = _round_up(B, 8)                   # sublane-aligned batch
    Dp = max(_round_up(F, 128), Hp)        # common padded input width

    # ---- pack / pad operands (one-time, outside the kernel) -----------------
    x = jnp.transpose(X.astype(jnp.float32), (1, 0, 2))          # (T, B, F)
    x = _pad_to(x, (T, Bp, Dp)).reshape(T * Bp, Dp)

    def pack_ih(w):   # (3H, Din) -> (Dp, 3Hp), pre-transposed, per-gate slabs
        return jnp.concatenate(
            [_pad_to(w[g * H:(g + 1) * H, :].T.astype(jnp.float32), (Dp, Hp))
             for g in range(3)], axis=1)

    def pack_hh(w):   # (3H, H) -> (Hp, 3Hp)
        return jnp.concatenate(
            [_pad_to(w[g * H:(g + 1) * H, :].T.astype(jnp.float32), (Hp, Hp))
             for g in range(3)], axis=1)

    def pack_b(b):    # (3H,) -> (1, 3Hp)
        return jnp.concatenate(
            [_pad_to(b[g * H:(g + 1) * H].astype(jnp.float32), (Hp,))
             for g in range(3)]).reshape(1, 3 * Hp)

    wihT = jnp.stack([pack_ih(gru[l][0]) for l in range(L)])     # (L, Dp, 3Hp)
    whhT = jnp.stack([pack_hh(gru[l][1]) for l in range(L)])     # (L, Hp, 3Hp)
    bih = jnp.stack([pack_b(gru[l][2]) for l in range(L)])       # (L, 1, 3Hp)
    bhh = jnp.stack([pack_b(gru[l][3]) for l in range(L)])       # (L, 1, 3Hp)

    fc1_w = params["fc1_w"].astype(jnp.float32)                  # (H, 3H)
    fc1_b = params["fc1_b"].astype(jnp.float32)
    fc1wT = jnp.stack([_pad_to(fc1_w[:, k * H:(k + 1) * H].T, (Hp, Hp))
                       for k in range(3)])                       # (3, Hp, Hp)
    fc1b = _pad_to(fc1_b, (Hp,)).reshape(1, Hp)

    fc2_w = params["fc2_w"].astype(jnp.float32)                  # (LH, LH)
    fc2_b = params["fc2_b"].astype(jnp.float32)
    fc2wT = jnp.stack([_pad_to(fc2_w[o * H:(o + 1) * H, i * H:(i + 1) * H].T,
                               (Hp, Hp))
                       for o in range(L) for i in range(L)])     # (L*L, Hp, Hp)
    fc2b = jnp.stack([_pad_to(fc2_b[o * H:(o + 1) * H], (Hp,)).reshape(1, Hp)
                      for o in range(L)])                        # (L, 1, Hp)

    operands = (x, wihT, whhT, bih, bhh, fc1wT, fc1b, fc2wT, fc2b)

    op_bytes = sum(int(np.prod(a.shape)) * 4 for a in operands)
    scratch_bytes = (T * Bp * 3 * Hp + T * Bp * Hp) * 4
    out_bytes = (1 + L) * Bp * Hp * 4
    vmem_limit = int(min(48 * 1024 * 1024,
                         max(16 * 1024 * 1024,
                             2 * (op_bytes + scratch_bytes + out_bytes))))

    def _vmem():
        return pl.BlockSpec(memory_space=pltpu.MemorySpace.VMEM)

    out = pl.pallas_call(
        encoder_kernel,
        out_shape=jax.ShapeDtypeStruct((1 + L, Bp, Hp), jnp.float32),
        in_specs=[_vmem() for _ in operands],
        out_specs=_vmem(),
        scratch_shapes=[pltpu.VMEM((T * Bp, 3 * Hp), jnp.float32),
                        pltpu.VMEM((T * Bp, Hp), jnp.float32)],
        compiler_params=pltpu.CompilerParams(vmem_limit_bytes=vmem_limit),
    )(*operands)

    # TODO(synk): for long sequences / big batches add a time-chunk grid
    # (h carried in VMEM scratch, axis "arbitrary") plus a "parallel" batch
    # axis so the two v7x TensorCores split the batch and VMEM stays < 64 MiB.

    # Unpad + reassemble: [glob | lasth_0 | ... | lasth_{L-1}]
    return jnp.concatenate([out[i, :B, :H] for i in range(1 + L)], axis=-1)


# --------------------------- Pure-JAX reference ------------------------------


def encoder_reference(X, params):
    gru_params = params["gru"]
    L = len(gru_params)
    B, T, _ = X.shape
    H = gru_params[0][1].shape[1]

    inp = X.astype(jnp.float32)
    h_finals = []
    for l in range(L):
        wih, whh, bih, bhh = gru_params[l]

        def cell(h, x_t):
            gi = x_t @ wih.T + bih
            gh = h @ whh.T + bhh
            r = jax.nn.sigmoid(gi[:, :H] + gh[:, :H])
            z = jax.nn.sigmoid(gi[:, H:2 * H] + gh[:, H:2 * H])
            n = jnp.tanh(gi[:, 2 * H:] + r * gh[:, 2 * H:])
            h_new = (1.0 - z) * n + z * h
            return h_new, h_new

        h0 = jnp.zeros((B, H), jnp.float32)
        hT, outs = jax.lax.scan(cell, h0, jnp.swapaxes(inp, 0, 1))
        inp = jnp.swapaxes(outs, 0, 1)
        h_finals.append(hT)

    H_o = inp                                                 # (B, T, H)
    H_mean = jnp.mean(H_o, axis=1)
    H_max = jnp.max(H_o, axis=1)
    H_last = h_finals[-1]
    glob = jnp.concatenate([H_mean, H_max, H_last], axis=-1)
    glob = glob @ params["fc1_w"].T + params["fc1_b"]
    glob = jnp.where(glob >= 0, glob, 0.2 * glob)
    lasth = jnp.concatenate(h_finals, axis=-1)
    lasth = lasth @ params["fc2_w"].T + params["fc2_b"]
    lasth = jnp.where(lasth >= 0, lasth, 0.2 * lasth)
    return jnp.concatenate([glob, lasth], axis=-1)


# --------------------------------- Main --------------------------------------


def init_params(key, feature_dim, hidden_dim, num_layers):
    """Deterministic init mimicking PyTorch's uniform(-1/sqrt(H), 1/sqrt(H))."""
    bound = 1.0 / np.sqrt(hidden_dim)
    keys = jax.random.split(key, 4 * num_layers + 4)

    def u(k, shape):
        return jax.random.uniform(k, shape, jnp.float32, -bound, bound)

    gru = []
    ki = 0
    for l in range(num_layers):
        din = feature_dim if l == 0 else hidden_dim
        wih = u(keys[ki], (3 * hidden_dim, din)); ki += 1
        whh = u(keys[ki], (3 * hidden_dim, hidden_dim)); ki += 1
        bih = u(keys[ki], (3 * hidden_dim,)); ki += 1
        bhh = u(keys[ki], (3 * hidden_dim,)); ki += 1
        gru.append((wih, whh, bih, bhh))

    fc1_w = u(keys[ki], (hidden_dim, hidden_dim * 3)); ki += 1
    fc1_b = u(keys[ki], (hidden_dim,)); ki += 1
    fc2_w = u(keys[ki], (hidden_dim * num_layers, hidden_dim * num_layers)); ki += 1
    fc2_b = u(keys[ki], (hidden_dim * num_layers,)); ki += 1

    return {"gru": gru, "fc1_w": fc1_w, "fc1_b": fc1_b,
            "fc2_w": fc2_w, "fc2_b": fc2_b}


if __name__ == "__main__":
    feature_dim = 8
    hidden_dim = 32
    num_layers = 2
    max_seq_len = 8
    batch = 4

    key = jax.random.PRNGKey(0)
    k_x, k_p = jax.random.split(key)
    X = jax.random.normal(k_x, (batch, max_seq_len, feature_dim), jnp.float32)
    params = init_params(k_p, feature_dim, hidden_dim, num_layers)

    out = jax.block_until_ready(encoder_forward(X, params))
    ref = jax.block_until_ready(encoder_reference(X, params))

    assert out.shape == (batch, hidden_dim + hidden_dim * num_layers), out.shape
    np.testing.assert_allclose(np.asarray(out), np.asarray(ref),
                               rtol=1e-4, atol=1e-5)
    print("KERNEL_OK")
</pallas_src>

<mosaic_0001>
module attributes {stable_mosaic.version = 11 : i64} {
  func.func @encoder_kernel(%arg0: memref<64x128xf32, #tpu.memory_space<vmem>>, %arg1: memref<2x128x384xf32, #tpu.memory_space<vmem>>, %arg2: memref<2x128x384xf32, #tpu.memory_space<vmem>>, %arg3: memref<2x1x384xf32, #tpu.memory_space<vmem>>, %arg4: memref<2x1x384xf32, #tpu.memory_space<vmem>>, %arg5: memref<3x128x128xf32, #tpu.memory_space<vmem>>, %arg6: memref<1x128xf32, #tpu.memory_space<vmem>>, %arg7: memref<4x128x128xf32, #tpu.memory_space<vmem>>, %arg8: memref<2x1x128xf32, #tpu.memory_space<vmem>>, %arg9: memref<3x8x128xf32, #tpu.memory_space<vmem>>, %arg10: memref<64x384xf32, #tpu.memory_space<vmem>>, %arg11: memref<64x128xf32, #tpu.memory_space<vmem>>) attributes {dimension_semantics = [], scalar_prefetch = 0 : i64, scratch_operands = 2 : i64, tpu.core_type = #tpu.core_type<tc>} {
    %c0 = arith.constant 0 : index
    %c0_0 = arith.constant 0 : index
    %0 = vector.load %arg0[%c0, %c0_0] : memref<64x128xf32, #tpu.memory_space<vmem>>, vector<64x128xf32>
    %c0_1 = arith.constant 0 : index
    %c0_2 = arith.constant 0 : index
    %c0_3 = arith.constant 0 : index
    %1 = vector.load %arg1[%c0_1, %c0_2, %c0_3] : memref<2x128x384xf32, #tpu.memory_space<vmem>>, vector<1x128x384xf32>
    %2 = vector.shape_cast %1 : vector<1x128x384xf32> to vector<128x384xf32>
    %cst = arith.constant dense<0.000000e+00> : vector<64x384xf32>
    %3 = tpu.matmul %0, %2, %cst {dimension_numbers = #tpu.dot_dimension_numbers<[1], [0], [0], [1], [0, 0, 1, 1], [], []>} : vector<64x128xf32>, vector<128x384xf32>, vector<64x384xf32> -> vector<64x384xf32>
    %c0_4 = arith.constant 0 : index
    %c0_5 = arith.constant 0 : index
    %c0_6 = arith.constant 0 : index
    %4 = vector.load %arg3[%c0_4, %c0_5, %c0_6] : memref<2x1x384xf32, #tpu.memory_space<vmem>>, vector<1x1x384xf32>
    %5 = vector.shape_cast %4 : vector<1x1x384xf32> to vector<1x384xf32>
    %6 = vector.broadcast %5 : vector<1x384xf32> to vector<64x384xf32>
    %7 = arith.addf %3, %6 : vector<64x384xf32>
    %c0_7 = arith.constant 0 : index
    %c0_8 = arith.constant 0 : index
    %8 = vector.load %arg10[%c0_7, %c0_8] : memref<64x384xf32, #tpu.memory_space<vmem>>, vector<64x384xf32>
    tpu.vector_store %arg10[%c0_7, %c0_8], %7 {strides = array<i32>} : memref<64x384xf32, #tpu.memory_space<vmem>>, vector<64x384xf32>,
    %c0_9 = arith.constant 0 : index
    %c0_10 = arith.constant 0 : index
    %c0_11 = arith.constant 0 : index
    %9 = vector.load %arg2[%c0_9, %c0_10, %c0_11] : memref<2x128x384xf32, #tpu.memory_space<vmem>>, vector<1x128x384xf32>
    %10 = vector.shape_cast %9 : vector<1x128x384xf32> to vector<128x384xf32>
    %c0_12 = arith.constant 0 : index
    %c0_13 = arith.constant 0 : index
    %c0_14 = arith.constant 0 : index
    %11 = vector.load %arg4[%c0_12, %c0_13, %c0_14] : memref<2x1x384xf32, #tpu.memory_space<vmem>>, vector<1x1x384xf32>
    %12 = vector.shape_cast %11 : vector<1x1x384xf32> to vector<1x384xf32>
    %cst_15 = arith.constant 0.000000e+00 : f32
    %13 = vector.broadcast %cst_15 : f32 to vector<8x128xf32>
    %c0_16 = arith.constant 0 : index
    %c0_17 = arith.constant 0 : index
    %14 = vector.load %arg10[%c0_16, %c0_17] : memref<64x384xf32, #tpu.memory_space<vmem>>, vector<8x384xf32>
    %cst_18 = arith.constant dense<0.000000e+00> : vector<8x384xf32>
    %15 = tpu.matmul %13, %10, %cst_18 {dimension_numbers = #tpu.dot_dimension_numbers<[1], [0], [0], [1], [0, 0, 1, 1], [], []>} : vector<8x128xf32>, vector<128x384xf32>, vector<8x384xf32> -> vector<8x384xf32>
    %16 = vector.broadcast %12 : vector<1x384xf32> to vector<8x384xf32>
    %17 = arith.addf %15, %16 : vector<8x384xf32>
    %18 = vector.extract_strided_slice %14 {offsets = [0, 0], sizes = [8, 128], strides = [1, 1]} : vector<8x384xf32> to vector<8x128xf32>
    %19 = vector.extract_strided_slice %17 {offsets = [0, 0], sizes = [8, 128], strides = [1, 1]} : vector<8x384xf32> to vector<8x128xf32>
    %20 = arith.addf %18, %19 : vector<8x128xf32>
    %21 = arith.negf %20 : vector<8x128xf32>
    %22 = math.exp %21 : vector<8x128xf32>
    %cst_19 = arith.constant 1.000000e+00 : f32
    %23 = vector.broadcast %cst_19 : f32 to vector<8x128xf32>
    %24 = arith.addf %23, %22 : vector<8x128xf32>
    %25 = arith.divf %23, %24 : vector<8x128xf32>
    %26 = vector.extract_strided_slice %14 {offsets = [0, 128], sizes = [8, 128], strides = [1, 1]} : vector<8x384xf32> to vector<8x128xf32>
    %27 = vector.extract_strided_slice %17 {offsets = [0, 128], sizes = [8, 128], strides = [1, 1]} : vector<8x384xf32> to vector<8x128xf32>
    %28 = arith.addf %26, %27 : vector<8x128xf32>
    %29 = arith.negf %28 : vector<8x128xf32>
    %30 = math.exp %29 : vector<8x128xf32>
    %cst_20 = arith.constant 1.000000e+00 : f32
    %31 = vector.broadcast %cst_20 : f32 to vector<8x128xf32>
    %32 = arith.addf %31, %30 : vector<8x128xf32>
    %33 = arith.divf %31, %32 : vector<8x128xf32>
    %34 = vector.extract_strided_slice %14 {offsets = [0, 256], sizes = [8, 128], strides = [1, 1]} : vector<8x384xf32> to vector<8x128xf32>
    %35 = vector.extract_strided_slice %17 {offsets = [0, 256], sizes = [8, 128], strides = [1, 1]} : vector<8x384xf32> to vector<8x128xf32>
    %36 = arith.mulf %25, %35 : vector<8x128xf32>
    %37 = arith.addf %34, %36 : vector<8x128xf32>
    %38 = math.tanh %37 : vector<8x128xf32>
    %cst_21 = arith.constant 1.000000e+00 : f32
    %39 = vector.broadcast %cst_21 : f32 to vector<8x128xf32>
    %40 = arith.subf %39, %33 : vector<8x128xf32>
    %41 = arith.mulf %40, %38 : vector<8x128xf32>
    %42 = arith.mulf %33, %13 : vector<8x128xf32>
    %43 = arith.addf %41, %42 : vector<8x128xf32>
    %c0_22 = arith.constant 0 : index
    %c0_23 = arith.constant 0 : index
    %44 = vector.load %arg11[%c0_22, %c0_23] : memref<64x128xf32, #tpu.memory_space<vmem>>, vector<8x128xf32>
    tpu.vector_store %arg11[%c0_22, %c0_23], %43 {strides = array<i32>} : memref<64x128xf32, #tpu.memory_space<vmem>>, vector<8x128xf32>,
    %c8 = arith.constant 8 : index
    %c0_24 = arith.constant 0 : index
    %45 = vector.load %arg10[%c8, %c0_24] : memref<64x384xf32, #tpu.memory_space<vmem>>, vector<8x384xf32>
    %cst_25 = arith.constant dense<0.000000e+00> : vector<8x384xf32>
    %46 = tpu.matmul %43, %10, %cst_25 {dimension_numbers = #tpu.dot_dimension_numbers<[1], [0], [0], [1], [0, 0, 1, 1], [], []>} : vector<8x128xf32>, vector<128x384xf32>, vector<8x384xf32> -> vector<8x384xf32>
    %47 = vector.broadcast %12 : vector<1x384xf32> to vector<8x384xf32>
    %48 = arith.addf %46, %47 : vector<8x384xf32>
    %49 = vector.extract_strided_slice %45 {offsets = [0, 0], sizes = [8, 128], strides = [1, 1]} : vector<8x384xf32> to vector<8x128xf32>
    %50 = vector.extract_strided_slice %48 {offsets = [0, 0], sizes = [8, 128], strides = [1, 1]} : vector<8x384xf32> to vector<8x128xf32>
    %51 = arith.addf %49, %50 : vector<8x128xf32>
    %52 = arith.negf %51 : vector<8x128xf32>
    %53 = math.exp %52 : vector<8x128xf32>
    %cst_26 = arith.constant 1.000000e+00 : f32
    %54 = vector.broadcast %cst_26 : f32 to vector<8x128xf32>
    %55 = arith.addf %54, %53 : vector<8x128xf32>
    %56 = arith.divf %54, %55 : vector<8x128xf32>
    %57 = vector.extract_strided_slice %45 {offsets = [0, 128], sizes = [8, 128], strides = [1, 1]} : vector<8x384xf32> to vector<8x128xf32>
    %58 = vector.extract_strided_slice %48 {offsets = [0, 128], sizes = [8, 128], strides = [1, 1]} : vector<8x384xf32> to vector<8x128xf32>
    %59 = arith.addf %57, %58 : vector<8x128xf32>
    %60 = arith.negf %59 : vector<8x128xf32>
    %61 = math.exp %60 : vector<8x128xf32>
    %cst_27 = arith.constant 1.000000e+00 : f32
    %62 = vector.broadcast %cst_27 : f32 to vector<8x128xf32>
    %63 = arith.addf %62, %61 : vector<8x128xf32>
    %64 = arith.divf %62, %63 : vector<8x128xf32>
    %65 = vector.extract_strided_slice %45 {offsets = [0, 256], sizes = [8, 128], strides = [1, 1]} : vector<8x384xf32> to vector<8x128xf32>
    %66 = vector.extract_strided_slice %48 {offsets = [0, 256], sizes = [8, 128], strides = [1, 1]} : vector<8x384xf32> to vector<8x128xf32>
    %67 = arith.mulf %56, %66 : vector<8x128xf32>
    %68 = arith.addf %65, %67 : vector<8x128xf32>
    %69 = math.tanh %68 : vector<8x128xf32>
    %cst_28 = arith.constant 1.000000e+00 : f32
    %70 = vector.broadcast %cst_28 : f32 to vector<8x128xf32>
    %71 = arith.subf %70, %64 : vector<8x128xf32>
    %72 = arith.mulf %71, %69 : vector<8x128xf32>
    %73 = arith.mulf %64, %43 : vector<8x128xf32>
    %74 = arith.addf %72, %73 : vector<8x128xf32>
    %c8_29 = arith.constant 8 : index
    %c0_30 = arith.constant 0 : index
    %75 = vector.load %arg11[%c8_29, %c0_30] : memref<64x128xf32, #tpu.memory_space<vmem>>, vector<8x128xf32>
    tpu.vector_store %arg11[%c8_29, %c0_30], %74 {strides = array<i32>} : memref<64x128xf32, #tpu.memory_space<vmem>>, vector<8x128xf32>,
    %c16 = arith.constant 16 : index
    %c0_31 = arith.constant 0 : index
    %76 = vector.load %arg10[%c16, %c0_31] : memref<64x384xf32, #tpu.memory_space<vmem>>, vector<8x384xf32>
    %cst_32 = arith.constant dense<0.000000e+00> : vector<8x384xf32>
    %77 = tpu.matmul %74, %10, %cst_32 {dimension_numbers = #tpu.dot_dimension_numbers<[1], [0], [0], [1], [0, 0, 1, 1], [], []>} : vector<8x128xf32>, vector<128x384xf32>, vector<8x384xf32> -> vector<8x384xf32>
    %78 = vector.broadcast %12 : vector<1x384xf32> to vector<8x384xf32>
    %79 = arith.addf %77, %78 : vector<8x384xf32>
    %80 = vector.extract_strided_slice %76 {offsets = [0, 0], sizes = [8, 128], strides = [1, 1]} : vector<8x384xf32> to vector<8x128xf32>
    %81 = vector.extract_strided_slice %79 {offsets = [0, 0], sizes = [8, 128], strides = [1, 1]} : vector<8x384xf32> to vector<8x128xf32>
    %82 = arith.addf %80, %81 : vector<8x128xf32>
    %83 = arith.negf %82 : vector<8x128xf32>
    %84 = math.exp %83 : vector<8x128xf32>
    %cst_33 = arith.constant 1.000000e+00 : f32
    %85 = vector.broadcast %cst_33 : f32 to vector<8x128xf32>
    %86 = arith.addf %85, %84 : vector<8x128xf32>
    %87 = arith.divf %85, %86 : vector<8x128xf32>
    %88 = vector.extract_strided_slice %76 {offsets = [0, 128], sizes = [8, 128], strides = [1, 1]} : vector<8x384xf32> to vector<8x128xf32>
    %89 = vector.extract_strided_slice %79 {offsets = [0, 128], sizes = [8, 128], strides = [1, 1]} : vector<8x384xf32> to vector<8x128xf32>
    %90 = arith.addf %88, %89 : vector<8x128xf32>
    %91 = arith.negf %90 : vector<8x128xf32>
    %92 = math.exp %91 : vector<8x128xf32>
    %cst_34 = arith.constant 1.000000e+00 : f32
    %93 = vector.broadcast %cst_34 : f32 to vector<8x128xf32>
    %94 = arith.addf %93, %92 : vector<8x128xf32>
    %95 = arith.divf %93, %94 : vector<8x128xf32>
    %96 = vector.extract_strided_slice %76 {offsets = [0, 256], sizes = [8, 128], strides = [1, 1]} : vector<8x384xf32> to vector<8x128xf32>
    %97 = vector.extract_strided_slice %79 {offsets = [0, 256], sizes = [8, 128], strides = [1, 1]} : vector<8x384xf32> to vector<8x128xf32>
    %98 = arith.mulf %87, %97 : vector<8x128xf32>
    %99 = arith.addf %96, %98 : vector<8x128xf32>
    %100 = math.tanh %99 : vector<8x128xf32>
    %cst_35 = arith.constant 1.000000e+00 : f32
    %101 = vector.broadcast %cst_35 : f32 to vector<8x128xf32>
    %102 = arith.subf %101, %95 : vector<8x128xf32>
    %103 = arith.mulf %102, %100 : vector<8x128xf32>
    %104 = arith.mulf %95, %74 : vector<8x128xf32>
    %105 = arith.addf %103, %104 : vector<8x128xf32>
    %c16_36 = arith.constant 16 : index
    %c0_37 = arith.constant 0 : index
    %106 = vector.load %arg11[%c16_36, %c0_37] : memref<64x128xf32, #tpu.memory_space<vmem>>, vector<8x128xf32>
    tpu.vector_store %arg11[%c16_36, %c0_37], %105 {strides = array<i32>} : memref<64x128xf32, #tpu.memory_space<vmem>>, vector<8x128xf32>,
    %c24 = arith.constant 24 : index
    %c0_38 = arith.constant 0 : index
    %107 = vector.load %arg10[%c24, %c0_38] : memref<64x384xf32, #tpu.memory_space<vmem>>, vector<8x384xf32>
    %cst_39 = arith.constant dense<0.000000e+00> : vector<8x384xf32>
    %108 = tpu.matmul %105, %10, %cst_39 {dimension_numbers = #tpu.dot_dimension_numbers<[1], [0], [0], [1], [0, 0, 1, 1], [], []>} : vector<8x128xf32>, vector<128x384xf32>, vector<8x384xf32> -> vector<8x384xf32>
    %109 = vector.broadcast %12 : vector<1x384xf32> to vector<8x384xf32>
    %110 = arith.addf %108, %109 : vector<8x384xf32>
    %111 = vector.extract_strided_slice %107 {offsets = [0, 0], sizes = [8, 128], strides = [1, 1]} : vector<8x384xf32> to vector<8x128xf32>
    %112 = vector.extract_strided_slice %110 {offsets = [0, 0], sizes = [8, 128], strides = [1, 1]} : vector<8x384xf32> to vector<8x128xf32>
    %113 = arith.addf %111, %112 : vector<8x128xf32>
    %114 = arith.negf %113 : vector<8x128xf32>
    %115 = math.exp %114 : vector<8x128xf32>
    %cst_40 = arith.constant 1.000000e+00 : f32
    %116 = vector.broadcast %cst_40 : f32 to vector<8x128xf32>
    %117 = arith.addf %116, %115 : vector<8x128xf32>
    %118 = arith.divf %116, %117 : vector<8x128xf32>
    %119 = vector.extract_strided_slice %107 {offsets = [0, 128], sizes = [8, 128], strides = [1, 1]} : vector<8x384xf32> to vector<8x128xf32>
    %120 = vector.extract_strided_slice %110 {offsets = [0, 128], sizes = [8, 128], strides = [1, 1]} : vector<8x384xf32> to vector<8x128xf32>
    %121 = arith.addf %119, %120 : vector<8x128xf32>
    %122 = arith.negf %121 : vector<8x128xf32>
    %123 = math.exp %122 : vector<8x128xf32>
    %cst_41 = arith.constant 1.000000e+00 : f32
    %124 = vector.broadcast %cst_41 : f32 to vector<8x128xf32>
    %125 = arith.addf %124, %123 : vector<8x128xf32>
    %126 = arith.divf %124, %125 : vector<8x128xf32>
    %127 = vector.extract_strided_slice %107 {offsets = [0, 256], sizes = [8, 128], strides = [1, 1]} : vector<8x384xf32> to vector<8x128xf32>
    %128 = vector.extract_strided_slice %110 {offsets = [0, 256], sizes = [8, 128], strides = [1, 1]} : vector<8x384xf32> to vector<8x128xf32>
    %129 = arith.mulf %118, %128 : vector<8x128xf32>
    %130 = arith.addf %127, %129 : vector<8x128xf32>
    %131 = math.tanh %130 : vector<8x128xf32>
    %cst_42 = arith.constant 1.000000e+00 : f32
    %132 = vector.broadcast %cst_42 : f32 to vector<8x128xf32>
    %133 = arith.subf %132, %126 : vector<8x128xf32>
    %134 = arith.mulf %133, %131 : vector<8x128xf32>
    %135 = arith.mulf %126, %105 : vector<8x128xf32>
    %136 = arith.addf %134, %135 : vector<8x128xf32>
    %c24_43 = arith.constant 24 : index
    %c0_44 = arith.constant 0 : index
    %137 = vector.load %arg11[%c24_43, %c0_44] : memref<64x128xf32, #tpu.memory_space<vmem>>, vector<8x128xf32>
    tpu.vector_store %arg11[%c24_43, %c0_44], %136 {strides = array<i32>} : memref<64x128xf32, #tpu.memory_space<vmem>>, vector<8x128xf32>,
    %c32 = arith.constant 32 : index
    %c0_45 = arith.constant 0 : index
    %138 = vector.load %arg10[%c32, %c0_45] : memref<64x384xf32, #tpu.memory_space<vmem>>, vector<8x384xf32>
    %cst_46 = arith.constant dense<0.000000e+00> : vector<8x384xf32>
    %139 = tpu.matmul %136, %10, %cst_46 {dimension_numbers = #tpu.dot_dimension_numbers<[1], [0], [0], [1], [0, 0, 1, 1], [], []>} : vector<8x128xf32>, vector<128x384xf32>, vector<8x384xf32> -> vector<8x384xf32>
    %140 = vector.broadcast %12 : vector<1x384xf32> to vector<8x384xf32>
    %141 = arith.addf %139, %140 : vector<8x384xf32>
    %142 = vector.extract_strided_slice %138 {offsets = [0, 0], sizes = [8, 128], strides = [1, 1]} : vector<8x384xf32> to vector<8x128xf32>
    %143 = vector.extract_strided_slice %141 {offsets = [0, 0], sizes = [8, 128], strides = [1, 1]} : vector<8x384xf32> to vector<8x128xf32>
    %144 = arith.addf %142, %143 : vector<8x128xf32>
    %145 = arith.negf %144 : vector<8x128xf32>
    %146 = math.exp %145 : vector<8x128xf32>
    %cst_47 = arith.constant 1.000000e+00 : f32
    %147 = vector.broadcast %cst_47 : f32 to vector<8x128xf32>
    %148 = arith.addf %147, %146 : vector<8x128xf32>
    %149 = arith.divf %147, %148 : vector<8x128xf32>
    %150 = vector.extract_strided_slice %138 {offsets = [0, 128], sizes = [8, 128], strides = [1, 1]} : vector<8x384xf32> to vector<8x128xf32>
    %151 = vector.extract_strided_slice %141 {offsets = [0, 128], sizes = [8, 128], strides = [1, 1]} : vector<8x384xf32> to vector<8x128xf32>
    %152 = arith.addf %150, %151 : vector<8x128xf32>
    %153 = arith.negf %152 : vector<8x128xf32>
    %154 = math.exp %153 : vector<8x128xf32>
    %cst_48 = arith.constant 1.000000e+00 : f32
    %155 = vector.broadcast %cst_48 : f32 to vector<8x128xf32>
    %156 = arith.addf %155, %154 : vector<8x128xf32>
    %157 = arith.divf %155, %156 : vector<8x128xf32>
    %158 = vector.extract_strided_slice %138 {offsets = [0, 256], sizes = [8, 128], strides = [1, 1]} : vector<8x384xf32> to vector<8x128xf32>
    %159 = vector.extract_strided_slice %141 {offsets = [0, 256], sizes = [8, 128], strides = [1, 1]} : vector<8x384xf32> to vector<8x128xf32>
    %160 = arith.mulf %149, %159 : vector<8x128xf32>
    %161 = arith.addf %158, %160 : vector<8x128xf32>
    %162 = math.tanh %161 : vector<8x128xf32>
    %cst_49 = arith.constant 1.000000e+00 : f32
    %163 = vector.broadcast %cst_49 : f32 to vector<8x128xf32>
    %164 = arith.subf %163, %157 : vector<8x128xf32>
    %165 = arith.mulf %164, %162 : vector<8x128xf32>
    %166 = arith.mulf %157, %136 : vector<8x128xf32>
    %167 = arith.addf %165, %166 : vector<8x128xf32>
    %c32_50 = arith.constant 32 : index
    %c0_51 = arith.constant 0 : index
    %168 = vector.load %arg11[%c32_50, %c0_51] : memref<64x128xf32, #tpu.memory_space<vmem>>, vector<8x128xf32>
    tpu.vector_store %arg11[%c32_50, %c0_51], %167 {strides = array<i32>} : memref<64x128xf32, #tpu.memory_space<vmem>>, vector<8x128xf32>,
    %c40 = arith.constant 40 : index
    %c0_52 = arith.constant 0 : index
    %169 = vector.load %arg10[%c40, %c0_52] : memref<64x384xf32, #tpu.memory_space<vmem>>, vector<8x384xf32>
    %cst_53 = arith.constant dense<0.000000e+00> : vector<8x384xf32>
    %170 = tpu.matmul %167, %10, %cst_53 {dimension_numbers = #tpu.dot_dimension_numbers<[1], [0], [0], [1], [0, 0, 1, 1], [], []>} : vector<8x128xf32>, vector<128x384xf32>, vector<8x384xf32> -> vector<8x384xf32>
    %171 = vector.broadcast %12 : vector<1x384xf32> to vector<8x384xf32>
    %172 = arith.addf %170, %171 : vector<8x384xf32>
    %173 = vector.extract_strided_slice %169 {offsets = [0, 0], sizes = [8, 128], strides = [1, 1]} : vector<8x384xf32> to vector<8x128xf32>
    %174 = vector.extract_strided_slice %172 {offsets = [0, 0], sizes = [8, 128], strides = [1, 1]} : vector<8x384xf32> to vector<8x128xf32>
    %175 = arith.addf %173, %174 : vector<8x128xf32>
    %176 = arith.negf %175 : vector<8x128xf32>
    %177 = math.exp %176 : vector<8x128xf32>
    %cst_54 = arith.constant 1.000000e+00 : f32
    %178 = vector.broadcast %cst_54 : f32 to vector<8x128xf32>
    %179 = arith.addf %178, %177 : vector<8x128xf32>
    %180 = arith.divf %178, %179 : vector<8x128xf32>
    %181 = vector.extract_strided_slice %169 {offsets = [0, 128], sizes = [8, 128], strides = [1, 1]} : vector<8x384xf32> to vector<8x128xf32>
    %182 = vector.extract_strided_slice %172 {offsets = [0, 128], sizes = [8, 128], strides = [1, 1]} : vector<8x384xf32> to vector<8x128xf32>
    %183 = arith.addf %181, %182 : vector<8x128xf32>
    %184 = arith.negf %183 : vector<8x128xf32>
    %185 = math.exp %184 : vector<8x128xf32>
    %cst_55 = arith.constant 1.000000e+00 : f32
    %186 = vector.broadcast %cst_55 : f32 to vector<8x128xf32>
    %187 = arith.addf %186, %185 : vector<8x128xf32>
    %188 = arith.divf %186, %187 : vector<8x128xf32>
    %189 = vector.extract_strided_slice %169 {offsets = [0, 256], sizes = [8, 128], strides = [1, 1]} : vector<8x384xf32> to vector<8x128xf32>
    %190 = vector.extract_strided_slice %172 {offsets = [0, 256], sizes = [8, 128], strides = [1, 1]} : vector<8x384xf32> to vector<8x128xf32>
    %191 = arith.mulf %180, %190 : vector<8x128xf32>
    %192 = arith.addf %189, %191 : vector<8x128xf32>
    %193 = math.tanh %192 : vector<8x128xf32>
    %cst_56 = arith.constant 1.000000e+00 : f32
    %194 = vector.broadcast %cst_56 : f32 to vector<8x128xf32>
    %195 = arith.subf %194, %188 : vector<8x128xf32>
    %196 = arith.mulf %195, %193 : vector<8x128xf32>
    %197 = arith.mulf %188, %167 : vector<8x128xf32>
    %198 = arith.addf %196, %197 : vector<8x128xf32>
    %c40_57 = arith.constant 40 : index
    %c0_58 = arith.constant 0 : index
    %199 = vector.load %arg11[%c40_57, %c0_58] : memref<64x128xf32, #tpu.memory_space<vmem>>, vector<8x128xf32>
    tpu.vector_store %arg11[%c40_57, %c0_58], %198 {strides = array<i32>} : memref<64x128xf32, #tpu.memory_space<vmem>>, vector<8x128xf32>,
    %c48 = arith.constant 48 : index
    %c0_59 = arith.constant 0 : index
    %200 = vector.load %arg10[%c48, %c0_59] : memref<64x384xf32, #tpu.memory_space<vmem>>, vector<8x384xf32>
    %cst_60 = arith.constant dense<0.000000e+00> : vector<8x384xf32>
    %201 = tpu.matmul %198, %10, %cst_60 {dimension_numbers = #tpu.dot_dimension_numbers<[1], [0], [0], [1], [0, 0, 1, 1], [], []>} : vector<8x128xf32>, vector<128x384xf32>, vector<8x384xf32> -> vector<8x384xf32>
    %202 = vector.broadcast %12 : vector<1x384xf32> to vector<8x384xf32>
    %203 = arith.addf %201, %202 : vector<8x384xf32>
    %204 = vector.extract_strided_slice %200 {offsets = [0, 0], sizes = [8, 128], strides = [1, 1]} : vector<8x384xf32> to vector<8x128xf32>
    %205 = vector.extract_strided_slice %203 {offsets = [0, 0], sizes = [8, 128], strides = [1, 1]} : vector<8x384xf32> to vector<8x128xf32>
    %206 = arith.addf %204, %205 : vector<8x128xf32>
    %207 = arith.negf %206 : vector<8x128xf32>
    %208 = math.exp %207 : vector<8x128xf32>
    %cst_61 = arith.constant 1.000000e+00 : f32
    %209 = vector.broadcast %cst_61 : f32 to vector<8x128xf32>
    %210 = arith.addf %209, %208 : vector<8x128xf32>
    %211 = arith.divf %209, %210 : vector<8x128xf32>
    %212 = vector.extract_strided_slice %200 {offsets = [0, 128], sizes = [8, 128], strides = [1, 1]} : vector<8x384xf32> to vector<8x128xf32>
    %213 = vector.extract_strided_slice %203 {offsets = [0, 128], sizes = [8, 128], strides = [1, 1]} : vector<8x384xf32> to vector<8x128xf32>
    %214 = arith.addf %212, %213 : vector<8x128xf32>
    %215 = arith.negf %214 : vector<8x128xf32>
    %216 = math.exp %215 : vector<8x128xf32>
    %cst_62 = arith.constant 1.000000e+00 : f32
    %217 = vector.broadcast %cst_62 : f32 to vector<8x128xf32>
    %218 = arith.addf %217, %216 : vector<8x128xf32>
    %219 = arith.divf %217, %218 : vector<8x128xf32>
    %220 = vector.extract_strided_slice %200 {offsets = [0, 256], sizes = [8, 128], strides = [1, 1]} : vector<8x384xf32> to vector<8x128xf32>
    %221 = vector.extract_strided_slice %203 {offsets = [0, 256], sizes = [8, 128], strides = [1, 1]} : vector<8x384xf32> to vector<8x128xf32>
    %222 = arith.mulf %211, %221 : vector<8x128xf32>
    %223 = arith.addf %220, %222 : vector<8x128xf32>
    %224 = math.tanh %223 : vector<8x128xf32>
    %cst_63 = arith.constant 1.000000e+00 : f32
    %225 = vector.broadcast %cst_63 : f32 to vector<8x128xf32>
    %226 = arith.subf %225, %219 : vector<8x128xf32>
    %227 = arith.mulf %226, %224 : vector<8x128xf32>
    %228 = arith.mulf %219, %198 : vector<8x128xf32>
    %229 = arith.addf %227, %228 : vector<8x128xf32>
    %c48_64 = arith.constant 48 : index
    %c0_65 = arith.constant 0 : index
    %230 = vector.load %arg11[%c48_64, %c0_65] : memref<64x128xf32, #tpu.memory_space<vmem>>, vector<8x128xf32>
    tpu.vector_store %arg11[%c48_64, %c0_65], %229 {strides = array<i32>} : memref<64x128xf32, #tpu.memory_space<vmem>>, vector<8x128xf32>,
    %c56 = arith.constant 56 : index
    %c0_66 = arith.constant 0 : index
    %231 = vector.load %arg10[%c56, %c0_66] : memref<64x384xf32, #tpu.memory_space<vmem>>, vector<8x384xf32>
    %cst_67 = arith.constant dense<0.000000e+00> : vector<8x384xf32>
    %232 = tpu.matmul %229, %10, %cst_67 {dimension_numbers = #tpu.dot_dimension_numbers<[1], [0], [0], [1], [0, 0, 1, 1], [], []>} : vector<8x128xf32>, vector<128x384xf32>, vector<8x384xf32> -> vector<8x384xf32>
    %233 = vector.broadcast %12 : vector<1x384xf32> to vector<8x384xf32>
    %234 = arith.addf %232, %233 : vector<8x384xf32>
    %235 = vector.extract_strided_slice %231 {offsets = [0, 0], sizes = [8, 128], strides = [1, 1]} : vector<8x384xf32> to vector<8x128xf32>
    %236 = vector.extract_strided_slice %234 {offsets = [0, 0], sizes = [8, 128], strides = [1, 1]} : vector<8x384xf32> to vector<8x128xf32>
    %237 = arith.addf %235, %236 : vector<8x128xf32>
    %238 = arith.negf %237 : vector<8x128xf32>
    %239 = math.exp %238 : vector<8x128xf32>
    %cst_68 = arith.constant 1.000000e+00 : f32
    %240 = vector.broadcast %cst_68 : f32 to vector<8x128xf32>
    %241 = arith.addf %240, %239 : vector<8x128xf32>
    %242 = arith.divf %240, %241 : vector<8x128xf32>
    %243 = vector.extract_strided_slice %231 {offsets = [0, 128], sizes = [8, 128], strides = [1, 1]} : vector<8x384xf32> to vector<8x128xf32>
    %244 = vector.extract_strided_slice %234 {offsets = [0, 128], sizes = [8, 128], strides = [1, 1]} : vector<8x384xf32> to vector<8x128xf32>
    %245 = arith.addf %243, %244 : vector<8x128xf32>
    %246 = arith.negf %245 : vector<8x128xf32>
    %247 = math.exp %246 : vector<8x128xf32>
    %cst_69 = arith.constant 1.000000e+00 : f32
    %248 = vector.broadcast %cst_69 : f32 to vector<8x128xf32>
    %249 = arith.addf %248, %247 : vector<8x128xf32>
    %250 = arith.divf %248, %249 : vector<8x128xf32>
    %251 = vector.extract_strided_slice %231 {offsets = [0, 256], sizes = [8, 128], strides = [1, 1]} : vector<8x384xf32> to vector<8x128xf32>
    %252 = vector.extract_strided_slice %234 {offsets = [0, 256], sizes = [8, 128], strides = [1, 1]} : vector<8x384xf32> to vector<8x128xf32>
    %253 = arith.mulf %242, %252 : vector<8x128xf32>
    %254 = arith.addf %251, %253 : vector<8x128xf32>
    %255 = math.tanh %254 : vector<8x128xf32>
    %cst_70 = arith.constant 1.000000e+00 : f32
    %256 = vector.broadcast %cst_70 : f32 to vector<8x128xf32>
    %257 = arith.subf %256, %250 : vector<8x128xf32>
    %258 = arith.mulf %257, %255 : vector<8x128xf32>
    %259 = arith.mulf %250, %229 : vector<8x128xf32>
    %260 = arith.addf %258, %259 : vector<8x128xf32>
    %c56_71 = arith.constant 56 : index
    %c0_72 = arith.constant 0 : index
    %261 = vector.load %arg11[%c56_71, %c0_72] : memref<64x128xf32, #tpu.memory_space<vmem>>, vector<8x128xf32>
    tpu.vector_store %arg11[%c56_71, %c0_72], %260 {strides = array<i32>} : memref<64x128xf32, #tpu.memory_space<vmem>>, vector<8x128xf32>,
    %c0_73 = arith.constant 0 : index
    %c0_74 = arith.constant 0 : index
    %262 = vector.load %arg11[%c0_73, %c0_74] : memref<64x128xf32, #tpu.memory_space<vmem>>, vector<64x128xf32>
    %c1 = arith.constant 1 : index
    %c0_75 = arith.constant 0 : index
    %c0_76 = arith.constant 0 : index
    %263 = vector.load %arg1[%c1, %c0_75, %c0_76] : memref<2x128x384xf32, #tpu.memory_space<vmem>>, vector<1x128x384xf32>
    %264 = vector.shape_cast %263 : vector<1x128x384xf32> to vector<128x384xf32>
    %cst_77 = arith.constant dense<0.000000e+00> : vector<64x384xf32>
    %265 = tpu.matmul %262, %264, %cst_77 {dimension_numbers = #tpu.dot_dimension_numbers<[1], [0], [0], [1], [0, 0, 1, 1], [], []>} : vector<64x128xf32>, vector<128x384xf32>, vector<64x384xf32> -> vector<64x384xf32>
    %c1_78 = arith.constant 1 : index
    %c0_79 = arith.constant 0 : index
    %c0_80 = arith.constant 0 : index
    %266 = vector.load %arg3[%c1_78, %c0_79, %c0_80] : memref<2x1x384xf32, #tpu.memory_space<vmem>>, vector<1x1x384xf32>
    %267 = vector.shape_cast %266 : vector<1x1x384xf32> to vector<1x384xf32>
    %268 = vector.broadcast %267 : vector<1x384xf32> to vector<64x384xf32>
    %269 = arith.addf %265, %268 : vector<64x384xf32>
    %c0_81 = arith.constant 0 : index
    %c0_82 = arith.constant 0 : index
    %270 = vector.load %arg10[%c0_81, %c0_82] : memref<64x384xf32, #tpu.memory_space<vmem>>, vector<64x384xf32>
    tpu.vector_store %arg10[%c0_81, %c0_82], %269 {strides = array<i32>} : memref<64x384xf32, #tpu.memory_space<vmem>>, vector<64x384xf32>,
    %c1_83 = arith.constant 1 : index
    %c0_84 = arith.constant 0 : index
    %c0_85 = arith.constant 0 : index
    %271 = vector.load %arg2[%c1_83, %c0_84, %c0_85] : memref<2x128x384xf32, #tpu.memory_space<vmem>>, vector<1x128x384xf32>
    %272 = vector.shape_cast %271 : vector<1x128x384xf32> to vector<128x384xf32>
    %c1_86 = arith.constant 1 : index
    %c0_87 = arith.constant 0 : index
    %c0_88 = arith.constant 0 : index
    %273 = vector.load %arg4[%c1_86, %c0_87, %c0_88] : memref<2x1x384xf32, #tpu.memory_space<vmem>>, vector<1x1x384xf32>
    %274 = vector.shape_cast %273 : vector<1x1x384xf32> to vector<1x384xf32>
    %cst_89 = arith.constant 0.000000e+00 : f32
    %275 = vector.broadcast %cst_89 : f32 to vector<8x128xf32>
    %cst_90 = arith.constant 0.000000e+00 : f32
    %276 = vector.broadcast %cst_90 : f32 to vector<8x128xf32>
    %cst_91 = arith.constant 0xFF800000 : f32
    %277 = vector.broadcast %cst_91 : f32 to vector<8x128xf32>
    %c0_92 = arith.constant 0 : index
    %c0_93 = arith.constant 0 : index
    %278 = vector.load %arg10[%c0_92, %c0_93] : memref<64x384xf32, #tpu.memory_space<vmem>>, vector<8x384xf32>
    %cst_94 = arith.constant dense<0.000000e+00> : vector<8x384xf32>
    %279 = tpu.matmul %275, %272, %cst_94 {dimension_numbers = #tpu.dot_dimension_numbers<[1], [0], [0], [1], [0, 0, 1, 1], [], []>} : vector<8x128xf32>, vector<128x384xf32>, vector<8x384xf32> -> vector<8x384xf32>
    %280 = vector.broadcast %274 : vector<1x384xf32> to vector<8x384xf32>
    %281 = arith.addf %279, %280 : vector<8x384xf32>
    %282 = vector.extract_strided_slice %278 {offsets = [0, 0], sizes = [8, 128], strides = [1, 1]} : vector<8x384xf32> to vector<8x128xf32>
    %283 = vector.extract_strided_slice %281 {offsets = [0, 0], sizes = [8, 128], strides = [1, 1]} : vector<8x384xf32> to vector<8x128xf32>
    %284 = arith.addf %282, %283 : vector<8x128xf32>
    %285 = arith.negf %284 : vector<8x128xf32>
    %286 = math.exp %285 : vector<8x128xf32>
    %cst_95 = arith.constant 1.000000e+00 : f32
    %287 = vector.broadcast %cst_95 : f32 to vector<8x128xf32>
    %288 = arith.addf %287, %286 : vector<8x128xf32>
    %289 = arith.divf %287, %288 : vector<8x128xf32>
    %290 = vector.extract_strided_slice %278 {offsets = [0, 128], sizes = [8, 128], strides = [1, 1]} : vector<8x384xf32> to vector<8x128xf32>
    %291 = vector.extract_strided_slice %281 {offsets = [0, 128], sizes = [8, 128], strides = [1, 1]} : vector<8x384xf32> to vector<8x128xf32>
    %292 = arith.addf %290, %291 : vector<8x128xf32>
    %293 = arith.negf %292 : vector<8x128xf32>
    %294 = math.exp %293 : vector<8x128xf32>
    %cst_96 = arith.constant 1.000000e+00 : f32
    %295 = vector.broadcast %cst_96 : f32 to vector<8x128xf32>
    %296 = arith.addf %295, %294 : vector<8x128xf32>
    %297 = arith.divf %295, %296 : vector<8x128xf32>
    %298 = vector.extract_strided_slice %278 {offsets = [0, 256], sizes = [8, 128], strides = [1, 1]} : vector<8x384xf32> to vector<8x128xf32>
    %299 = vector.extract_strided_slice %281 {offsets = [0, 256], sizes = [8, 128], strides = [1, 1]} : vector<8x384xf32> to vector<8x128xf32>
    %300 = arith.mulf %289, %299 : vector<8x128xf32>
    %301 = arith.addf %298, %300 : vector<8x128xf32>
    %302 = math.tanh %301 : vector<8x128xf32>
    %cst_97 = arith.constant 1.000000e+00 : f32
    %303 = vector.broadcast %cst_97 : f32 to vector<8x128xf32>
    %304 = arith.subf %303, %297 : vector<8x128xf32>
    %305 = arith.mulf %304, %302 : vector<8x128xf32>
    %306 = arith.mulf %297, %275 : vector<8x128xf32>
    %307 = arith.addf %305, %306 : vector<8x128xf32>
    %308 = arith.addf %276, %307 : vector<8x128xf32>
    %309 = arith.maximumf %277, %307 : vector<8x128xf32>
    %c8_98 = arith.constant 8 : index
    %c0_99 = arith.constant 0 : index
    %310 = vector.load %arg10[%c8_98, %c0_99] : memref<64x384xf32, #tpu.memory_space<vmem>>, vector<8x384xf32>
    %cst_100 = arith.constant dense<0.000000e+00> : vector<8x384xf32>
    %311 = tpu.matmul %307, %272, %cst_100 {dimension_numbers = #tpu.dot_dimension_numbers<[1], [0], [0], [1], [0, 0, 1, 1], [], []>} : vector<8x128xf32>, vector<128x384xf32>, vector<8x384xf32> -> vector<8x384xf32>
    %312 = vector.broadcast %274 : vector<1x384xf32> to vector<8x384xf32>
    %313 = arith.addf %311, %312 : vector<8x384xf32>
    %314 = vector.extract_strided_slice %310 {offsets = [0, 0], sizes = [8, 128], strides = [1, 1]} : vector<8x384xf32> to vector<8x128xf32>
    %315 = vector.extract_strided_slice %313 {offsets = [0, 0], sizes = [8, 128], strides = [1, 1]} : vector<8x384xf32> to vector<8x128xf32>
    %316 = arith.addf %314, %315 : vector<8x128xf32>
    %317 = arith.negf %316 : vector<8x128xf32>
    %318 = math.exp %317 : vector<8x128xf32>
    %cst_101 = arith.constant 1.000000e+00 : f32
    %319 = vector.broadcast %cst_101 : f32 to vector<8x128xf32>
    %320 = arith.addf %319, %318 : vector<8x128xf32>
    %321 = arith.divf %319, %320 : vector<8x128xf32>
    %322 = vector.extract_strided_slice %310 {offsets = [0, 128], sizes = [8, 128], strides = [1, 1]} : vector<8x384xf32> to vector<8x128xf32>
    %323 = vector.extract_strided_slice %313 {offsets = [0, 128], sizes = [8, 128], strides = [1, 1]} : vector<8x384xf32> to vector<8x128xf32>
    %324 = arith.addf %322, %323 : vector<8x128xf32>
    %325 = arith.negf %324 : vector<8x128xf32>
    %326 = math.exp %325 : vector<8x128xf32>
    %cst_102 = arith.constant 1.000000e+00 : f32
    %327 = vector.broadcast %cst_102 : f32 to vector<8x128xf32>
    %328 = arith.addf %327, %326 : vector<8x128xf32>
    %329 = arith.divf %327, %328 : vector<8x128xf32>
    %330 = vector.extract_strided_slice %310 {offsets = [0, 256], sizes = [8, 128], strides = [1, 1]} : vector<8x384xf32> to vector<8x128xf32>
    %331 = vector.extract_strided_slice %313 {offsets = [0, 256], sizes = [8, 128], strides = [1, 1]} : vector<8x384xf32> to vector<8x128xf32>
    %332 = arith.mulf %321, %331 : vector<8x128xf32>
    %333 = arith.addf %330, %332 : vector<8x128xf32>
    %334 = math.tanh %333 : vector<8x128xf32>
    %cst_103 = arith.constant 1.000000e+00 : f32
    %335 = vector.broadcast %cst_103 : f32 to vector<8x128xf32>
    %336 = arith.subf %335, %329 : vector<8x128xf32>
    %337 = arith.mulf %336, %334 : vector<8x128xf32>
    %338 = arith.mulf %329, %307 : vector<8x128xf32>
    %339 = arith.addf %337, %338 : vector<8x128xf32>
    %340 = arith.addf %308, %339 : vector<8x128xf32>
    %341 = arith.maximumf %309, %339 : vector<8x128xf32>
    %c16_104 = arith.constant 16 : index
    %c0_105 = arith.constant 0 : index
    %342 = vector.load %arg10[%c16_104, %c0_105] : memref<64x384xf32, #tpu.memory_space<vmem>>, vector<8x384xf32>
    %cst_106 = arith.constant dense<0.000000e+00> : vector<8x384xf32>
    %343 = tpu.matmul %339, %272, %cst_106 {dimension_numbers = #tpu.dot_dimension_numbers<[1], [0], [0], [1], [0, 0, 1, 1], [], []>} : vector<8x128xf32>, vector<128x384xf32>, vector<8x384xf32> -> vector<8x384xf32>
    %344 = vector.broadcast %274 : vector<1x384xf32> to vector<8x384xf32>
    %345 = arith.addf %343, %344 : vector<8x384xf32>
    %346 = vector.extract_strided_slice %342 {offsets = [0, 0], sizes = [8, 128], strides = [1, 1]} : vector<8x384xf32> to vector<8x128xf32>
    %347 = vector.extract_strided_slice %345 {offsets = [0, 0], sizes = [8, 128], strides = [1, 1]} : vector<8x384xf32> to vector<8x128xf32>
    %348 = arith.addf %346, %347 : vector<8x128xf32>
    %349 = arith.negf %348 : vector<8x128xf32>
    %350 = math.exp %349 : vector<8x128xf32>
    %cst_107 = arith.constant 1.000000e+00 : f32
    %351 = vector.broadcast %cst_107 : f32 to vector<8x128xf32>
    %352 = arith.addf %351, %350 : vector<8x128xf32>
    %353 = arith.divf %351, %352 : vector<8x128xf32>
    %354 = vector.extract_strided_slice %342 {offsets = [0, 128], sizes = [8, 128], strides = [1, 1]} : vector<8x384xf32> to vector<8x128xf32>
    %355 = vector.extract_strided_slice %345 {offsets = [0, 128], sizes = [8, 128], strides = [1, 1]} : vector<8x384xf32> to vector<8x128xf32>
    %356 = arith.addf %354, %355 : vector<8x128xf32>
    %357 = arith.negf %356 : vector<8x128xf32>
    %358 = math.exp %357 : vector<8x128xf32>
    %cst_108 = arith.constant 1.000000e+00 : f32
    %359 = vector.broadcast %cst_108 : f32 to vector<8x128xf32>
    %360 = arith.addf %359, %358 : vector<8x128xf32>
    %361 = arith.divf %359, %360 : vector<8x128xf32>
    %362 = vector.extract_strided_slice %342 {offsets = [0, 256], sizes = [8, 128], strides = [1, 1]} : vector<8x384xf32> to vector<8x128xf32>
    %363 = vector.extract_strided_slice %345 {offsets = [0, 256], sizes = [8, 128], strides = [1, 1]} : vector<8x384xf32> to vector<8x128xf32>
    %364 = arith.mulf %353, %363 : vector<8x128xf32>
    %365 = arith.addf %362, %364 : vector<8x128xf32>
    %366 = math.tanh %365 : vector<8x128xf32>
    %cst_109 = arith.constant 1.000000e+00 : f32
    %367 = vector.broadcast %cst_109 : f32 to vector<8x128xf32>
    %368 = arith.subf %367, %361 : vector<8x128xf32>
    %369 = arith.mulf %368, %366 : vector<8x128xf32>
    %370 = arith.mulf %361, %339 : vector<8x128xf32>
    %371 = arith.addf %369, %370 : vector<8x128xf32>
    %372 = arith.addf %340, %371 : vector<8x128xf32>
    %373 = arith.maximumf %341, %371 : vector<8x128xf32>
    %c24_110 = arith.constant 24 : index
    %c0_111 = arith.constant 0 : index
    %374 = vector.load %arg10[%c24_110, %c0_111] : memref<64x384xf32, #tpu.memory_space<vmem>>, vector<8x384xf32>
    %cst_112 = arith.constant dense<0.000000e+00> : vector<8x384xf32>
    %375 = tpu.matmul %371, %272, %cst_112 {dimension_numbers = #tpu.dot_dimension_numbers<[1], [0], [0], [1], [0, 0, 1, 1], [], []>} : vector<8x128xf32>, vector<128x384xf32>, vector<8x384xf32> -> vector<8x384xf32>
    %376 = vector.broadcast %274 : vector<1x384xf32> to vector<8x384xf32>
    %377 = arith.addf %375, %376 : vector<8x384xf32>
    %378 = vector.extract_strided_slice %374 {offsets = [0, 0], sizes = [8, 128], strides = [1, 1]} : vector<8x384xf32> to vector<8x128xf32>
    %379 = vector.extract_strided_slice %377 {offsets = [0, 0], sizes = [8, 128], strides = [1, 1]} : vector<8x384xf32> to vector<8x128xf32>
    %380 = arith.addf %378, %379 : vector<8x128xf32>
    %381 = arith.negf %380 : vector<8x128xf32>
    %382 = math.exp %381 : vector<8x128xf32>
    %cst_113 = arith.constant 1.000000e+00 : f32
    %383 = vector.broadcast %cst_113 : f32 to vector<8x128xf32>
    %384 = arith.addf %383, %382 : vector<8x128xf32>
    %385 = arith.divf %383, %384 : vector<8x128xf32>
    %386 = vector.extract_strided_slice %374 {offsets = [0, 128], sizes = [8, 128], strides = [1, 1]} : vector<8x384xf32> to vector<8x128xf32>
    %387 = vector.extract_strided_slice %377 {offsets = [0, 128], sizes = [8, 128], strides = [1, 1]} : vector<8x384xf32> to vector<8x128xf32>
    %388 = arith.addf %386, %387 : vector<8x128xf32>
    %389 = arith.negf %388 : vector<8x128xf32>
    %390 = math.exp %389 : vector<8x128xf32>
    %cst_114 = arith.constant 1.000000e+00 : f32
    %391 = vector.broadcast %cst_114 : f32 to vector<8x128xf32>
    %392 = arith.addf %391, %390 : vector<8x128xf32>
    %393 = arith.divf %391, %392 : vector<8x128xf32>
    %394 = vector.extract_strided_slice %374 {offsets = [0, 256], sizes = [8, 128], strides = [1, 1]} : vector<8x384xf32> to vector<8x128xf32>
    %395 = vector.extract_strided_slice %377 {offsets = [0, 256], sizes = [8, 128], strides = [1, 1]} : vector<8x384xf32> to vector<8x128xf32>
    %396 = arith.mulf %385, %395 : vector<8x128xf32>
    %397 = arith.addf %394, %396 : vector<8x128xf32>
    %398 = math.tanh %397 : vector<8x128xf32>
    %cst_115 = arith.constant 1.000000e+00 : f32
    %399 = vector.broadcast %cst_115 : f32 to vector<8x128xf32>
    %400 = arith.subf %399, %393 : vector<8x128xf32>
    %401 = arith.mulf %400, %398 : vector<8x128xf32>
    %402 = arith.mulf %393, %371 : vector<8x128xf32>
    %403 = arith.addf %401, %402 : vector<8x128xf32>
    %404 = arith.addf %372, %403 : vector<8x128xf32>
    %405 = arith.maximumf %373, %403 : vector<8x128xf32>
    %c32_116 = arith.constant 32 : index
    %c0_117 = arith.constant 0 : index
    %406 = vector.load %arg10[%c32_116, %c0_117] : memref<64x384xf32, #tpu.memory_space<vmem>>, vector<8x384xf32>
    %cst_118 = arith.constant dense<0.000000e+00> : vector<8x384xf32>
    %407 = tpu.matmul %403, %272, %cst_118 {dimension_numbers = #tpu.dot_dimension_numbers<[1], [0], [0], [1], [0, 0, 1, 1], [], []>} : vector<8x128xf32>, vector<128x384xf32>, vector<8x384xf32> -> vector<8x384xf32>
    %408 = vector.broadcast %274 : vector<1x384xf32> to vector<8x384xf32>
    %409 = arith.addf %407, %408 : vector<8x384xf32>
    %410 = vector.extract_strided_slice %406 {offsets = [0, 0], sizes = [8, 128], strides = [1, 1]} : vector<8x384xf32> to vector<8x128xf32>
    %411 = vector.extract_strided_slice %409 {offsets = [0, 0], sizes = [8, 128], strides = [1, 1]} : vector<8x384xf32> to vector<8x128xf32>
    %412 = arith.addf %410, %411 : vector<8x128xf32>
    %413 = arith.negf %412 : vector<8x128xf32>
    %414 = math.exp %413 : vector<8x128xf32>
    %cst_119 = arith.constant 1.000000e+00 : f32
    %415 = vector.broadcast %cst_119 : f32 to vector<8x128xf32>
    %416 = arith.addf %415, %414 : vector<8x128xf32>
    %417 = arith.divf %415, %416 : vector<8x128xf32>
    %418 = vector.extract_strided_slice %406 {offsets = [0, 128], sizes = [8, 128], strides = [1, 1]} : vector<8x384xf32> to vector<8x128xf32>
    %419 = vector.extract_strided_slice %409 {offsets = [0, 128], sizes = [8, 128], strides = [1, 1]} : vector<8x384xf32> to vector<8x128xf32>
    %420 = arith.addf %418, %419 : vector<8x128xf32>
    %421 = arith.negf %420 : vector<8x128xf32>
    %422 = math.exp %421 : vector<8x128xf32>
    %cst_120 = arith.constant 1.000000e+00 : f32
    %423 = vector.broadcast %cst_120 : f32 to vector<8x128xf32>
    %424 = arith.addf %423, %422 : vector<8x128xf32>
    %425 = arith.divf %423, %424 : vector<8x128xf32>
    %426 = vector.extract_strided_slice %406 {offsets = [0, 256], sizes = [8, 128], strides = [1, 1]} : vector<8x384xf32> to vector<8x128xf32>
    %427 = vector.extract_strided_slice %409 {offsets = [0, 256], sizes = [8, 128], strides = [1, 1]} : vector<8x384xf32> to vector<8x128xf32>
    %428 = arith.mulf %417, %427 : vector<8x128xf32>
    %429 = arith.addf %426, %428 : vector<8x128xf32>
    %430 = math.tanh %429 : vector<8x128xf32>
    %cst_121 = arith.constant 1.000000e+00 : f32
    %431 = vector.broadcast %cst_121 : f32 to vector<8x128xf32>
    %432 = arith.subf %431, %425 : vector<8x128xf32>
    %433 = arith.mulf %432, %430 : vector<8x128xf32>
    %434 = arith.mulf %425, %403 : vector<8x128xf32>
    %435 = arith.addf %433, %434 : vector<8x128xf32>
    %436 = arith.addf %404, %435 : vector<8x128xf32>
    %437 = arith.maximumf %405, %435 : vector<8x128xf32>
    %c40_122 = arith.constant 40 : index
    %c0_123 = arith.constant 0 : index
    %438 = vector.load %arg10[%c40_122, %c0_123] : memref<64x384xf32, #tpu.memory_space<vmem>>, vector<8x384xf32>
    %cst_124 = arith.constant dense<0.000000e+00> : vector<8x384xf32>
    %439 = tpu.matmul %435, %272, %cst_124 {dimension_numbers = #tpu.dot_dimension_numbers<[1], [0], [0], [1], [0, 0, 1, 1], [], []>} : vector<8x128xf32>, vector<128x384xf32>, vector<8x384xf32> -> vector<8x384xf32>
    %440 = vector.broadcast %274 : vector<1x384xf32> to vector<8x384xf32>
    %441 = arith.addf %439, %440 : vector<8x384xf32>
    %442 = vector.extract_strided_slice %438 {offsets = [0, 0], sizes = [8, 128], strides = [1, 1]} : vector<8x384xf32> to vector<8x128xf32>
    %443 = vector.extract_strided_slice %441 {offsets = [0, 0], sizes = [8, 128], strides = [1, 1]} : vector<8x384xf32> to vector<8x128xf32>
    %444 = arith.addf %442, %443 : vector<8x128xf32>
    %445 = arith.negf %444 : vector<8x128xf32>
    %446 = math.exp %445 : vector<8x128xf32>
    %cst_125 = arith.constant 1.000000e+00 : f32
    %447 = vector.broadcast %cst_125 : f32 to vector<8x128xf32>
    %448 = arith.addf %447, %446 : vector<8x128xf32>
    %449 = arith.divf %447, %448 : vector<8x128xf32>
    %450 = vector.extract_strided_slice %438 {offsets = [0, 128], sizes = [8, 128], strides = [1, 1]} : vector<8x384xf32> to vector<8x128xf32>
    %451 = vector.extract_strided_slice %441 {offsets = [0, 128], sizes = [8, 128], strides = [1, 1]} : vector<8x384xf32> to vector<8x128xf32>
    %452 = arith.addf %450, %451 : vector<8x128xf32>
    %453 = arith.negf %452 : vector<8x128xf32>
    %454 = math.exp %453 : vector<8x128xf32>
    %cst_126 = arith.constant 1.000000e+00 : f32
    %455 = vector.broadcast %cst_126 : f32 to vector<8x128xf32>
    %456 = arith.addf %455, %454 : vector<8x128xf32>
    %457 = arith.divf %455, %456 : vector<8x128xf32>
    %458 = vector.extract_strided_slice %438 {offsets = [0, 256], sizes = [8, 128], strides = [1, 1]} : vector<8x384xf32> to vector<8x128xf32>
    %459 = vector.extract_strided_slice %441 {offsets = [0, 256], sizes = [8, 128], strides = [1, 1]} : vector<8x384xf32> to vector<8x128xf32>
    %460 = arith.mulf %449, %459 : vector<8x128xf32>
    %461 = arith.addf %458, %460 : vector<8x128xf32>
    %462 = math.tanh %461 : vector<8x128xf32>
    %cst_127 = arith.constant 1.000000e+00 : f32
    %463 = vector.broadcast %cst_127 : f32 to vector<8x128xf32>
    %464 = arith.subf %463, %457 : vector<8x128xf32>
    %465 = arith.mulf %464, %462 : vector<8x128xf32>
    %466 = arith.mulf %457, %435 : vector<8x128xf32>
    %467 = arith.addf %465, %466 : vector<8x128xf32>
    %468 = arith.addf %436, %467 : vector<8x128xf32>
    %469 = arith.maximumf %437, %467 : vector<8x128xf32>
    %c48_128 = arith.constant 48 : index
    %c0_129 = arith.constant 0 : index
    %470 = vector.load %arg10[%c48_128, %c0_129] : memref<64x384xf32, #tpu.memory_space<vmem>>, vector<8x384xf32>
    %cst_130 = arith.constant dense<0.000000e+00> : vector<8x384xf32>
    %471 = tpu.matmul %467, %272, %cst_130 {dimension_numbers = #tpu.dot_dimension_numbers<[1], [0], [0], [1], [0, 0, 1, 1], [], []>} : vector<8x128xf32>, vector<128x384xf32>, vector<8x384xf32> -> vector<8x384xf32>
    %472 = vector.broadcast %274 : vector<1x384xf32> to vector<8x384xf32>
    %473 = arith.addf %471, %472 : vector<8x384xf32>
    %474 = vector.extract_strided_slice %470 {offsets = [0, 0], sizes = [8, 128], strides = [1, 1]} : vector<8x384xf32> to vector<8x128xf32>
    %475 = vector.extract_strided_slice %473 {offsets = [0, 0], sizes = [8, 128], strides = [1, 1]} : vector<8x384xf32> to vector<8x128xf32>
    %476 = arith.addf %474, %475 : vector<8x128xf32>
    %477 = arith.negf %476 : vector<8x128xf32>
    %478 = math.exp %477 : vector<8x128xf32>
    %cst_131 = arith.constant 1.000000e+00 : f32
    %479 = vector.broadcast %cst_131 : f32 to vector<8x128xf32>
    %480 = arith.addf %479, %478 : vector<8x128xf32>
    %481 = arith.divf %479, %480 : vector<8x128xf32>
    %482 = vector.extract_strided_slice %470 {offsets = [0, 128], sizes = [8, 128], strides = [1, 1]} : vector<8x384xf32> to vector<8x128xf32>
    %483 = vector.extract_strided_slice %473 {offsets = [0, 128], sizes = [8, 128], strides = [1, 1]} : vector<8x384xf32> to vector<8x128xf32>
    %484 = arith.addf %482, %483 : vector<8x128xf32>
    %485 = arith.negf %484 : vector<8x128xf32>
    %486 = math.exp %485 : vector<8x128xf32>
    %cst_132 = arith.constant 1.000000e+00 : f32
    %487 = vector.broadcast %cst_132 : f32 to vector<8x128xf32>
    %488 = arith.addf %487, %486 : vector<8x128xf32>
    %489 = arith.divf %487, %488 : vector<8x128xf32>
    %490 = vector.extract_strided_slice %470 {offsets = [0, 256], sizes = [8, 128], strides = [1, 1]} : vector<8x384xf32> to vector<8x128xf32>
    %491 = vector.extract_strided_slice %473 {offsets = [0, 256], sizes = [8, 128], strides = [1, 1]} : vector<8x384xf32> to vector<8x128xf32>
    %492 = arith.mulf %481, %491 : vector<8x128xf32>
    %493 = arith.addf %490, %492 : vector<8x128xf32>
    %494 = math.tanh %493 : vector<8x128xf32>
    %cst_133 = arith.constant 1.000000e+00 : f32
    %495 = vector.broadcast %cst_133 : f32 to vector<8x128xf32>
    %496 = arith.subf %495, %489 : vector<8x128xf32>
    %497 = arith.mulf %496, %494 : vector<8x128xf32>
    %498 = arith.mulf %489, %467 : vector<8x128xf32>
    %499 = arith.addf %497, %498 : vector<8x128xf32>
    %500 = arith.addf %468, %499 : vector<8x128xf32>
    %501 = arith.maximumf %469, %499 : vector<8x128xf32>
    %c56_134 = arith.constant 56 : index
    %c0_135 = arith.constant 0 : index
    %502 = vector.load %arg10[%c56_134, %c0_135] : memref<64x384xf32, #tpu.memory_space<vmem>>, vector<8x384xf32>
    %cst_136 = arith.constant dense<0.000000e+00> : vector<8x384xf32>
    %503 = tpu.matmul %499, %272, %cst_136 {dimension_numbers = #tpu.dot_dimension_numbers<[1], [0], [0], [1], [0, 0, 1, 1], [], []>} : vector<8x128xf32>, vector<128x384xf32>, vector<8x384xf32> -> vector<8x384xf32>
    %504 = vector.broadcast %274 : vector<1x384xf32> to vector<8x384xf32>
    %505 = arith.addf %503, %504 : vector<8x384xf32>
    %506 = vector.extract_strided_slice %502 {offsets = [0, 0], sizes = [8, 128], strides = [1, 1]} : vector<8x384xf32> to vector<8x128xf32>
    %507 = vector.extract_strided_slice %505 {offsets = [0, 0], sizes = [8, 128], strides = [1, 1]} : vector<8x384xf32> to vector<8x128xf32>
    %508 = arith.addf %506, %507 : vector<8x128xf32>
    %509 = arith.negf %508 : vector<8x128xf32>
    %510 = math.exp %509 : vector<8x128xf32>
    %cst_137 = arith.constant 1.000000e+00 : f32
    %511 = vector.broadcast %cst_137 : f32 to vector<8x128xf32>
    %512 = arith.addf %511, %510 : vector<8x128xf32>
    %513 = arith.divf %511, %512 : vector<8x128xf32>
    %514 = vector.extract_strided_slice %502 {offsets = [0, 128], sizes = [8, 128], strides = [1, 1]} : vector<8x384xf32> to vector<8x128xf32>
    %515 = vector.extract_strided_slice %505 {offsets = [0, 128], sizes = [8, 128], strides = [1, 1]} : vector<8x384xf32> to vector<8x128xf32>
    %516 = arith.addf %514, %515 : vector<8x128xf32>
    %517 = arith.negf %516 : vector<8x128xf32>
    %518 = math.exp %517 : vector<8x128xf32>
    %cst_138 = arith.constant 1.000000e+00 : f32
    %519 = vector.broadcast %cst_138 : f32 to vector<8x128xf32>
    %520 = arith.addf %519, %518 : vector<8x128xf32>
    %521 = arith.divf %519, %520 : vector<8x128xf32>
    %522 = vector.extract_strided_slice %502 {offsets = [0, 256], sizes = [8, 128], strides = [1, 1]} : vector<8x384xf32> to vector<8x128xf32>
    %523 = vector.extract_strided_slice %505 {offsets = [0, 256], sizes = [8, 128], strides = [1, 1]} : vector<8x384xf32> to vector<8x128xf32>
    %524 = arith.mulf %513, %523 : vector<8x128xf32>
    %525 = arith.addf %522, %524 : vector<8x128xf32>
    %526 = math.tanh %525 : vector<8x128xf32>
    %cst_139 = arith.constant 1.000000e+00 : f32
    %527 = vector.broadcast %cst_139 : f32 to vector<8x128xf32>
    %528 = arith.subf %527, %521 : vector<8x128xf32>
    %529 = arith.mulf %528, %526 : vector<8x128xf32>
    %530 = arith.mulf %521, %499 : vector<8x128xf32>
    %531 = arith.addf %529, %530 : vector<8x128xf32>
    %532 = arith.addf %500, %531 : vector<8x128xf32>
    %533 = arith.maximumf %501, %531 : vector<8x128xf32>
    %cst_140 = arith.constant 1.250000e-01 : f32
    %534 = vector.broadcast %cst_140 : f32 to vector<8x128xf32>
    %535 = arith.mulf %532, %534 : vector<8x128xf32>
    %c0_141 = arith.constant 0 : index
    %c0_142 = arith.constant 0 : index
    %c0_143 = arith.constant 0 : index
    %536 = vector.load %arg5[%c0_141, %c0_142, %c0_143] : memref<3x128x128xf32, #tpu.memory_space<vmem>>, vector<1x128x128xf32>
    %537 = vector.shape_cast %536 : vector<1x128x128xf32> to vector<128x128xf32>
    %cst_144 = arith.constant dense<0.000000e+00> : vector<8x128xf32>
    %538 = tpu.matmul %535, %537, %cst_144 {dimension_numbers = #tpu.dot_dimension_numbers<[1], [0], [0], [1], [0, 0, 1, 1], [], []>} : vector<8x128xf32>, vector<128x128xf32>, vector<8x128xf32> -> vector<8x128xf32>
    %c1_145 = arith.constant 1 : index
    %c0_146 = arith.constant 0 : index
    %c0_147 = arith.constant 0 : index
    %539 = vector.load %arg5[%c1_145, %c0_146, %c0_147] : memref<3x128x128xf32, #tpu.memory_space<vmem>>, vector<1x128x128xf32>
    %540 = vector.shape_cast %539 : vector<1x128x128xf32> to vector<128x128xf32>
    %cst_148 = arith.constant dense<0.000000e+00> : vector<8x128xf32>
    %541 = tpu.matmul %533, %540, %cst_148 {dimension_numbers = #tpu.dot_dimension_numbers<[1], [0], [0], [1], [0, 0, 1, 1], [], []>} : vector<8x128xf32>, vector<128x128xf32>, vector<8x128xf32> -> vector<8x128xf32>
    %542 = arith.addf %538, %541 : vector<8x128xf32>
    %c2 = arith.constant 2 : index
    %c0_149 = arith.constant 0 : index
    %c0_150 = arith.constant 0 : index
    %543 = vector.load %arg5[%c2, %c0_149, %c0_150] : memref<3x128x128xf32, #tpu.memory_space<vmem>>, vector<1x128x128xf32>
    %544 = vector.shape_cast %543 : vector<1x128x128xf32> to vector<128x128xf32>
    %cst_151 = arith.constant dense<0.000000e+00> : vector<8x128xf32>
    %545 = tpu.matmul %531, %544, %cst_151 {dimension_numbers = #tpu.dot_dimension_numbers<[1], [0], [0], [1], [0, 0, 1, 1], [], []>} : vector<8x128xf32>, vector<128x128xf32>, vector<8x128xf32> -> vector<8x128xf32>
    %546 = arith.addf %542, %545 : vector<8x128xf32>
    %c0_152 = arith.constant 0 : index
    %c0_153 = arith.constant 0 : index
    %547 = vector.load %arg6[%c0_152, %c0_153] : memref<1x128xf32, #tpu.memory_space<vmem>>, vector<1x128xf32>
    %548 = vector.broadcast %547 : vector<1x128xf32> to vector<8x128xf32>
    %549 = arith.addf %546, %548 : vector<8x128xf32>
    %cst_154 = arith.constant 0.000000e+00 : f32
    %550 = vector.broadcast %cst_154 : f32 to vector<8x128xf32>
    %551 = arith.cmpf oge, %549, %550 : vector<8x128xf32>
    %cst_155 = arith.constant 2.000000e-01 : f32
    %552 = vector.broadcast %cst_155 : f32 to vector<8x128xf32>
    %553 = arith.mulf %552, %549 : vector<8x128xf32>
    %554 = arith.select %551, %549, %553 : vector<8x128xi1>, vector<8x128xf32>
    %c0_156 = arith.constant 0 : index
    %c0_157 = arith.constant 0 : index
    %c0_158 = arith.constant 0 : index
    %555 = vector.load %arg9[%c0_156, %c0_157, %c0_158] : memref<3x8x128xf32, #tpu.memory_space<vmem>>, vector<1x8x128xf32>
    %556 = vector.shape_cast %555 : vector<1x8x128xf32> to vector<8x128xf32>
    %557 = vector.shape_cast %554 : vector<8x128xf32> to vector<1x8x128xf32>
    tpu.vector_store %arg9[%c0_156, %c0_157, %c0_158], %557 {strides = array<i32>} : memref<3x8x128xf32, #tpu.memory_space<vmem>>, vector<1x8x128xf32>,
    %c0_159 = arith.constant 0 : index
    %c0_160 = arith.constant 0 : index
    %c0_161 = arith.constant 0 : index
    %558 = vector.load %arg8[%c0_159, %c0_160, %c0_161] : memref<2x1x128xf32, #tpu.memory_space<vmem>>, vector<1x1x128xf32>
    %559 = vector.shape_cast %558 : vector<1x1x128xf32> to vector<1x128xf32>
    %c0_162 = arith.constant 0 : index
    %c0_163 = arith.constant 0 : index
    %c0_164 = arith.constant 0 : index
    %560 = vector.load %arg7[%c0_162, %c0_163, %c0_164] : memref<4x128x128xf32, #tpu.memory_space<vmem>>, vector<1x128x128xf32>
    %561 = vector.shape_cast %560 : vector<1x128x128xf32> to vector<128x128xf32>
    %cst_165 = arith.constant dense<0.000000e+00> : vector<8x128xf32>
    %562 = tpu.matmul %260, %561, %cst_165 {dimension_numbers = #tpu.dot_dimension_numbers<[1], [0], [0], [1], [0, 0, 1, 1], [], []>} : vector<8x128xf32>, vector<128x128xf32>, vector<8x128xf32> -> vector<8x128xf32>
    %563 = vector.broadcast %559 : vector<1x128xf32> to vector<8x128xf32>
    %564 = arith.addf %563, %562 : vector<8x128xf32>
    %c1_166 = arith.constant 1 : index
    %c0_167 = arith.constant 0 : index
    %c0_168 = arith.constant 0 : index
    %565 = vector.load %arg7[%c1_166, %c0_167, %c0_168] : memref<4x128x128xf32, #tpu.memory_space<vmem>>, vector<1x128x128xf32>
    %566 = vector.shape_cast %565 : vector<1x128x128xf32> to vector<128x128xf32>
    %cst_169 = arith.constant dense<0.000000e+00> : vector<8x128xf32>
    %567 = tpu.matmul %531, %566, %cst_169 {dimension_numbers = #tpu.dot_dimension_numbers<[1], [0], [0], [1], [0, 0, 1, 1], [], []>} : vector<8x128xf32>, vector<128x128xf32>, vector<8x128xf32> -> vector<8x128xf32>
    %568 = arith.addf %564, %567 : vector<8x128xf32>
    %cst_170 = arith.constant 0.000000e+00 : f32
    %569 = vector.broadcast %cst_170 : f32 to vector<8x128xf32>
    %570 = arith.cmpf oge, %568, %569 : vector<8x128xf32>
    %cst_171 = arith.constant 2.000000e-01 : f32
    %571 = vector.broadcast %cst_171 : f32 to vector<8x128xf32>
    %572 = arith.mulf %571, %568 : vector<8x128xf32>
    %573 = arith.select %570, %568, %572 : vector<8x128xi1>, vector<8x128xf32>
    %c1_172 = arith.constant 1 : index
    %c0_173 = arith.constant 0 : index
    %c0_174 = arith.constant 0 : index
    %574 = vector.load %arg9[%c1_172, %c0_173, %c0_174] : memref<3x8x128xf32, #tpu.memory_space<vmem>>, vector<1x8x128xf32>
    %575 = vector.shape_cast %574 : vector<1x8x128xf32> to vector<8x128xf32>
    %576 = vector.shape_cast %573 : vector<8x128xf32> to vector<1x8x128xf32>
    tpu.vector_store %arg9[%c1_172, %c0_173, %c0_174], %576 {strides = array<i32>} : memref<3x8x128xf32, #tpu.memory_space<vmem>>, vector<1x8x128xf32>,
    %c1_175 = arith.constant 1 : index
    %c0_176 = arith.constant 0 : index
    %c0_177 = arith.constant 0 : index
    %577 = vector.load %arg8[%c1_175, %c0_176, %c0_177] : memref<2x1x128xf32, #tpu.memory_space<vmem>>, vector<1x1x128xf32>
    %578 = vector.shape_cast %577 : vector<1x1x128xf32> to vector<1x128xf32>
    %c2_178 = arith.constant 2 : index
    %c0_179 = arith.constant 0 : index
    %c0_180 = arith.constant 0 : index
    %579 = vector.load %arg7[%c2_178, %c0_179, %c0_180] : memref<4x128x128xf32, #tpu.memory_space<vmem>>, vector<1x128x128xf32>
    %580 = vector.shape_cast %579 : vector<1x128x128xf32> to vector<128x128xf32>
    %cst_181 = arith.constant dense<0.000000e+00> : vector<8x128xf32>
    %581 = tpu.matmul %260, %580, %cst_181 {dimension_numbers = #tpu.dot_dimension_numbers<[1], [0], [0], [1], [0, 0, 1, 1], [], []>} : vector<8x128xf32>, vector<128x128xf32>, vector<8x128xf32> -> vector<8x128xf32>
    %582 = vector.broadcast %578 : vector<1x128xf32> to vector<8x128xf32>
    %583 = arith.addf %582, %581 : vector<8x128xf32>
    %c3 = arith.constant 3 : index
    %c0_182 = arith.constant 0 : index
    %c0_183 = arith.constant 0 : index
    %584 = vector.load %arg7[%c3, %c0_182, %c0_183] : memref<4x128x128xf32, #tpu.memory_space<vmem>>, vector<1x128x128xf32>
    %585 = vector.shape_cast %584 : vector<1x128x128xf32> to vector<128x128xf32>
    %cst_184 = arith.constant dense<0.000000e+00> : vector<8x128xf32>
    %586 = tpu.matmul %531, %585, %cst_184 {dimension_numbers = #tpu.dot_dimension_numbers<[1], [0], [0], [1], [0, 0, 1, 1], [], []>} : vector<8x128xf32>, vector<128x128xf32>, vector<8x128xf32> -> vector<8x128xf32>
    %587 = arith.addf %583, %586 : vector<8x128xf32>
    %cst_185 = arith.constant 0.000000e+00 : f32
    %588 = vector.broadcast %cst_185 : f32 to vector<8x128xf32>
    %589 = arith.cmpf oge, %587, %588 : vector<8x128xf32>
    %cst_186 = arith.constant 2.000000e-01 : f32
    %590 = vector.broadcast %cst_186 : f32 to vector<8x128xf32>
    %591 = arith.mulf %590, %587 : vector<8x128xf32>
    %592 = arith.select %589, %587, %591 : vector<8x128xi1>, vector<8x128xf32>
    %c2_187 = arith.constant 2 : index
    %c0_188 = arith.constant 0 : index
    %c0_189 = arith.constant 0 : index
    %593 = vector.load %arg9[%c2_187, %c0_188, %c0_189] : memref<3x8x128xf32, #tpu.memory_space<vmem>>, vector<1x8x128xf32>
    %594 = vector.shape_cast %593 : vector<1x8x128xf32> to vector<8x128xf32>
    %595 = vector.shape_cast %592 : vector<8x128xf32> to vector<1x8x128xf32>
    tpu.vector_store %arg9[%c2_187, %c0_188, %c0_189], %595 {strides = array<i32>} : memref<3x8x128xf32, #tpu.memory_space<vmem>>, vector<1x8x128xf32>,
    return
  }
}

</mosaic_0001>

<bundles_post_ra>
// kernel: tpu_custom_call.1
= control target key start
LH: loop header
LB: loop body
LE: loop exit
PB: predicated region body
PF: predicated region fallthrough
CT: control target
= control target key end

     0   :  { %14 = vsyncpa [#allocation5], 0  ;;  %s8088_s0 = inlined_call_operand.hbm [shape: f32[64,128], index: 0, kind: input, shape index: {}]   ;;  %s8089_s1 = inlined_call_operand.hbm [shape: f32[2,128,384], index: 1, kind: input, shape index: {}]   ;;  %s8090_s2 = inlined_call_operand.hbm [shape: f32[2,128,384], index: 2, kind: input, shape index: {}]   ;;  %s8091_s3 = inlined_call_operand.hbm [shape: f32[2,1,384], index: 3, kind: input, shape index: {}]   ;;  %s8092_s4 = inlined_call_operand.vmem [shape: f32[2,1,384], index: 4, kind: input, shape index: {}]   ;;  %s8093_s5 = inlined_call_operand.hbm [shape: f32[3,128,128], index: 5, kind: input, shape index: {}]   ;;  %s8094_s6 = inlined_call_operand.vmem [shape: f32[1,128], index: 6, kind: input, shape index: {}]   ;;  %s8095_s7 = inlined_call_operand.hbm [shape: f32[4,128,128], index: 7, kind: input, shape index: {}]   ;;  %s8096_s8 = inlined_call_operand.vmem [shape: f32[2,1,128], index: 8, kind: input, shape index: {}]   ;;  %s8097_s9 = inlined_call_operand.hbm [shape: f32[3,8,128], index: 9, kind: output, shape index: {}]  }
   0x1   :  { %15 = vsyncpa [#allocation8], 0 }
   0x2   :  { %16 = vsyncpa [#allocation11], 0 }
   0x3   :  { %17 = vsyncpa [#allocation14], 0 }
   0x4   :  { %18 = vsyncpa [#allocation6], 0  ;;  %s6002_s30 = smov [#allocation7]  }
   0x5   :  { %s36_s10 = sshll.u32 %s6002_s30, 4  ;;  %s37_s10 = int_to_ptr.vmem [resolvable:$true] %s36_s10 }
   0x6   :  { %s5860_s11 = scalar_lea.vmem %s37_s10, 12288  ;;  %p5865_p1 = scmp.lt.s32.totalorder %s37_s10, %s37_s10 }
   0x7   :  { %p5861_p0 = scmp.ne.s32.totalorder %s37_s10, %s5860_s11  ;;  %p5866_p2 = scmp.lt.s32.totalorder %s5860_s11, %s5860_s11 }
   0x9   :  { %p5867_p3 = por %p5866_p2, %p5865_p1 }
   0xb   :  { %p5868_p4 = pnand %p5867_p3, %p5861_p0 }
   0xd   :  { %5871 = shalt.err (!%p5868_p4)
}
   0xe   :  { %s6003_s12 = smov 384   ;;  %s6004_s13 = smov 24  }
   0xf   :  { %42 = dma.hbm_to_vmem [thread:$0]  %s8089_s1, 12288, %s37_s10, [#allocation8], %s6003_s12, %s6003_s12, %s6004_s13  }
  0x10   :  { %s6005_s16 = smov [#allocation10]  }
  0x11   :  { %s60_s17 = sshll.u32 %s6005_s16, 4  ;;  %s61_s17 = int_to_ptr.vmem [resolvable:$true] %s60_s17 }
  0x12   :  { %s5880_s18 = scalar_lea.vmem %s61_s17, 96  ;;  %p5885_p6 = scmp.lt.s32.totalorder %s61_s17, %s61_s17 }
  0x13   :  { %p5881_p5 = scmp.ne.s32.totalorder %s61_s17, %s5880_s18  ;;  %p5886_p7 = scmp.lt.s32.totalorder %s5880_s18, %s5880_s18 }
  0x15   :  { %p5887_p8 = por %p5886_p7, %p5885_p6 }
  0x17   :  { %p5888_p9 = pnand %p5887_p8, %p5881_p5 }
  0x19   :  { %5891 = shalt.err (!%p5888_p9)
}
  0x1a   :  { %s6006_s19 = smov 48   ;;  %s6007_s20 = smov 3  }
  0x1b   :  { %66 = dma.hbm_to_vmem [thread:$0]  %s8091_s3, 96, %s61_s17, [#allocation11], %s6006_s19, %s6006_s19, %s6007_s20  }
  0x1c   :  { %s6008_s23 = smov [#allocation4]  }
  0x1d   :  { %s24_s24 = sshll.u32 %s6008_s23, 4  ;;  %s25_s24 = int_to_ptr.vmem [resolvable:$true] %s24_s24 }
  0x1e   :  { %s5900_s1 = scalar_lea.vmem %s25_s24, 1024  ;;  %p5905_p11 = scmp.lt.s32.totalorder %s25_s24, %s25_s24 }
  0x1f   :  { %p5901_p10 = scmp.ne.s32.totalorder %s25_s24, %s5900_s1  ;;  %p5906_p12 = scmp.lt.s32.totalorder %s5900_s1, %s5900_s1 }
  0x21   :  { %p5907_p13 = por %p5906_p12, %p5905_p11 }
  0x23   :  { %p5908_p0 = pnand %p5907_p13, %p5901_p10 }
  0x25   :  { %5911 = shalt.err (!%p5908_p0)
}
  0x26   :  { %s6009_s25 = smov 128   ;;  %s6010_s26 = smov 8  }
  0x27   :  { %30 = dma.hbm_to_vmem [thread:$0]  %s8088_s0, 1024, %s25_s24, [#allocation5], %s6009_s25, %s6009_s25, %s6010_s26  }
  0x28   :  { %s6011_s3 = smov [#allocation9]   ;;  %s6012_s30 = smov [#allocation12]  }
  0x29   :  { %s48_s29 = sshll.u32 %s6011_s3, 4  ;;  %s74_s10 = sshll.u32 %s6012_s30, 4  ;;  %s49_s29 = int_to_ptr.vmem [resolvable:$true] %s48_s29  ;;  %s75_s10 = int_to_ptr.vmem [resolvable:$true] %s74_s10 }
  0x2a   :  { %s5920_s11 = scalar_lea.vmem %s49_s29, 12288  ;;  %p5925_p2 = scmp.lt.s32.totalorder %s49_s29, %s49_s29 }
  0x2b   :  { %p5921_p1 = scmp.ne.s32.totalorder %s49_s29, %s5920_s11  ;;  %p5926_p3 = scmp.lt.s32.totalorder %s5920_s11, %s5920_s11 }
  0x2d   :  { %p5927_p4 = por %p5926_p3, %p5925_p2 }
  0x2f   :  { %p5928_p5 = pnand %p5927_p4, %p5921_p1 }
  0x31   :  { %5931 = shalt.err (!%p5928_p5)
}
  0x32   :  { %54 = dma.hbm_to_vmem [thread:$0]  %s8090_s2, 12288, %s49_s29, [#allocation8], %s6003_s12, %s6003_s12, %s6004_s13  }
  0x33   :  { %s5940_s0 = scalar_lea.vmem %s75_s10, 6144  ;;  %p5945_p7 = scmp.lt.s32.totalorder %s75_s10, %s75_s10 }
  0x34   :  { %p5941_p6 = scmp.ne.s32.totalorder %s75_s10, %s5940_s0  ;;  %p5946_p8 = scmp.lt.s32.totalorder %s5940_s0, %s5940_s0 }
  0x36   :  { %p5947_p9 = por %p5946_p8, %p5945_p7 }
  0x38   :  { %p5948_p10 = pnand %p5947_p9, %p5941_p6 }
  0x3a   :  { %5951 = shalt.err (!%p5948_p10)
}
  0x3b   :  { %80 = dma.hbm_to_vmem [thread:$0]  %s8093_s5, 6144, %s75_s10, [#allocation11], %s6009_s25, %s6009_s25, %s6010_s26  }
  0x3c   :  { %s6013_s18 = smov [#allocation13]  }
  0x3d   :  { %s88_s19 = sshll.u32 %s6013_s18, 4  ;;  %s89_s19 = int_to_ptr.vmem [resolvable:$true] %s88_s19 }
  0x3e   :  { %s5960_s20 = scalar_lea.vmem %s89_s19, 8192  ;;  %p5965_p12 = scmp.lt.s32.totalorder %s89_s19, %s89_s19 }
  0x3f   :  { %p5961_p11 = scmp.ne.s32.totalorder %s89_s19, %s5960_s20  ;;  %p5966_p13 = scmp.lt.s32.totalorder %s5960_s20, %s5960_s20 }
  0x41   :  { %p5967_p0 = por %p5966_p13, %p5965_p12 }
  0x43   :  { %p5968_p1 = pnand %p5967_p0, %p5961_p11 }
  0x45   :  { %5971 = shalt.err (!%p5968_p1)
}
  0x46   :  { %94 = dma.hbm_to_vmem [thread:$0]  %s8095_s7, 8192, %s89_s19, [#allocation14], %s6009_s25, %s6009_s25, %s6010_s26  }
  0x47   :  { %5992 = dma.done.wait [#allocation5], 1024  }
  0x48   :  { %5993 = vsyncadd [#allocation5], 4294966272 }
  0x49   :  { %5994 = dma.done.wait [#allocation8], 24576  }
  0x4a   :  { %5995 = vsyncadd [#allocation8], 4294942720 }
  0x4b   :  { %5996 = dma.done.wait [#allocation11], 6240  }
  0x4c   :  { %5997 = vsyncadd [#allocation11], 4294961056 }
  0x4d   :  { %5998 = dma.done.wait [#allocation14], 8192  }
  0x4e   :  { %5999 = vsyncadd [#allocation14], 4294959104  ;;  %v8098_v0 = vmov 0.0   ;;  %v169_v1 = vld [vmem:[#allocation7 + $0x170] sm:$0xff]  ;;  %v168_v2 = vld [vmem:[#allocation7 + $0x168] sm:$0xff]  ;;  %vm6015_vm0 = vmmov 0  }
  0x4f   :  { %252 = vmatprep.mubr.f32.mxu0 %v8098_v0  ;;  %v166_v3 = vld [vmem:[#allocation7 + $0x158] sm:$0xff]  ;;  %188 = vmatprep.subr.mxu0 %v169_v1  ;;  %v165_v4 = vld [vmem:[#allocation7 + $0x150] sm:$0xff]  ;;  %v163_v5 = vld [vmem:[#allocation7 + $0x140] sm:$0xff]  ;;  %s6016_s27 = smov [#allocation15]  }
  0x50   :  { %189 = vmatpush1.msra.mxu0 %v168_v2  ;;  %v162_v6 = vld [vmem:[#allocation7 + $0x138] sm:$0xff]  ;;  %v160_v7 = vld [vmem:[#allocation7 + $0x128] sm:$0xff]  ;;  %v159_v8 = vld [vmem:[#allocation7 + $0x120] sm:$0xff]  ;;  %s4197_s28 = sshll.u32 %s6016_s27, 4  ;;  %s4198_s28 = int_to_ptr.vmem [resolvable:$true] %s4197_s28 }
  0x51   :  { %190 = vmatprep.subr.mxu0 %v166_v3  ;;  %v157_v9 = vld [vmem:[#allocation7 + $0x110] sm:$0xff]  ;;  %v156_v10 = vld [vmem:[#allocation7 + $0x108] sm:$0xff]  ;;  %v154_v11 = vld [vmem:[#allocation7 + $0xf8] sm:$0xff]  ;;  %s5972_s3 = scalar_lea.vmem %s4198_s28, 384  ;;  %p5977_p3 = scmp.lt.s32.totalorder %s4198_s28, %s4198_s28 }
  0x52   :  { %191 = vmatpush1.msra.mxu0 %v165_v4  ;;  %v153_v12 = vld [vmem:[#allocation7 + $0xf0] sm:$0xff]  ;;  %v151_v13 = vld [vmem:[#allocation7 + $0xe0] sm:$0xff]  ;;  %v150_v15 = vld [vmem:[#allocation7 + $0xd8] sm:$0xff]  ;;  %p5973_p2 = scmp.ne.s32.totalorder %s4198_s28, %s5972_s3  ;;  %p5978_p4 = scmp.lt.s32.totalorder %s5972_s3, %s5972_s3 }
  0x53   :  { %192 = vmatprep.subr.mxu0 %v163_v5  ;;  %v6101_v14 = vld [vmem:[#allocation4] sm:$0xff]  ;;  %v170_v16 = vld [vmem:[#allocation7 + $0x178] sm:$0xff]  ;;  %v148_v17 = vld [vmem:[#allocation7 + $0xc8] sm:$0xff] }
  0x54   :  { %193 = vmatpush1.msra.mxu0 %v162_v6  ;;  %4720 = vmatprep.mubr.f32.mxu1 %v6101_v14  ;;  %v167_v18 = vld [vmem:[#allocation7 + $0x160] sm:$0xff]  ;;  %v164_v20 = vld [vmem:[#allocation7 + $0x148] sm:$0xff]  ;;  %v145_v21 = vld [vmem:[#allocation7 + $0xb0] sm:$0xff]  ;;  %p5979_p5 = por %p5978_p4, %p5977_p3 }
  0x55   :  { %194 = vmatprep.subr.mxu0 %v160_v7  ;;  %4688 = vmatprep.subr.mxu1 %v170_v16  ;;  %v147_v19 = vld [vmem:[#allocation7 + $0xc0] sm:$0xff]  ;;  %v144_v22 = vld [vmem:[#allocation7 + $0xa8] sm:$0xff]  ;;  %v161_v23 = vld [vmem:[#allocation7 + $0x130] sm:$0xff] }
  0x56   :  { %195 = vmatpush1.msra.mxu0 %v159_v8  ;;  %4689 = vmatpush3.msra.mxu1 %v170_v16  ;;  %v142_v24 = vld [vmem:[#allocation7 + $0x98] sm:$0xff]  ;;  %v141_v25 = vld [vmem:[#allocation7 + $0x90] sm:$0xff]  ;;  %v139_v27 = vld [vmem:[#allocation7 + $0x80] sm:$0xff]  ;;  %p5980_p6 = pnand %p5979_p5, %p5973_p2 }
  0x57   :  { %196 = vmatprep.subr.mxu0 %v157_v9  ;;  %4690 = vmatprep.subr.mxu1 %v167_v18  ;;  %v158_v26 = vld [vmem:[#allocation7 + $0x118] sm:$0xff]  ;;  %v155_v29 = vld [vmem:[#allocation7 + $0x100] sm:$0xff]  ;;  %v136_v30 = vld [vmem:[#allocation7 + $0x68] sm:$0xff] }
  0x58   :  { %197 = vmatpush1.msra.mxu0 %v156_v10  ;;  %4691 = vmatpush3.msra.mxu1 %v167_v18  ;;  %v138_v28 = vld [vmem:[#allocation7 + $0x78] sm:$0xff]  ;;  %v135_v31 = vld [vmem:[#allocation7 + $0x60] sm:$0xff]  ;;  %v152_v32 = vld [vmem:[#allocation7 + $0xe8] sm:$0xff] }
  0x59   :  { %198 = vmatprep.subr.mxu0 %v154_v11  ;;  %4692 = vmatprep.subr.mxu1 %v164_v20  ;;  %v133_v33 = vld [vmem:[#allocation7 + $0x50] sm:$0xff]  ;;  %v132_v34 = vld [vmem:[#allocation7 + $0x48] sm:$0xff]  ;;  %v130_v36 = vld [vmem:[#allocation7 + $0x38] sm:$0xff] }
  0x5a   :  { %199 = vmatpush1.msra.mxu0 %v153_v12  ;;  %4693 = vmatpush3.msra.mxu1 %v164_v20  ;;  %v149_v35 = vld [vmem:[#allocation7 + $0xd0] sm:$0xff]  ;;  %v146_v38 = vld [vmem:[#allocation7 + $0xb8] sm:$0xff]  ;;  %v127_v39 = vld [vmem:[#allocation7 + $0x20] sm:$0xff] }
  0x5b   :  { %200 = vmatprep.subr.mxu0 %v151_v13  ;;  %4694 = vmatprep.subr.mxu1 %v161_v23  ;;  %v129_v37 = vld [vmem:[#allocation7 + $0x30] sm:$0xff]  ;;  %v126_v40 = vld [vmem:[#allocation7 + $0x18] sm:$0xff]  ;;  %v143_v41 = vld [vmem:[#allocation7 + $0xa0] sm:$0xff] }
  0x5c   :  { %201 = vmatpush1.msra.mxu0 %v150_v15  ;;  %4695 = vmatpush3.msra.mxu1 %v161_v23  ;;  %v124_v42 = vld [vmem:[#allocation7 + $0x8] sm:$0xff]  ;;  %v123_v43 = vld [vmem:[#allocation7] sm:$0xff]  ;;  %v6104_v45 = vld [vmem:[#allocation9 + $0x170] sm:$0xff] }
  0x5d   :  { %202 = vmatprep.subr.mxu0 %v148_v17  ;;  %4696 = vmatprep.subr.mxu1 %v158_v26  ;;  %v140_v44 = vld [vmem:[#allocation7 + $0x88] sm:$0xff]  ;;  %8190 = vst [vmem:[#allocation21_spill] sm:$0xff] %v6104_v45  ;;  %v6108_v47 = vld [vmem:[#allocation9 + $0x158] sm:$0xff]  ;;  %v6112_v48 = vld [vmem:[#allocation9 + $0x150] sm:$0xff] }
  0x5e   :  { %203 = vmatpush1.msra.mxu0 %v147_v19  ;;  %4697 = vmatpush3.msra.mxu1 %v158_v26  ;;  %v6106_v46 = vld [vmem:[#allocation9 + $0x168] sm:$0xff]  ;;  %v137_v49 = vld [vmem:[#allocation7 + $0x70] sm:$0xff]  ;;  %v6118_v51 = vld [vmem:[#allocation9 + $0x140] sm:$0xff] }
  0x5f   :  { %204 = vmatprep.subr.mxu0 %v145_v21  ;;  %4698 = vmatprep.subr.mxu1 %v155_v29  ;;  %v6116_v50 = vld [vmem:[#allocation4 + $0x8] sm:$0xff]  ;;  %v6121_v52 = vld [vmem:[#allocation9 + $0x138] sm:$0xff]  ;;  %v6128_v54 = vld [vmem:[#allocation9 + $0x120] sm:$0xff] }
  0x60   :  { %205 = vmatpush1.msra.mxu0 %v144_v22  ;;  %4699 = vmatpush3.msra.mxu1 %v155_v29  ;;  %v6124_v53 = vld [vmem:[#allocation9 + $0x128] sm:$0xff]  ;;  %v134_v55 = vld [vmem:[#allocation7 + $0x58] sm:$0xff]  ;;  %v6132_v56 = vld [vmem:[#allocation4 + $0x10] sm:$0xff] }
  0x61   :  { %206 = vmatprep.subr.mxu0 %v142_v24  ;;  %4700 = vmatprep.subr.mxu1 %v152_v32  ;;  %v6134_v57 = vld [vmem:[#allocation9 + $0x110] sm:$0xff]  ;;  %v6137_v58 = vld [vmem:[#allocation9 + $0x108] sm:$0xff]  ;;  %v6140_v59 = vld [vmem:[#allocation9 + $0xf8] sm:$0xff] }
  0x62   :  { %207 = vmatpush1.msra.mxu0 %v141_v25  ;;  %4701 = vmatpush3.msra.mxu1 %v152_v32  ;;  %v6144_v60 = vld [vmem:[#allocation9 + $0xf0] sm:$0xff]  ;;  %v131_v61 = vld [vmem:[#allocation7 + $0x40] sm:$0xff]  ;;  %v6148_v62 = vld [vmem:[#allocation4 + $0x18] sm:$0xff] }
  0x63   :  { %208 = vmatprep.subr.mxu0 %v139_v27  ;;  %4702 = vmatprep.subr.mxu1 %v149_v35  ;;  %v6150_v63 = vld [vmem:[#allocation9 + $0xe0] sm:$0xff]  ;;  %v6153_v1 = vld [vmem:[#allocation9 + $0xd8] sm:$0xff]  ;;  %v6156_v2 = vld [vmem:[#allocation9 + $0xc8] sm:$0xff] }
  0x64   :  { %209 = vmatpush1.msra.mxu0 %v138_v28  ;;  %4703 = vmatpush3.msra.mxu1 %v149_v35  ;;  %v6160_v3 = vld [vmem:[#allocation9 + $0xc0] sm:$0xff]  ;;  %v128_v4 = vld [vmem:[#allocation7 + $0x28] sm:$0xff]  ;;  %v6166_v6 = vld [vmem:[#allocation9 + $0xb0] sm:$0xff] }
  0x65   :  { %210 = vmatprep.subr.mxu0 %v136_v30  ;;  %4704 = vmatprep.subr.mxu1 %v146_v38  ;;  %v6164_v5 = vld [vmem:[#allocation4 + $0x20] sm:$0xff]  ;;  %v6169_v7 = vld [vmem:[#allocation9 + $0xa8] sm:$0xff]  ;;  %v6172_v8 = vld [vmem:[#allocation9 + $0x98] sm:$0xff] }
  0x66   :  { %211 = vmatpush1.msra.mxu0 %v135_v31  ;;  %4705 = vmatpush3.msra.mxu1 %v146_v38  ;;  %v6176_v9 = vld [vmem:[#allocation9 + $0x90] sm:$0xff]  ;;  %v120_v11 = vld [vmem:[#allocation4 + $0x28] sm:$0xff]  ;;  %v6180_v12 = vld [vmem:[#allocation9 + $0x80] sm:$0xff] }
  0x67   :  { %212 = vmatprep.subr.mxu0 %v133_v33  ;;  %4706 = vmatprep.subr.mxu1 %v143_v41  ;;  %v125_v10 = vld [vmem:[#allocation7 + $0x10] sm:$0xff]  ;;  %v6183_v13 = vld [vmem:[#allocation9 + $0x78] sm:$0xff]  ;;  %v6189_v15 = vld [vmem:[#allocation9 + $0x60] sm:$0xff] }
  0x68   :  { %213 = vmatpush1.msra.mxu0 %v132_v34  ;;  %4707 = vmatpush3.msra.mxu1 %v143_v41  ;;  %v121_v16 = vld [vmem:[#allocation4 + $0x30] sm:$0xff]  ;;  %v6196_v18 = vld [vmem:[#allocation9 + $0x48] sm:$0xff]  ;;  %v6199_v19 = vld [vmem:[#allocation9 + $0x38] sm:$0xff] }
  0x69   :  { %214 = vmatprep.subr.mxu0 %v130_v36  ;;  %4708 = vmatprep.subr.mxu1 %v140_v44  ;;  %v6193_v17 = vld [vmem:[#allocation9 + $0x50] sm:$0xff]  ;;  %v6205_v21 = vld [vmem:[#allocation9 + $0x178] sm:$0xff]  ;;  %v6209_v23 = vld [vmem:[#allocation9 + $0x20] sm:$0xff] }
  0x6a   :  { %215 = vmatpush1.msra.mxu0 %v129_v37  ;;  %4709 = vmatpush3.msra.mxu1 %v140_v44  ;;  %v6203_v20 = vld [vmem:[#allocation9 + $0x30] sm:$0xff]  ;;  %v122_v22 = vld [vmem:[#allocation4 + $0x38] sm:$0xff]  ;;  %8192 = vst [vmem:[#allocation23_spill] sm:$0xff] %v6209_v23  ;;  %v6216_v25 = vld [vmem:[#allocation9 + $0x8] sm:$0xff] }
  0x6b   :  { %216 = vmatprep.subr.mxu0 %v127_v39  ;;  %4710 = vmatprep.subr.mxu1 %v137_v49  ;;  %8191 = vst [vmem:[#allocation22_spill] sm:$0xff] %v6203_v20  ;;  %v6212_v24 = vld [vmem:[#allocation9 + $0x18] sm:$0xff]  ;;  %8194 = vst [vmem:[#allocation25_spill] sm:$0xff] %v6216_v25  ;;  %v6220_v26 = vld [vmem:[#allocation9] sm:$0xff] }
  0x6c   :  { %217 = vmatpush1.msra.mxu0 %v126_v40  ;;  %4711 = vmatpush3.msra.mxu1 %v137_v49  ;;  %8193 = vst [vmem:[#allocation24_spill] sm:$0xff] %v6212_v24  ;;  %8195 = vst [vmem:[#allocation26_spill] sm:$0xff] %v6220_v26  ;;  %v6222_v27 = vld [vmem:[#allocation9 + $0x160] sm:$0xff]  ;;  %v6228_v28 = vld [vmem:[#allocation9 + $0x148] sm:$0xff] }
  0x6d   :  { %218 = vmatprep.subr.mxu0 %v124_v42  ;;  %4712 = vmatprep.subr.mxu1 %v134_v55  ;;  %v6234_v29 = vld [vmem:[#allocation9 + $0x130] sm:$0xff]  ;;  %v6239_v30 = vld [vmem:[#allocation9 + $0x118] sm:$0xff]  ;;  %v6245_v31 = vld [vmem:[#allocation9 + $0x100] sm:$0xff]  ;;  %v173_v42 = vlaneseq }
  0x6e   :  { %219 = vmatpush1.msra.mxu0 %v123_v43  ;;  %4713 = vmatpush3.msra.mxu1 %v134_v55  ;;  %v6251_v32 = vld [vmem:[#allocation9 + $0xe8] sm:$0xff]  ;;  %v6255_v33 = vld [vmem:[#allocation9 + $0xd0] sm:$0xff]  ;;  %v6261_v34 = vld [vmem:[#allocation9 + $0xb8] sm:$0xff] }
  0x6f   :  { %253 = vmatmul.mubr.f32.vlgmr.msra.gmra.mxu0 %v6101_v14  ;;  %498 = vmatprep.subr.mxu0 %v6104_v45  ;;  %v6186_v14 = vld [vmem:[#allocation9 + $0x68] sm:$0xff]  ;;  %v6267_v35 = vld [vmem:[#allocation9 + $0xa0] sm:$0xff]  ;;  %v6279_v37 = vld [vmem:[#allocation9 + $0x70] sm:$0xff]  ;;  %v174_v43 = vshrl.u32 %v173_v42, 7 }
  0x70   :  { %499 = vmatpush1.msra.mxu0 %v6106_v46  ;;  %258 = vmatprep.mubr.f32.mxu0 %v8098_v0  ;;  %v6273_v36 = vld [vmem:[#allocation9 + $0x88] sm:$0xff]  ;;  %v6285_v38 = vld [vmem:[#allocation9 + $0x58] sm:$0xff]  ;;  %v6291_v39 = vld [vmem:[#allocation9 + $0x40] sm:$0xff] }
  0x71   :  { %500 = vmatprep.subr.mxu0 %v6108_v47  ;;  %4714 = vmatprep.subr.mxu1 %v131_v61  ;;  %8196 = vst [vmem:[#allocation27_spill] sm:$0xff] %v6291_v39  ;;  %v6297_v40 = vld [vmem:[#allocation9 + $0x28] sm:$0xff]  ;;  %v6303_v41 = vld [vmem:[#allocation9 + $0x10] sm:$0xff]  ;;  %v6362_v44 = vsub.s32 0, %v174_v43  ;;  %v171_v49 = vld [vmem:[#allocation10] sm:$0x7] }
  0x72   :  { %501 = vmatpush1.msra.mxu0 %v6112_v48  ;;  %4715 = vmatpush3.msra.mxu1 %v131_v61  ;;  %8197 = vst [vmem:[#allocation28_spill] sm:$0xff] %v6297_v40  ;;  %8198 = vst [vmem:[#allocation29_spill] sm:$0xff] %v6303_v41  ;;  %v6364_v55 = vsub.s32 1, %v174_v43 }
  0x73   :  { %259 = vmatmul.mubr.f32.gmra.mxu0 %v6116_v50  ;;  %502 = vmatprep.subr.mxu0 %v6118_v51  ;;  %8199 = vst [vmem:[#allocation30_spill] sm:$0xff] %v6362_v44  ;;  %v176_v61 = vrot.slane %v171_v49, %v6362_v44 }
  0x74   :  { %503 = vmatpush1.msra.mxu0 %v6121_v52  ;;  %264 = vmatprep.mubr.f32.mxu0 %v8098_v0  ;;  %8200 = vst [vmem:[#allocation31_spill] sm:$0xff] %v6364_v55 }
  0x75   :  { %504 = vmatprep.subr.mxu0 %v6124_v53  ;;  %4716 = vmatprep.subr.mxu1 %v128_v4 }
  0x76   :  { %505 = vmatpush1.msra.mxu0 %v6128_v54  ;;  %4717 = vmatpush3.msra.mxu1 %v128_v4  ;;  %v180_v4 = vrot.slane %v171_v49, %v6364_v55 }
  0x77   :  { %265 = vmatmul.mubr.f32.gmra.mxu0 %v6132_v56  ;;  %506 = vmatprep.subr.mxu0 %v6134_v57 }
  0x78   :  { %507 = vmatpush1.msra.mxu0 %v6137_v58  ;;  %270 = vmatprep.mubr.f32.mxu0 %v8098_v0 }
  0x79   :  { %508 = vmatprep.subr.mxu0 %v6140_v59  ;;  %4718 = vmatprep.subr.mxu1 %v125_v10 }
  0x7a   :  { %509 = vmatpush1.msra.mxu0 %v6144_v60  ;;  %4719 = vmatpush3.msra.mxu1 %v125_v10 }
  0x7b   :  { %271 = vmatmul.mubr.f32.gmra.mxu0 %v6148_v62  ;;  %510 = vmatprep.subr.mxu0 %v6150_v63 }
  0x7c   :  { %511 = vmatpush1.msra.mxu0 %v6153_v1  ;;  %276 = vmatprep.mubr.f32.mxu0 %v8098_v0 }
  0x7d   :  { %512 = vmatprep.subr.mxu0 %v6156_v2  ;;  %4732 = vmatprep.subr.mxu1 %v8098_v0 }
  0x7e   :  { %513 = vmatpush1.msra.mxu0 %v6160_v3  ;;  %4721 = vmatmul.mubr.f32.vlgmr.msra.gmra.mxu1 %v6116_v50 }
  0x7f   :  { %277 = vmatmul.mubr.f32.gmra.mxu0 %v6164_v5  ;;  %514 = vmatprep.subr.mxu0 %v6166_v6 }
  0x80   :  { %515 = vmatpush1.msra.mxu0 %v6169_v7  ;;  %282 = vmatprep.mubr.f32.mxu0 %v8098_v0 }
  0x81   :  { %516 = vmatprep.subr.mxu0 %v6172_v8  ;;  %4733 = vmatpush3.msra.mxu1 %v6205_v21 }
  0x82   :  { %517 = vmatpush1.msra.mxu0 %v6176_v9  ;;  %4734 = vmatprep.subr.mxu1 %v8098_v0 }
  0x83   :  { %283 = vmatmul.mubr.f32.gmra.mxu0 %v120_v11  ;;  %518 = vmatprep.subr.mxu0 %v6180_v12 }
  0x84   :  { %519 = vmatpush1.msra.mxu0 %v6183_v13  ;;  %288 = vmatprep.mubr.f32.mxu0 %v8098_v0 }
  0x85   :  { %520 = vmatprep.subr.mxu0 %v6186_v14  ;;  %4735 = vmatpush3.msra.mxu1 %v6222_v27 }
  0x86   :  { %521 = vmatpush1.msra.mxu0 %v6189_v15  ;;  %4736 = vmatprep.subr.mxu1 %v8098_v0 }
  0x87   :  { %289 = vmatmul.mubr.f32.gmra.mxu0 %v121_v16  ;;  %522 = vmatprep.subr.mxu0 %v6193_v17 }
  0x88   :  { %523 = vmatpush1.msra.mxu0 %v6196_v18  ;;  %294 = vmatprep.mubr.f32.mxu0 %v8098_v0 }
  0x89   :  { %524 = vmatprep.subr.mxu0 %v6199_v19  ;;  %4737 = vmatpush3.msra.mxu1 %v6228_v28 }
  0x8a   :  { %525 = vmatpush1.msra.mxu0 %v6203_v20  ;;  %4723 = vmatprep.mubr.f32.mxu1 %v6132_v56 }
  0x8b   :  { %295 = vmatmul.mubr.f32.gmra.mxu0 %v122_v22  ;;  %526 = vmatprep.subr.mxu0 %v6209_v23 }
  0x8c   :  { %527 = vmatpush1.msra.mxu0 %v6212_v24  ;;  %562 = vmatprep.mubr.f32.mxu0 %v8098_v0 }
  0x8d   :  { %528 = vmatprep.subr.mxu0 %v6216_v25  ;;  %4738 = vmatprep.subr.mxu1 %v8098_v0 }
  0x8e   :  { %529 = vmatpush1.msra.mxu0 %v6220_v26  ;;  %4724 = vmatmul.mubr.f32.gmra.mxu1 %v6148_v62 }
  0x8f   :  { %563 = vmatmul.mubr.f32.vlgmr.msra.gmra.mxu0 %v8098_v0  ;;  %4739 = vmatpush3.msra.mxu1 %v6234_v29 }
  0x90   :  { %4726 = vmatprep.mubr.f32.mxu1 %v6164_v5  ;;  %4740 = vmatprep.subr.mxu1 %v8098_v0 }
  0x91   :  { %664 = vmatprep.subr.mxu0 %v6104_v45  ;;  %4741 = vmatpush3.msra.mxu1 %v6239_v30 }
  0x92   :  { %665 = vmatpush1.msra.mxu0 %v6106_v46  ;;  %4742 = vmatprep.subr.mxu1 %v8098_v0 }
  0x93   :  { %4727 = vmatmul.mubr.f32.gmra.mxu1 %v120_v11  ;;  %666 = vmatprep.subr.mxu0 %v6108_v47 }
  0x94   :  { %4743 = vmatpush3.msra.mxu1 %v6245_v31  ;;  %4729 = vmatprep.mubr.f32.mxu1 %v121_v16 }
  0x95   :  { %4744 = vmatprep.subr.mxu1 %v8098_v0  ;;  %667 = vmatpush1.msra.mxu0 %v6112_v48 }
  0x96   :  { %4745 = vmatpush3.msra.mxu1 %v6251_v32  ;;  %668 = vmatprep.subr.mxu0 %v6118_v51 }
  0x97   :  { %4746 = vmatprep.subr.mxu1 %v8098_v0  ;;  %4730 = vmatmul.mubr.f32.gmra.mxu1 %v122_v22 }
  0x98   :  { %4747 = vmatpush3.msra.mxu1 %v6255_v33  ;;  %4764 = vmatprep.mubr.msk.f32.mxu1 %vm6015_vm0, %v8098_v0 }
  0x99   :  { %4748 = vmatprep.subr.mxu1 %v8098_v0  ;;  %669 = vmatpush1.msra.mxu0 %v6121_v52 }
  0x9a   :  { %4749 = vmatpush3.msra.mxu1 %v6261_v34  ;;  %670 = vmatprep.subr.mxu0 %v6124_v53 }
  0x9b   :  { %4750 = vmatprep.subr.mxu1 %v8098_v0  ;;  %671 = vmatpush1.msra.mxu0 %v6128_v54 }
  0x9c   :  { %4751 = vmatpush3.msra.mxu1 %v6267_v35  ;;  %672 = vmatprep.subr.mxu0 %v6134_v57 }
  0x9d   :  { %4752 = vmatprep.subr.mxu1 %v8098_v0  ;;  %673 = vmatpush1.msra.mxu0 %v6137_v58 }
  0x9e   :  { %4753 = vmatpush3.msra.mxu1 %v6273_v36  ;;  %674 = vmatprep.subr.mxu0 %v6140_v59 }
  0x9f   :  { %4754 = vmatprep.subr.mxu1 %v8098_v0  ;;  %675 = vmatpush1.msra.mxu0 %v6144_v60 }
  0xa0   :  { %4755 = vmatpush3.msra.mxu1 %v6279_v37  ;;  %676 = vmatprep.subr.mxu0 %v6150_v63 }
  0xa1   :  { %4756 = vmatprep.subr.mxu1 %v8098_v0  ;;  %677 = vmatpush1.msra.mxu0 %v6153_v1 }
  0xa2   :  { %4757 = vmatpush3.msra.mxu1 %v6285_v38  ;;  %678 = vmatprep.subr.mxu0 %v6156_v2 }
  0xa3   :  { %4758 = vmatprep.subr.mxu1 %v8098_v0  ;;  %679 = vmatpush1.msra.mxu0 %v6160_v3 }
  0xa4   :  { %4759 = vmatpush3.msra.mxu1 %v6291_v39  ;;  %680 = vmatprep.subr.mxu0 %v6166_v6 }
  0xa5   :  { %4760 = vmatprep.subr.mxu1 %v8098_v0  ;;  %681 = vmatpush1.msra.mxu0 %v6169_v7 }
  0xa6   :  { %4761 = vmatpush3.msra.mxu1 %v6297_v40  ;;  %682 = vmatprep.subr.mxu0 %v6172_v8 }
  0xa7   :  { %4762 = vmatprep.subr.mxu1 %v8098_v0  ;;  %683 = vmatpush1.msra.mxu0 %v6176_v9 }
  0xa8   :  { %4763 = vmatpush3.msra.mxu1 %v6303_v41  ;;  %684 = vmatprep.subr.mxu0 %v6180_v12 }
  0xa9   :  { %4765 = vmatmul.mubr.f32.vlgmr.msra.gmra.mxu1 %v8098_v0  ;;  %4767 = vmatprep.subr.mxu1 %v8098_v0 }
  0xaa   :  { %4768 = vmatpush3.msra.mxu1 %v6205_v21  ;;  %685 = vmatpush1.msra.mxu0 %v6183_v13 }
  0xab   :  { %4769 = vmatprep.subr.mxu1 %v8098_v0  ;;  %686 = vmatprep.subr.mxu0 %v6186_v14 }
  0xac   :  { %4770 = vmatpush3.msra.mxu1 %v6222_v27  ;;  %687 = vmatpush1.msra.mxu0 %v6189_v15 }
  0xad   :  { %4771 = vmatprep.subr.mxu1 %v8098_v0  ;;  %688 = vmatprep.subr.mxu0 %v6193_v17 }
  0xae   :  { %4772 = vmatpush3.msra.mxu1 %v6228_v28  ;;  %689 = vmatpush1.msra.mxu0 %v6196_v18 }
  0xaf   :  { %4773 = vmatprep.subr.mxu1 %v8098_v0  ;;  %690 = vmatprep.subr.mxu0 %v6199_v19 }
  0xb0   :  { %4774 = vmatpush3.msra.mxu1 %v6234_v29  ;;  %691 = vmatpush1.msra.mxu0 %v6203_v20 }
  0xb1   :  { %4775 = vmatprep.subr.mxu1 %v8098_v0  ;;  %692 = vmatprep.subr.mxu0 %v6209_v23 }
  0xb2   :  { %4776 = vmatpush3.msra.mxu1 %v6239_v30  ;;  %693 = vmatpush1.msra.mxu0 %v6212_v24 }
  0xb3   :  { %4777 = vmatprep.subr.mxu1 %v8098_v0  ;;  %694 = vmatprep.subr.mxu0 %v6216_v25 }
  0xb4   :  { %4778 = vmatpush3.msra.mxu1 %v6245_v31  ;;  %695 = vmatpush1.msra.mxu0 %v6220_v26 }
  0xb5   :  { %4779 = vmatprep.subr.mxu1 %v8098_v0  ;;  %728 = vmatprep.mubr.f32.mxu0 %v8098_v0 }
  0xb6   :  { %4780 = vmatpush3.msra.mxu1 %v6251_v32  ;;  %4799 = vmatprep.mubr.msk.f32.mxu1 %vm6015_vm0, %v8098_v0 }
  0xb7   :  { %4781 = vmatprep.subr.mxu1 %v8098_v0  ;;  %830 = vmatprep.subr.mxu0 %v6104_v45 }
  0xb8   :  { %4782 = vmatpush3.msra.mxu1 %v6255_v33 }
  0xb9   :  { %4783 = vmatprep.subr.mxu1 %v8098_v0 }
  0xba   :  { %4784 = vmatpush3.msra.mxu1 %v6261_v34 }
  0xbb   :  { %4785 = vmatprep.subr.mxu1 %v8098_v0 }
  0xbc   :  { %4786 = vmatpush3.msra.mxu1 %v6267_v35 }
  0xbd   :  { %4787 = vmatprep.subr.mxu1 %v8098_v0 }
  0xbe   :  { %4788 = vmatpush3.msra.mxu1 %v6273_v36 }
  0xbf   :  { %4789 = vmatprep.subr.mxu1 %v8098_v0 }
  0xc0   :  { %4790 = vmatpush3.msra.mxu1 %v6279_v37 }
  0xc1   :  { %4791 = vmatprep.subr.mxu1 %v8098_v0 }
  0xc2   :  { %4792 = vmatpush3.msra.mxu1 %v6285_v38 }
  0xc3   :  { %4793 = vmatprep.subr.mxu1 %v8098_v0 }
  0xc4   :  { %4794 = vmatpush3.msra.mxu1 %v6291_v39 }
  0xc5   :  { %4795 = vmatprep.subr.mxu1 %v8098_v0 }
  0xc6   :  { %4796 = vmatpush3.msra.mxu1 %v6297_v40 }
  0xc7   :  { %4797 = vmatprep.subr.mxu1 %v8098_v0 }
  0xc8   :  { %4798 = vmatpush3.msra.mxu1 %v6303_v41 }
  0xc9   :  { %4802 = vmatprep.subr.mxu1 %v8098_v0 }
 0x12f   :  { %v254_v50 = vpop.f32.mrf.mxu0 }
 0x131   :  { %v256_v56 = vpop.f32.mrf.mxu0 }
 0x133   :  { %v260_v62 = vpop.f32.mrf.mxu0 }
 0x134   :  { %v6368_v5 = vadd.f32 %v260_v62, %v176_v61 }
 0x135   :  { %v262_v10 = vpop.f32.mrf.mxu0 }
 0x136   :  { %8201 = vst [vmem:[#allocation32_spill] sm:$0xff] %v6368_v5  ;;  %v6370_v11 = vadd.f32 %v262_v10, %v180_v4  ;;  %v6384_v10 = vsub.s32 2, %v174_v43 }
 0x137   :  { %v266_v16 = vpop.f32.mrf.mxu0 }
 0x138   :  { %8202 = vst [vmem:[#allocation33_spill] sm:$0xff] %v6370_v11  ;;  %v6372_v22 = vadd.f32 %v266_v16, %v176_v61  ;;  %8209 = vst [vmem:[#allocation40_spill] sm:$0xff] %v6384_v10 }
 0x139   :  { %v268_v42 = vpop.f32.mrf.mxu0 }
 0x13a   :  { %8203 = vst [vmem:[#allocation34_spill] sm:$0xff] %v6372_v22  ;;  %v6374_v0 = vadd.f32 %v268_v42, %v180_v4 }
 0x13b   :  { %v272_v45 = vpop.f32.mrf.mxu0 }
 0x13c   :  { %8204 = vst [vmem:[#allocation35_spill] sm:$0xff] %v6374_v0  ;;  %v6376_v41 = vadd.f32 %v272_v45, %v176_v61  ;;  %v184_v45 = vrot.slane %v171_v49, %v6384_v10 }
 0x13d   :  { %v274_v26 = vpop.f32.mrf.mxu0 }
 0x13e   :  { %8205 = vst [vmem:[#allocation36_spill] sm:$0xff] %v6376_v41  ;;  %v6378_v25 = vadd.f32 %v274_v26, %v180_v4 }
 0x13f   :  { %v278_v40 = vpop.f32.mrf.mxu0 }
 0x140   :  { %8206 = vst [vmem:[#allocation37_spill] sm:$0xff] %v6378_v25  ;;  %v6380_v24 = vadd.f32 %v278_v40, %v176_v61  ;;  %v478_v40 = vld [vmem:[%s8092_s4] sm:$0x7] }
 0x141   :  { %v280_v62 = vpop.f32.mrf.mxu0  ;;  %v6409_v23 = vrot.slane %v478_v40, %v6364_v55 }
 0x142   :  { %8207 = vst [vmem:[#allocation38_spill] sm:$0xff] %v6380_v24  ;;  %v6382_v5 = vadd.f32 %v280_v62, %v180_v4  ;;  %v4722_v62 = vpop.f32.mrf.mxu1  ;;  %v255_v24 = vadd.f32 %v254_v50, %v176_v61 }
 0x143   :  { %v284_v11 = vpop.f32.mrf.mxu0  ;;  %v6398_v43 = vadd.f32 %v4722_v62, %v184_v45 }
 0x144   :  { %8208 = vst [vmem:[#allocation39_spill] sm:$0xff] %v6382_v5  ;;  %v6386_v16 = vadd.f32 %v284_v11, %v176_v61 }
 0x145   :  { %v286_v22 = vpop.f32.mrf.mxu0  ;;  %8214 = vst [vmem:[#allocation45_spill] sm:$0xff] %v6398_v43 }
 0x146   :  { %8210 = vst [vmem:[#allocation41_spill] sm:$0xff] %v6386_v16  ;;  %v6388_v42 = vadd.f32 %v286_v22, %v180_v4  ;;  %v6403_v22 = vrot.slane %v478_v40, %v6362_v44 }
 0x147   :  { %v290_v41 = vpop.f32.mrf.mxu0 }
 0x148   :  { %8211 = vst [vmem:[#allocation42_spill] sm:$0xff] %v6388_v42  ;;  %v6391_v0 = vadd.f32 %v290_v41, %v176_v61  ;;  %8216 = vst [vmem:[#allocation47_spill] sm:$0xff] %v6403_v22 }
 0x149   :  { %v292_v26 = vpop.f32.mrf.mxu0 }
 0x14a   :  { %8212 = vst [vmem:[#allocation43_spill] sm:$0xff] %v6391_v0  ;;  %v6396_v5 = vadd.f32 %v292_v26, %v180_v4  ;;  %v367_v0 = vpop.f32.mrf.mxu1 }
 0x14b   :  { %v296_v11 = vpop.f32.mrf.mxu0 }
 0x14c   :  { %8213 = vst [vmem:[#allocation44_spill] sm:$0xff] %v6396_v5  ;;  %v6400_v16 = vadd.f32 %v296_v11, %v176_v61 }
 0x14d   :  { %v298_v49 = vpop.f32.mrf.mxu0 }
 0x14e   :  { %8215 = vst [vmem:[#allocation46_spill] sm:$0xff] %v6400_v16  ;;  %v6405_v42 = vadd.f32 %v298_v49, %v180_v4  ;;  %v4725_v62 = vpop.f32.mrf.mxu1 }
 0x14f   :  { %v564_v41 = vpop.f32.mrf.mxu0  ;;  %v6411_v43 = vadd.f32 %v4725_v62, %v184_v45 }
 0x150   :  { %8217 = vst [vmem:[#allocation48_spill] sm:$0xff] %v6405_v42  ;;  %v565_v25 = vadd.f32 %v564_v41, %v6403_v22  ;;  %v377_v11 = vpop.f32.mrf.mxu1  ;;  %v257_v42 = vadd.f32 %v256_v56, %v180_v4  ;;  %v6425_v56 = vrot.slane %v478_v40, %v6384_v10  ;;  %v8228_v40 = vld [vmem:[#allocation23_spill] sm:$0xff] }
 0x151   :  { %v566_v26 = vpop.f32.mrf.mxu0  ;;  %8218 = vst [vmem:[#allocation49_spill] sm:$0xff] %v6411_v43  ;;  %v6414_v39 = vadd.f32 %v377_v11, %v184_v45  ;;  %v8237_v43 = vld [vmem:[#allocation33_spill] sm:$0xff] }
 0x152   :  { %v639_v5 = vadd.f32 %v565_v25, %v255_v24  ;;  %v567_v44 = vadd.f32 %v566_v26, %v6409_v23 }
 0x153   :  { %8219 = vst [vmem:[#allocation50_spill] sm:$0xff] %v6414_v39  ;;  %v4728_v49 = vpop.f32.mrf.mxu1 }
 0x154   :  { %v4212_v16 = vmul.f32 -1.442695, %v639_v5  ;;  %v6416_v50 = vadd.f32 %v4728_v49, %v184_v45  ;;  %v646_v41 = vadd.f32 %v567_v44, %v257_v42 }
 0x155   :  { %v387_v61 = vpop.f32.mrf.mxu1 }
 0x156   :  { %5596 = vpow2.f32 %v4212_v16  ;;  %8220 = vst [vmem:[#allocation51_spill] sm:$0xff] %v6416_v50  ;;  %v6418_v55 = vadd.f32 %v387_v61, %v184_v45  ;;  %v4213_v25 = vmul.f32 -1.442695, %v646_v41 }
 0x157   :  { %v4731_v22 = vpop.f32.mrf.mxu1 }
 0x158   :  { %8221 = vst [vmem:[#allocation52_spill] sm:$0xff] %v6418_v55  ;;  %v6420_v20 = vadd.f32 %v4731_v22, %v184_v45  ;;  %5598 = vpow2.f32 %v4213_v25  ;;  %v368_v22 = vadd.f32 %v367_v0, %v184_v45  ;;  %v8225_v0 = vmov 0.0  }
 0x159   :  { %v397_v24 = vpop.f32.mrf.mxu1 }
 0x15a   :  { %8222 = vst [vmem:[#allocation53_spill] sm:$0xff] %v6420_v20  ;;  %v6422_v62 = vadd.f32 %v397_v24, %v184_v45  ;;  %v8227_v45 = vld [vmem:[#allocation27_spill] sm:$0xff] }
 0x15c   :  { %8223 = vst [vmem:[#allocation54_spill] sm:$0xff] %v6422_v62 }
 0x163   :  { %v5597_v5 = vpop.eup %5596 }
 0x164   :  { %v643_v26 = vadd.f32 1.0, %v5597_v5 }
 0x165   :  { %v5599_v4 = vpop.eup %5598 }
 0x166   :  { %5600 = vrcp.f32 %v643_v26  ;;  %v650_v44 = vadd.f32 1.0, %v5599_v4  ;;  %v8230_v4 = vld [vmem:[#allocation28_spill] sm:$0xff] }
 0x168   :  { %5602 = vrcp.f32 %v650_v44  ;;  %v8232_v44 = vld [vmem:[#allocation26_spill] sm:$0xff] }
 0x169   :  { %v635_v11 = vpop.f32.mrf.mxu1 }
 0x16a   :  { %v636_v42 = vadd.f32 %v635_v11, %v6425_v56  ;;  %v8229_v11 = vld [vmem:[#allocation24_spill] sm:$0xff] }
 0x16b   :  { %v4766_v16 = vpop.f32.mrf.mxu1 }
 0x16c   :  { %v8231_v16 = vld [vmem:[#allocation25_spill] sm:$0xff] }
 0x173   :  { %v5601_v49 = vpop.eup %5600 }
 0x174   :  { %v653_v61 = vmul.f32 %v5601_v49, %v636_v42  ;;  %v8233_v42 = vld [vmem:[#allocation29_spill] sm:$0xff] }
 0x175   :  { %v5603_v24 = vpop.eup %5602  ;;  %v8234_v49 = vld [vmem:[#allocation21_spill] sm:$0xff] }
 0x176   :  { %v654_v41 = vadd.f32 %v653_v61, %v368_v22  ;;  %v656_v25 = vsub.f32 1.0, %v5603_v24  ;;  %v658_v26 = vmul.f32 0.0, %v5603_v24 }
 0x178   :  { %5604 = vtanh.f32 %v654_v41  ;;  %v8235_v41 = vld [vmem:[#allocation47_spill] sm:$0xff] }
 0x185   :  { %v5605_v20 = vpop.eup %5604 }
 0x186   :  { %v657_v5 = vmul.f32 %v5605_v20, %v656_v25  ;;  %v8226_v20 = vld [vmem:[#allocation22_spill] sm:$0xff] }
 0x188   :  { %v6428_v62 = vadd.f32 %v658_v26, %v657_v5  ;;  %v8236_v26 = vld [vmem:[#allocation32_spill] sm:$0xff] }
 0x18a   :  { %8224 = vst [vmem:[#allocation55_spill] sm:$0xff] %v6428_v62  ;;  %729 = vmatmul.mubr.f32.vlgmr.msra.gmra.mxu0 %v6428_v62  ;;  %4800 = vmatmul.mubr.f32.vlgmr.msra.gmra.mxu1 %v6428_v62 }
 0x18b   :  { %831 = vmatpush1.msra.mxu0 %v6106_v46  ;;  %4803 = vmatpush3.msra.mxu1 %v6205_v21 }
 0x18c   :  { %832 = vmatprep.subr.mxu0 %v6108_v47  ;;  %4804 = vmatprep.subr.mxu1 %v8225_v0 }
 0x18d   :  { %833 = vmatpush1.msra.mxu0 %v6112_v48  ;;  %4805 = vmatpush3.msra.mxu1 %v6222_v27 }
 0x18e   :  { %834 = vmatprep.subr.mxu0 %v6118_v51  ;;  %4806 = vmatprep.subr.mxu1 %v8225_v0 }
 0x18f   :  { %835 = vmatpush1.msra.mxu0 %v6121_v52  ;;  %4807 = vmatpush3.msra.mxu1 %v6228_v28 }
 0x190   :  { %836 = vmatprep.subr.mxu0 %v6124_v53  ;;  %4808 = vmatprep.subr.mxu1 %v8225_v0 }
 0x191   :  { %837 = vmatpush1.msra.mxu0 %v6128_v54  ;;  %4809 = vmatpush3.msra.mxu1 %v6234_v29 }
 0x192   :  { %838 = vmatprep.subr.mxu0 %v6134_v57  ;;  %4810 = vmatprep.subr.mxu1 %v8225_v0 }
 0x193   :  { %839 = vmatpush1.msra.mxu0 %v6137_v58  ;;  %4811 = vmatpush3.msra.mxu1 %v6239_v30 }
 0x194   :  { %840 = vmatprep.subr.mxu0 %v6140_v59  ;;  %4812 = vmatprep.subr.mxu1 %v8225_v0 }
 0x195   :  { %841 = vmatpush1.msra.mxu0 %v6144_v60  ;;  %4813 = vmatpush3.msra.mxu1 %v6245_v31 }
 0x196   :  { %842 = vmatprep.subr.mxu0 %v6150_v63  ;;  %4814 = vmatprep.subr.mxu1 %v8225_v0 }
 0x197   :  { %843 = vmatpush1.msra.mxu0 %v6153_v1  ;;  %4815 = vmatpush3.msra.mxu1 %v6251_v32 }
 0x198   :  { %844 = vmatprep.subr.mxu0 %v6156_v2  ;;  %4816 = vmatprep.subr.mxu1 %v8225_v0 }
 0x199   :  { %845 = vmatpush1.msra.mxu0 %v6160_v3  ;;  %4817 = vmatpush3.msra.mxu1 %v6255_v33 }
 0x19a   :  { %846 = vmatprep.subr.mxu0 %v6166_v6  ;;  %4818 = vmatprep.subr.mxu1 %v8225_v0 }
 0x19b   :  { %847 = vmatpush1.msra.mxu0 %v6169_v7  ;;  %4819 = vmatpush3.msra.mxu1 %v6261_v34 }
 0x19c   :  { %848 = vmatprep.subr.mxu0 %v6172_v8  ;;  %4820 = vmatprep.subr.mxu1 %v8225_v0 }
 0x19d   :  { %849 = vmatpush1.msra.mxu0 %v6176_v9  ;;  %4821 = vmatpush3.msra.mxu1 %v6267_v35 }
 0x19e   :  { %850 = vmatprep.subr.mxu0 %v6180_v12  ;;  %4822 = vmatprep.subr.mxu1 %v8225_v0 }
 0x19f   :  { %851 = vmatpush1.msra.mxu0 %v6183_v13  ;;  %4823 = vmatpush3.msra.mxu1 %v6273_v36 }
 0x1a0   :  { %852 = vmatprep.subr.mxu0 %v6186_v14  ;;  %4824 = vmatprep.subr.mxu1 %v8225_v0 }
 0x1a1   :  { %853 = vmatpush1.msra.mxu0 %v6189_v15  ;;  %4825 = vmatpush3.msra.mxu1 %v6279_v37 }
 0x1a2   :  { %854 = vmatprep.subr.mxu0 %v6193_v17  ;;  %4826 = vmatprep.subr.mxu1 %v8225_v0 }
 0x1a3   :  { %855 = vmatpush1.msra.mxu0 %v6196_v18  ;;  %4827 = vmatpush3.msra.mxu1 %v6285_v38 }
 0x1a4   :  { %856 = vmatprep.subr.mxu0 %v6199_v19  ;;  %4828 = vmatprep.subr.mxu1 %v8225_v0 }
 0x1a5   :  { %857 = vmatpush1.msra.mxu0 %v8226_v20  ;;  %4829 = vmatpush3.msra.mxu1 %v8227_v45 }
 0x1a6   :  { %858 = vmatprep.subr.mxu0 %v8228_v40  ;;  %4830 = vmatprep.subr.mxu1 %v8225_v0 }
 0x1a7   :  { %859 = vmatpush1.msra.mxu0 %v8229_v11  ;;  %4831 = vmatpush3.msra.mxu1 %v8230_v4 }
 0x1a8   :  { %860 = vmatprep.subr.mxu0 %v8231_v16  ;;  %4832 = vmatprep.subr.mxu1 %v8225_v0 }
 0x1a9   :  { %861 = vmatpush1.msra.mxu0 %v8232_v44  ;;  %894 = vmatprep.mubr.f32.mxu0 %v8225_v0 }
 0x1aa   :  { %4833 = vmatpush3.msra.mxu1 %v8233_v42  ;;  %4834 = vmatprep.mubr.msk.f32.mxu1 %vm6015_vm0, %v8225_v0 }
 0x1ab   :  { %996 = vmatprep.subr.mxu0 %v8234_v49  ;;  %4837 = vmatprep.subr.mxu1 %v8225_v0 }
 0x24a   :  { %v730_v22 = vpop.f32.mrf.mxu0  ;;  %v801_v61 = vpop.f32.mrf.mxu1 }
 0x24b   :  { %v731_v24 = vadd.f32 %v730_v22, %v8235_v41  ;;  %v802_v11 = vadd.f32 %v801_v61, %v6425_v56  ;;  %v8247_v61 = vld [vmem:[#allocation34_spill] sm:$0xff] }
 0x24c   :  { %v732_v25 = vpop.f32.mrf.mxu0  ;;  %v4801_v5 = vpop.f32.mrf.mxu1 }
 0x24d   :  { %v805_v10 = vadd.f32 %v731_v24, %v8236_v26  ;;  %v733_v55 = vadd.f32 %v732_v25, %v6409_v23  ;;  %v8238_v5 = vld [vmem:[#allocation45_spill] sm:$0xff] }
 0x24f   :  { %v4214_v50 = vmul.f32 -1.442695, %v805_v10  ;;  %v812_v39 = vadd.f32 %v733_v55, %v8237_v43  ;;  %v8245_v43 = vld [vmem:[#allocation21_spill] sm:$0xff] }
 0x251   :  { %5606 = vpow2.f32 %v4214_v50  ;;  %v4215_v42 = vmul.f32 -1.442695, %v812_v39 }
 0x253   :  { %5608 = vpow2.f32 %v4215_v42 }
 0x25e   :  { %v5607_v44 = vpop.eup %5606 }
 0x25f   :  { %v809_v49 = vadd.f32 1.0, %v5607_v44 }
 0x260   :  { %v5609_v16 = vpop.eup %5608 }
 0x261   :  { %5610 = vrcp.f32 %v809_v49  ;;  %v816_v4 = vadd.f32 1.0, %v5609_v16  ;;  %v8246_v16 = vld [vmem:[#allocation47_spill] sm:$0xff] }
 0x263   :  { %5612 = vrcp.f32 %v816_v4 }
 0x26e   :  { %v5611_v22 = vpop.eup %5610 }
 0x26f   :  { %v819_v41 = vmul.f32 %v5611_v22, %v802_v11 }
 0x270   :  { %v5613_v10 = vpop.eup %5612 }
 0x271   :  { %v820_v24 = vadd.f32 %v819_v41, %v8238_v5  ;;  %v822_v25 = vsub.f32 1.0, %v5613_v10  ;;  %v824_v39 = vmul.f32 %v5613_v10, %v6428_v62 }
 0x273   :  { %5614 = vtanh.f32 %v820_v24  ;;  %v8248_v24 = vld [vmem:[#allocation35_spill] sm:$0xff] }
 0x280   :  { %v5615_v50 = vpop.eup %5614 }
 0x281   :  { %v823_v26 = vmul.f32 %v5615_v50, %v822_v25 }
 0x283   :  { %v6506_v55 = vadd.f32 %v824_v39, %v823_v26 }
 0x285   :  { %8239 = vst [vmem:[#allocation22_spill] sm:$0xff] %v6506_v55  ;;  %895 = vmatmul.mubr.f32.vlgmr.msra.gmra.mxu0 %v6506_v55  ;;  %4835 = vmatmul.mubr.f32.vlgmr.msra.gmra.mxu1 %v6506_v55 }
 0x286   :  { %997 = vmatpush1.msra.mxu0 %v6106_v46  ;;  %4838 = vmatpush3.msra.mxu1 %v6205_v21  ;;  %v8240_v46 = vld [vmem:[#allocation24_spill] sm:$0xff] }
 0x287   :  { %998 = vmatprep.subr.mxu0 %v6108_v47  ;;  %4839 = vmatprep.subr.mxu1 %v8225_v0  ;;  %v8241_v47 = vld [vmem:[#allocation28_spill] sm:$0xff] }
 0x288   :  { %999 = vmatpush1.msra.mxu0 %v6112_v48  ;;  %4840 = vmatpush3.msra.mxu1 %v6222_v27  ;;  %v8242_v48 = vld [vmem:[#allocation25_spill] sm:$0xff] }
 0x289   :  { %1000 = vmatprep.subr.mxu0 %v6118_v51  ;;  %4841 = vmatprep.subr.mxu1 %v8225_v0  ;;  %v8243_v51 = vld [vmem:[#allocation26_spill] sm:$0xff] }
 0x28a   :  { %1001 = vmatpush1.msra.mxu0 %v6121_v52  ;;  %4842 = vmatpush3.msra.mxu1 %v6228_v28  ;;  %v8244_v52 = vld [vmem:[#allocation29_spill] sm:$0xff] }
 0x28b   :  { %1002 = vmatprep.subr.mxu0 %v6124_v53  ;;  %4843 = vmatprep.subr.mxu1 %v8225_v0 }
 0x28c   :  { %1003 = vmatpush1.msra.mxu0 %v6128_v54  ;;  %4844 = vmatpush3.msra.mxu1 %v6234_v29 }
 0x28d   :  { %1004 = vmatprep.subr.mxu0 %v6134_v57  ;;  %4845 = vmatprep.subr.mxu1 %v8225_v0 }
 0x28e   :  { %1005 = vmatpush1.msra.mxu0 %v6137_v58  ;;  %4846 = vmatpush3.msra.mxu1 %v6239_v30 }
 0x28f   :  { %1006 = vmatprep.subr.mxu0 %v6140_v59  ;;  %4847 = vmatprep.subr.mxu1 %v8225_v0 }
 0x290   :  { %1007 = vmatpush1.msra.mxu0 %v6144_v60  ;;  %4848 = vmatpush3.msra.mxu1 %v6245_v31 }
 0x291   :  { %1008 = vmatprep.subr.mxu0 %v6150_v63  ;;  %4849 = vmatprep.subr.mxu1 %v8225_v0 }
 0x292   :  { %1009 = vmatpush1.msra.mxu0 %v6153_v1  ;;  %4850 = vmatpush3.msra.mxu1 %v6251_v32 }
 0x293   :  { %1010 = vmatprep.subr.mxu0 %v6156_v2  ;;  %4851 = vmatprep.subr.mxu1 %v8225_v0 }
 0x294   :  { %1011 = vmatpush1.msra.mxu0 %v6160_v3  ;;  %4852 = vmatpush3.msra.mxu1 %v6255_v33 }
 0x295   :  { %1012 = vmatprep.subr.mxu0 %v6166_v6  ;;  %4853 = vmatprep.subr.mxu1 %v8225_v0 }
 0x296   :  { %1013 = vmatpush1.msra.mxu0 %v6169_v7  ;;  %4854 = vmatpush3.msra.mxu1 %v6261_v34 }
 0x297   :  { %1014 = vmatprep.subr.mxu0 %v6172_v8  ;;  %4855 = vmatprep.subr.mxu1 %v8225_v0 }
 0x298   :  { %1015 = vmatpush1.msra.mxu0 %v6176_v9  ;;  %4856 = vmatpush3.msra.mxu1 %v6267_v35 }
 0x299   :  { %1016 = vmatprep.subr.mxu0 %v6180_v12  ;;  %4857 = vmatprep.subr.mxu1 %v8225_v0 }
 0x29a   :  { %1017 = vmatpush1.msra.mxu0 %v6183_v13  ;;  %4858 = vmatpush3.msra.mxu1 %v6273_v36 }
 0x29b   :  { %1018 = vmatprep.subr.mxu0 %v6186_v14  ;;  %4859 = vmatprep.subr.mxu1 %v8225_v0 }
 0x29c   :  { %1019 = vmatpush1.msra.mxu0 %v6189_v15  ;;  %4860 = vmatpush3.msra.mxu1 %v6279_v37 }
 0x29d   :  { %1020 = vmatprep.subr.mxu0 %v6193_v17  ;;  %4861 = vmatprep.subr.mxu1 %v8225_v0 }
 0x29e   :  { %1021 = vmatpush1.msra.mxu0 %v6196_v18  ;;  %4862 = vmatpush3.msra.mxu1 %v6285_v38 }
 0x29f   :  { %1022 = vmatprep.subr.mxu0 %v6199_v19  ;;  %4863 = vmatprep.subr.mxu1 %v8225_v0 }
 0x2a0   :  { %1023 = vmatpush1.msra.mxu0 %v8226_v20  ;;  %4864 = vmatpush3.msra.mxu1 %v8227_v45 }
 0x2a1   :  { %1024 = vmatprep.subr.mxu0 %v8228_v40  ;;  %4865 = vmatprep.subr.mxu1 %v8225_v0 }
 0x2a2   :  { %1025 = vmatpush1.msra.mxu0 %v8240_v46  ;;  %4866 = vmatpush3.msra.mxu1 %v8241_v47 }
 0x2a3   :  { %1026 = vmatprep.subr.mxu0 %v8242_v48  ;;  %4867 = vmatprep.subr.mxu1 %v8225_v0 }
 0x2a4   :  { %1027 = vmatpush1.msra.mxu0 %v8243_v51  ;;  %1060 = vmatprep.mubr.f32.mxu0 %v8225_v0 }
 0x2a5   :  { %4868 = vmatpush3.msra.mxu1 %v8244_v52  ;;  %4869 = vmatprep.mubr.msk.f32.mxu1 %vm6015_vm0, %v8225_v0 }
 0x2a6   :  { %1162 = vmatprep.subr.mxu0 %v8245_v43  ;;  %4872 = vmatprep.subr.mxu1 %v8225_v0 }
 0x345   :  { %v896_v11 = vpop.f32.mrf.mxu0  ;;  %v967_v4 = vpop.f32.mrf.mxu1 }
 0x346   :  { %v897_v44 = vadd.f32 %v896_v11, %v8246_v16  ;;  %v968_v62 = vadd.f32 %v967_v4, %v6425_v56  ;;  %v6596_v4 = vld [vmem:[#allocation9 + $0x150] sm:$0xff] }
 0x347   :  { %v898_v42 = vpop.f32.mrf.mxu0  ;;  %v4836_v49 = vpop.f32.mrf.mxu1 }
 0x348   :  { %v971_v41 = vadd.f32 %v897_v44, %v8247_v61  ;;  %v899_v5 = vadd.f32 %v898_v42, %v6409_v23  ;;  %v8249_v49 = vld [vmem:[#allocation50_spill] sm:$0xff] }
 0x34a   :  { %v4216_v22 = vmul.f32 -1.442695, %v971_v41  ;;  %v978_v10 = vadd.f32 %v899_v5, %v8248_v24 }
 0x34c   :  { %5616 = vpow2.f32 %v4216_v22  ;;  %v4217_v25 = vmul.f32 -1.442695, %v978_v10  ;;  %v6588_v10 = vld [vmem:[#allocation9 + $0x168] sm:$0xff] }
 0x34e   :  { %5618 = vpow2.f32 %v4217_v25  ;;  %v6604_v25 = vld [vmem:[#allocation9 + $0x138] sm:$0xff] }
 0x359   :  { %v5617_v50 = vpop.eup %5616 }
 0x35a   :  { %v975_v26 = vadd.f32 1.0, %v5617_v50  ;;  %v6694_v50 = vld [vmem:[#allocation9 + $0x128] sm:$0xff] }
 0x35b   :  { %v5619_v39 = vpop.eup %5618 }
 0x35c   :  { %5620 = vrcp.f32 %v975_v26  ;;  %v982_v43 = vadd.f32 1.0, %v5619_v39  ;;  %v6698_v26 = vld [vmem:[#allocation9 + $0x120] sm:$0xff]  ;;  %v6701_v39 = vld [vmem:[#allocation9 + $0x130] sm:$0xff] }
 0x35e   :  { %5622 = vrcp.f32 %v982_v43  ;;  %v6704_v43 = vld [vmem:[#allocation9 + $0x110] sm:$0xff] }
 0x369   :  { %v5621_v11 = vpop.eup %5620 }
 0x36a   :  { %v985_v16 = vmul.f32 %v5621_v11, %v968_v62  ;;  %v6592_v62 = vld [vmem:[#allocation9 + $0x158] sm:$0xff]  ;;  %v6708_v11 = vld [vmem:[#allocation9 + $0x108] sm:$0xff] }
 0x36b   :  { %v5623_v61 = vpop.eup %5622 }
 0x36c   :  { %v986_v44 = vadd.f32 %v985_v16, %v8249_v49  ;;  %v988_v42 = vsub.f32 1.0, %v5623_v61  ;;  %v990_v5 = vmul.f32 %v5623_v61, %v6506_v55  ;;  %v6600_v16 = vld [vmem:[#allocation9 + $0x140] sm:$0xff]  ;;  %v6711_v49 = vld [vmem:[#allocation9 + $0x118] sm:$0xff]  ;;  %v6718_v61 = vld [vmem:[#allocation9 + $0xf0] sm:$0xff] }
 0x36e   :  { %5624 = vtanh.f32 %v986_v44  ;;  %v6714_v44 = vld [vmem:[#allocation9 + $0xf8] sm:$0xff] }
 0x37b   :  { %v5625_v41 = vpop.eup %5624 }
 0x37c   :  { %v989_v22 = vmul.f32 %v5625_v41, %v988_v42  ;;  %v6721_v42 = vld [vmem:[#allocation9 + $0x100] sm:$0xff] }
 0x37d   :  { %v6724_v41 = vld [vmem:[#allocation9 + $0xe0] sm:$0xff] }
 0x37e   :  { %v6584_v24 = vadd.f32 %v990_v5, %v989_v22  ;;  %v6728_v22 = vld [vmem:[#allocation9 + $0xd8] sm:$0xff]  ;;  %v6732_v5 = vld [vmem:[#allocation9 + $0xc8] sm:$0xff] }
 0x380   :  { %8250 = vst [vmem:[#allocation27_spill] sm:$0xff] %v6584_v24  ;;  %1061 = vmatmul.mubr.f32.vlgmr.msra.gmra.mxu0 %v6584_v24  ;;  %4870 = vmatmul.mubr.f32.vlgmr.msra.gmra.mxu1 %v6584_v24 }
 0x381   :  { %1163 = vmatpush1.msra.mxu0 %v6588_v10  ;;  %4873 = vmatpush3.msra.mxu1 %v6205_v21  ;;  %v8254_v21 = vld [vmem:[#allocation49_spill] sm:$0xff] }
 0x382   :  { %1164 = vmatprep.subr.mxu0 %v6592_v62  ;;  %4874 = vmatprep.subr.mxu1 %v8225_v0 }
 0x383   :  { %1165 = vmatpush1.msra.mxu0 %v6596_v4  ;;  %4875 = vmatpush3.msra.mxu1 %v6222_v27 }
 0x384   :  { %1166 = vmatprep.subr.mxu0 %v6600_v16  ;;  %4876 = vmatprep.subr.mxu1 %v8225_v0 }
 0x385   :  { %1167 = vmatpush1.msra.mxu0 %v6604_v25  ;;  %4877 = vmatpush3.msra.mxu1 %v6228_v28 }
 0x386   :  { %1168 = vmatprep.subr.mxu0 %v6124_v53  ;;  %4878 = vmatprep.subr.mxu1 %v8225_v0  ;;  %v6663_v53 = vld [vmem:[#allocation9 + $0x170] sm:$0xff] }
 0x387   :  { %1169 = vmatpush1.msra.mxu0 %v6128_v54  ;;  %4879 = vmatpush3.msra.mxu1 %v6234_v29 }
 0x388   :  { %1170 = vmatprep.subr.mxu0 %v6134_v57  ;;  %4880 = vmatprep.subr.mxu1 %v8225_v0 }
 0x389   :  { %1171 = vmatpush1.msra.mxu0 %v6137_v58  ;;  %4881 = vmatpush3.msra.mxu1 %v6239_v30  ;;  %v8251_v58 = vld [vmem:[#allocation47_spill] sm:$0xff] }
 0x38a   :  { %1172 = vmatprep.subr.mxu0 %v6140_v59  ;;  %4882 = vmatprep.subr.mxu1 %v8225_v0 }
 0x38b   :  { %1173 = vmatpush1.msra.mxu0 %v6144_v60  ;;  %4883 = vmatpush3.msra.mxu1 %v6245_v31 }
 0x38c   :  { %1174 = vmatprep.subr.mxu0 %v6150_v63  ;;  %4884 = vmatprep.subr.mxu1 %v8225_v0 }
 0x38d   :  { %1175 = vmatpush1.msra.mxu0 %v6153_v1  ;;  %4885 = vmatpush3.msra.mxu1 %v6251_v32  ;;  %v8252_v1 = vld [vmem:[#allocation36_spill] sm:$0xff] }
 0x38e   :  { %1176 = vmatprep.subr.mxu0 %v6156_v2  ;;  %4886 = vmatprep.subr.mxu1 %v8225_v0 }
 0x38f   :  { %1177 = vmatpush1.msra.mxu0 %v6160_v3  ;;  %4887 = vmatpush3.msra.mxu1 %v6255_v33 }
 0x390   :  { %1178 = vmatprep.subr.mxu0 %v6166_v6  ;;  %4888 = vmatprep.subr.mxu1 %v8225_v0 }
 0x391   :  { %1179 = vmatpush1.msra.mxu0 %v6169_v7  ;;  %4889 = vmatpush3.msra.mxu1 %v6261_v34  ;;  %v8253_v7 = vld [vmem:[#allocation37_spill] sm:$0xff] }
 0x392   :  { %1180 = vmatprep.subr.mxu0 %v6172_v8  ;;  %4890 = vmatprep.subr.mxu1 %v8225_v0 }
 0x393   :  { %1181 = vmatpush1.msra.mxu0 %v6176_v9  ;;  %4891 = vmatpush3.msra.mxu1 %v6267_v35 }
 0x394   :  { %1182 = vmatprep.subr.mxu0 %v6180_v12  ;;  %4892 = vmatprep.subr.mxu1 %v8225_v0 }
 0x395   :  { %1183 = vmatpush1.msra.mxu0 %v6183_v13  ;;  %4893 = vmatpush3.msra.mxu1 %v6273_v36 }
 0x396   :  { %1184 = vmatprep.subr.mxu0 %v6186_v14  ;;  %4894 = vmatprep.subr.mxu1 %v8225_v0 }
 0x397   :  { %1185 = vmatpush1.msra.mxu0 %v6189_v15  ;;  %4895 = vmatpush3.msra.mxu1 %v6279_v37 }
 0x398   :  { %1186 = vmatprep.subr.mxu0 %v6193_v17  ;;  %4896 = vmatprep.subr.mxu1 %v8225_v0 }
 0x399   :  { %1187 = vmatpush1.msra.mxu0 %v6196_v18  ;;  %4897 = vmatpush3.msra.mxu1 %v6285_v38 }
 0x39a   :  { %1188 = vmatprep.subr.mxu0 %v6199_v19  ;;  %4898 = vmatprep.subr.mxu1 %v8225_v0 }
 0x39b   :  { %1189 = vmatpush1.msra.mxu0 %v8226_v20  ;;  %4899 = vmatpush3.msra.mxu1 %v8227_v45 }
 0x39c   :  { %1190 = vmatprep.subr.mxu0 %v8228_v40  ;;  %4900 = vmatprep.subr.mxu1 %v8225_v0 }
 0x39d   :  { %1191 = vmatpush1.msra.mxu0 %v8240_v46  ;;  %4901 = vmatpush3.msra.mxu1 %v8241_v47  ;;  %v6679_v46 = vld [vmem:[#allocation9 + $0x178] sm:$0xff] }
 0x39e   :  { %1192 = vmatprep.subr.mxu0 %v8242_v48  ;;  %4902 = vmatprep.subr.mxu1 %v8225_v0  ;;  %v6685_v48 = vld [vmem:[#allocation9 + $0x160] sm:$0xff] }
 0x39f   :  { %1193 = vmatpush1.msra.mxu0 %v8243_v51  ;;  %1226 = vmatprep.mubr.f32.mxu0 %v8225_v0  ;;  %v6691_v51 = vld [vmem:[#allocation9 + $0x148] sm:$0xff] }
 0x3a0   :  { %4903 = vmatpush3.msra.mxu1 %v8244_v52  ;;  %4904 = vmatprep.mubr.msk.f32.mxu1 %vm6015_vm0, %v8225_v0 }
 0x3a1   :  { %1328 = vmatprep.subr.mxu0 %v6663_v53  ;;  %4907 = vmatprep.subr.mxu1 %v8225_v0 }
 0x440   :  { %v1062_v54 = vpop.f32.mrf.mxu0  ;;  %v1133_v57 = vpop.f32.mrf.mxu1 }
 0x441   :  { %v1063_v59 = vadd.f32 %v1062_v54, %v8251_v58  ;;  %v1134_v17 = vadd.f32 %v1133_v57, %v6425_v56  ;;  %v6736_v54 = vld [vmem:[#allocation9 + $0xc0] sm:$0xff]  ;;  %v6740_v57 = vld [vmem:[#allocation9 + $0xb0] sm:$0xff] }
 0x442   :  { %v1064_v60 = vpop.f32.mrf.mxu0  ;;  %v4871_v63 = vpop.f32.mrf.mxu1 }
 0x443   :  { %v1137_v2 = vadd.f32 %v1063_v59, %v8252_v1  ;;  %v1065_v6 = vadd.f32 %v1064_v60, %v6409_v23  ;;  %v6744_v59 = vld [vmem:[#allocation9 + $0xa8] sm:$0xff]  ;;  %v6752_v60 = vld [vmem:[#allocation9 + $0x90] sm:$0xff]  ;;  %v6760_v63 = vld [vmem:[#allocation9 + $0x78] sm:$0xff] }
 0x444   :  { %v6768_v1 = vld [vmem:[#allocation9 + $0x60] sm:$0xff] }
 0x445   :  { %v4218_v3 = vmul.f32 -1.442695, %v1137_v2  ;;  %v1144_v8 = vadd.f32 %v1065_v6, %v8253_v7  ;;  %v6776_v2 = vld [vmem:[#allocation9 + $0x48] sm:$0xff]  ;;  %v6792_v6 = vld [vmem:[#allocation9 + $0x18] sm:$0xff]  ;;  %v6800_v7 = vld [vmem:[#allocation9] sm:$0xff] }
 0x446   :  { %8256 = vst [vmem:[#allocation32_spill] sm:$0xff] %v6792_v6  ;;  %8258 = vst [vmem:[#allocation45_spill] sm:$0xff] %v6800_v7 }
 0x447   :  { %5626 = vpow2.f32 %v4218_v3  ;;  %v4219_v9 = vmul.f32 -1.442695, %v1144_v8  ;;  %v6784_v3 = vld [vmem:[#allocation9 + $0x30] sm:$0xff] }
 0x449   :  { %5628 = vpow2.f32 %v4219_v9 }
 0x454   :  { %v5627_v12 = vpop.eup %5626 }
 0x455   :  { %v1141_v13 = vadd.f32 1.0, %v5627_v12 }
 0x456   :  { %v5629_v14 = vpop.eup %5628 }
 0x457   :  { %5630 = vrcp.f32 %v1141_v13  ;;  %v1148_v15 = vadd.f32 1.0, %v5629_v14  ;;  %v8259_v13 = vld [vmem:[#allocation38_spill] sm:$0xff] }
 0x459   :  { %5632 = vrcp.f32 %v1148_v15 }
 0x464   :  { %v5631_v18 = vpop.eup %5630 }
 0x465   :  { %v1151_v19 = vmul.f32 %v5631_v18, %v1134_v17 }
 0x466   :  { %v5633_v28 = vpop.eup %5632 }
 0x467   :  { %v1152_v27 = vadd.f32 %v1151_v19, %v8254_v21  ;;  %v1154_v29 = vsub.f32 1.0, %v5633_v28  ;;  %v1156_v20 = vmul.f32 %v5633_v28, %v6584_v24  ;;  %v8265_v24 = vld [vmem:[#allocation42_spill] sm:$0xff] }
 0x469   :  { %5634 = vtanh.f32 %v1152_v27 }
 0x476   :  { %v5635_v30 = vpop.eup %5634 }
 0x477   :  { %v1155_v31 = vmul.f32 %v5635_v30, %v1154_v29 }
 0x479   :  { %v6674_v40 = vadd.f32 %v1156_v20, %v1155_v31 }
 0x47b   :  { %8255 = vst [vmem:[#allocation23_spill] sm:$0xff] %v6674_v40  ;;  %1227 = vmatmul.mubr.f32.vlgmr.msra.gmra.mxu0 %v6674_v40  ;;  %4905 = vmatmul.mubr.f32.vlgmr.msra.gmra.mxu1 %v6674_v40 }
 0x47c   :  { %1329 = vmatpush1.msra.mxu0 %v6588_v10  ;;  %4908 = vmatpush3.msra.mxu1 %v6679_v46 }
 0x47d   :  { %1330 = vmatprep.subr.mxu0 %v6592_v62  ;;  %4909 = vmatprep.subr.mxu1 %v8225_v0 }
 0x47e   :  { %1331 = vmatpush1.msra.mxu0 %v6596_v4  ;;  %4910 = vmatpush3.msra.mxu1 %v6685_v48 }
 0x47f   :  { %1332 = vmatprep.subr.mxu0 %v6600_v16  ;;  %4911 = vmatprep.subr.mxu1 %v8225_v0 }
 0x480   :  { %1333 = vmatpush1.msra.mxu0 %v6604_v25  ;;  %4912 = vmatpush3.msra.mxu1 %v6691_v51 }
 0x481   :  { %1334 = vmatprep.subr.mxu0 %v6694_v50  ;;  %4913 = vmatprep.subr.mxu1 %v8225_v0 }
 0x482   :  { %1335 = vmatpush1.msra.mxu0 %v6698_v26  ;;  %4914 = vmatpush3.msra.mxu1 %v6701_v39 }
 0x483   :  { %1336 = vmatprep.subr.mxu0 %v6704_v43  ;;  %4915 = vmatprep.subr.mxu1 %v8225_v0 }
 0x484   :  { %1337 = vmatpush1.msra.mxu0 %v6708_v11  ;;  %4916 = vmatpush3.msra.mxu1 %v6711_v49 }
 0x485   :  { %1338 = vmatprep.subr.mxu0 %v6714_v44  ;;  %4917 = vmatprep.subr.mxu1 %v8225_v0 }
 0x486   :  { %1339 = vmatpush1.msra.mxu0 %v6718_v61  ;;  %4918 = vmatpush3.msra.mxu1 %v6721_v42 }
 0x487   :  { %1340 = vmatprep.subr.mxu0 %v6724_v41  ;;  %4919 = vmatprep.subr.mxu1 %v8225_v0 }
 0x488   :  { %1341 = vmatpush1.msra.mxu0 %v6728_v22  ;;  %4920 = vmatpush3.msra.mxu1 %v6251_v32  ;;  %v6748_v32 = vld [vmem:[#allocation9 + $0x98] sm:$0xff] }
 0x489   :  { %1342 = vmatprep.subr.mxu0 %v6732_v5  ;;  %4921 = vmatprep.subr.mxu1 %v8225_v0 }
 0x48a   :  { %1343 = vmatpush1.msra.mxu0 %v6736_v54  ;;  %4922 = vmatpush3.msra.mxu1 %v6255_v33  ;;  %v6756_v33 = vld [vmem:[#allocation9 + $0x80] sm:$0xff] }
 0x48b   :  { %1344 = vmatprep.subr.mxu0 %v6740_v57  ;;  %4923 = vmatprep.subr.mxu1 %v8225_v0 }
 0x48c   :  { %1345 = vmatpush1.msra.mxu0 %v6744_v59  ;;  %4924 = vmatpush3.msra.mxu1 %v6261_v34  ;;  %v6764_v34 = vld [vmem:[#allocation9 + $0x68] sm:$0xff] }
 0x48d   :  { %1346 = vmatprep.subr.mxu0 %v6748_v32  ;;  %4925 = vmatprep.subr.mxu1 %v8225_v0 }
 0x48e   :  { %1347 = vmatpush1.msra.mxu0 %v6752_v60  ;;  %4926 = vmatpush3.msra.mxu1 %v6267_v35  ;;  %v6772_v35 = vld [vmem:[#allocation9 + $0x50] sm:$0xff] }
 0x48f   :  { %1348 = vmatprep.subr.mxu0 %v6756_v33  ;;  %4927 = vmatprep.subr.mxu1 %v8225_v0 }
 0x490   :  { %1349 = vmatpush1.msra.mxu0 %v6760_v63  ;;  %4928 = vmatpush3.msra.mxu1 %v6273_v36  ;;  %v6780_v36 = vld [vmem:[#allocation9 + $0x38] sm:$0xff] }
 0x491   :  { %1350 = vmatprep.subr.mxu0 %v6764_v34  ;;  %4929 = vmatprep.subr.mxu1 %v8225_v0 }
 0x492   :  { %1351 = vmatpush1.msra.mxu0 %v6768_v1  ;;  %4930 = vmatpush3.msra.mxu1 %v6279_v37  ;;  %v6788_v37 = vld [vmem:[#allocation9 + $0x20] sm:$0xff] }
 0x493   :  { %1352 = vmatprep.subr.mxu0 %v6772_v35  ;;  %4931 = vmatprep.subr.mxu1 %v8225_v0 }
 0x494   :  { %1353 = vmatpush1.msra.mxu0 %v6776_v2  ;;  %4932 = vmatpush3.msra.mxu1 %v6285_v38  ;;  %v6796_v38 = vld [vmem:[#allocation9 + $0x8] sm:$0xff] }
 0x495   :  { %1354 = vmatprep.subr.mxu0 %v6780_v36  ;;  %4933 = vmatprep.subr.mxu1 %v8225_v0  ;;  %8257 = vst [vmem:[#allocation33_spill] sm:$0xff] %v6796_v38 }
 0x496   :  { %1355 = vmatpush1.msra.mxu0 %v6784_v3  ;;  %4934 = vmatpush3.msra.mxu1 %v8227_v45 }
 0x497   :  { %1356 = vmatprep.subr.mxu0 %v6788_v37  ;;  %4935 = vmatprep.subr.mxu1 %v8225_v0 }
 0x498   :  { %1357 = vmatpush1.msra.mxu0 %v6792_v6  ;;  %4936 = vmatpush3.msra.mxu1 %v8241_v47 }
 0x499   :  { %1358 = vmatprep.subr.mxu0 %v6796_v38  ;;  %4937 = vmatprep.subr.mxu1 %v8225_v0 }
 0x49a   :  { %1359 = vmatpush1.msra.mxu0 %v6800_v7  ;;  %1392 = vmatprep.mubr.f32.mxu0 %v8225_v0 }
 0x49b   :  { %4938 = vmatpush3.msra.mxu1 %v8244_v52  ;;  %4939 = vmatprep.mubr.msk.f32.mxu1 %vm6015_vm0, %v8225_v0  ;;  %v8260_v52 = vld [vmem:[#allocation39_spill] sm:$0xff] }
 0x49c   :  { %1494 = vmatprep.subr.mxu0 %v6663_v53  ;;  %4942 = vmatprep.subr.mxu1 %v8225_v0 }
 0x53b   :  { %v1228_v45 = vpop.f32.mrf.mxu0  ;;  %v1299_v47 = vpop.f32.mrf.mxu1 }
 0x53c   :  { %v1229_v8 = vadd.f32 %v1228_v45, %v8251_v58  ;;  %v1300_v30 = vadd.f32 %v1299_v47, %v6425_v56  ;;  %v8261_v45 = vld [vmem:[#allocation52_spill] sm:$0xff]  ;;  %v6845_v47 = vld [vmem:[#allocation9 + $0xe8] sm:$0xff] }
 0x53d   :  { %v1230_v9 = vpop.f32.mrf.mxu0  ;;  %v4906_v12 = vpop.f32.mrf.mxu1 }
 0x53e   :  { %v1303_v14 = vadd.f32 %v1229_v8, %v8259_v13  ;;  %v1231_v17 = vadd.f32 %v1230_v9, %v6409_v23 }
 0x540   :  { %v4220_v15 = vmul.f32 -1.442695, %v1303_v14  ;;  %v1310_v18 = vadd.f32 %v1231_v17, %v8260_v52  ;;  %v6851_v52 = vld [vmem:[#allocation9 + $0xd0] sm:$0xff] }
 0x542   :  { %5636 = vpow2.f32 %v4220_v15  ;;  %v4221_v19 = vmul.f32 -1.442695, %v1310_v18  ;;  %v6857_v18 = vld [vmem:[#allocation9 + $0xb8] sm:$0xff] }
 0x544   :  { %5638 = vpow2.f32 %v4221_v19  ;;  %v6863_v19 = vld [vmem:[#allocation9 + $0xa0] sm:$0xff] }
 0x54f   :  { %v5637_v21 = vpop.eup %5636 }
 0x550   :  { %v1307_v27 = vadd.f32 1.0, %v5637_v21  ;;  %v6869_v21 = vld [vmem:[#allocation9 + $0x88] sm:$0xff] }
 0x551   :  { %v5639_v28 = vpop.eup %5638 }
 0x552   :  { %5640 = vrcp.f32 %v1307_v27  ;;  %v1314_v29 = vadd.f32 1.0, %v5639_v28  ;;  %v6875_v27 = vld [vmem:[#allocation9 + $0x70] sm:$0xff]  ;;  %v6881_v28 = vld [vmem:[#allocation9 + $0x58] sm:$0xff] }
 0x554   :  { %5642 = vrcp.f32 %v1314_v29  ;;  %v6887_v29 = vld [vmem:[#allocation9 + $0x40] sm:$0xff] }
 0x55f   :  { %v5641_v31 = vpop.eup %5640 }
 0x560   :  { %v1317_v20 = vmul.f32 %v5641_v31, %v1300_v30  ;;  %v6893_v30 = vld [vmem:[#allocation9 + $0x28] sm:$0xff]  ;;  %v6900_v31 = vld [vmem:[#allocation9 + $0x10] sm:$0xff] }
 0x561   :  { %v5643_v12 = vpop.eup %5642  ;;  %8262 = vst [vmem:[#allocation24_spill] sm:$0xff] %v6893_v30  ;;  %8263 = vst [vmem:[#allocation28_spill] sm:$0xff] %v6900_v31 }
 0x562   :  { %v1318_v8 = vadd.f32 %v1317_v20, %v8261_v45  ;;  %v1320_v9 = vsub.f32 1.0, %v5643_v12  ;;  %v1322_v15 = vmul.f32 %v5643_v12, %v6674_v40 }
 0x564   :  { %5644 = vtanh.f32 %v1318_v8 }
 0x571   :  { %v5645_v13 = vpop.eup %5644 }
 0x572   :  { %v1321_v14 = vmul.f32 %v5645_v13, %v1320_v9  ;;  %v8264_v13 = vld [vmem:[#allocation41_spill] sm:$0xff] }
 0x574   :  { %v6816_v17 = vadd.f32 %v1322_v15, %v1321_v14 }
 0x576   :  { %1393 = vmatmul.mubr.f32.vlgmr.msra.gmra.mxu0 %v6816_v17  ;;  %4940 = vmatmul.mubr.f32.vlgmr.msra.gmra.mxu1 %v6816_v17 }
 0x577   :  { %1495 = vmatpush1.msra.mxu0 %v6588_v10  ;;  %4943 = vmatpush3.msra.mxu1 %v6679_v46 }
 0x578   :  { %1496 = vmatprep.subr.mxu0 %v6592_v62  ;;  %4944 = vmatprep.subr.mxu1 %v8225_v0 }
 0x579   :  { %1497 = vmatpush1.msra.mxu0 %v6596_v4  ;;  %4945 = vmatpush3.msra.mxu1 %v6685_v48 }
 0x57a   :  { %1498 = vmatprep.subr.mxu0 %v6600_v16  ;;  %4946 = vmatprep.subr.mxu1 %v8225_v0 }
 0x57b   :  { %1499 = vmatpush1.msra.mxu0 %v6604_v25  ;;  %4947 = vmatpush3.msra.mxu1 %v6691_v51 }
 0x57c   :  { %1500 = vmatprep.subr.mxu0 %v6694_v50  ;;  %4948 = vmatprep.subr.mxu1 %v8225_v0 }
 0x57d   :  { %1501 = vmatpush1.msra.mxu0 %v6698_v26  ;;  %4949 = vmatpush3.msra.mxu1 %v6701_v39 }
 0x57e   :  { %1502 = vmatprep.subr.mxu0 %v6704_v43  ;;  %4950 = vmatprep.subr.mxu1 %v8225_v0 }
 0x57f   :  { %1503 = vmatpush1.msra.mxu0 %v6708_v11  ;;  %4951 = vmatpush3.msra.mxu1 %v6711_v49 }
 0x580   :  { %1504 = vmatprep.subr.mxu0 %v6714_v44  ;;  %4952 = vmatprep.subr.mxu1 %v8225_v0 }
 0x581   :  { %1505 = vmatpush1.msra.mxu0 %v6718_v61  ;;  %4953 = vmatpush3.msra.mxu1 %v6721_v42 }
 0x582   :  { %1506 = vmatprep.subr.mxu0 %v6724_v41  ;;  %4954 = vmatprep.subr.mxu1 %v8225_v0 }
 0x583   :  { %1507 = vmatpush1.msra.mxu0 %v6728_v22  ;;  %4955 = vmatpush3.msra.mxu1 %v6845_v47 }
 0x584   :  { %1508 = vmatprep.subr.mxu0 %v6732_v5  ;;  %4956 = vmatprep.subr.mxu1 %v8225_v0 }
 0x585   :  { %1509 = vmatpush1.msra.mxu0 %v6736_v54  ;;  %4957 = vmatpush3.msra.mxu1 %v6851_v52 }
 0x586   :  { %1510 = vmatprep.subr.mxu0 %v6740_v57  ;;  %4958 = vmatprep.subr.mxu1 %v8225_v0 }
 0x587   :  { %1511 = vmatpush1.msra.mxu0 %v6744_v59  ;;  %4959 = vmatpush3.msra.mxu1 %v6857_v18 }
 0x588   :  { %1512 = vmatprep.subr.mxu0 %v6748_v32  ;;  %4960 = vmatprep.subr.mxu1 %v8225_v0 }
 0x589   :  { %1513 = vmatpush1.msra.mxu0 %v6752_v60  ;;  %4961 = vmatpush3.msra.mxu1 %v6863_v19 }
 0x58a   :  { %1514 = vmatprep.subr.mxu0 %v6756_v33  ;;  %4962 = vmatprep.subr.mxu1 %v8225_v0 }
 0x58b   :  { %1515 = vmatpush1.msra.mxu0 %v6760_v63  ;;  %4963 = vmatpush3.msra.mxu1 %v6869_v21 }
 0x58c   :  { %1516 = vmatprep.subr.mxu0 %v6764_v34  ;;  %4964 = vmatprep.subr.mxu1 %v8225_v0 }
 0x58d   :  { %1517 = vmatpush1.msra.mxu0 %v6768_v1  ;;  %4965 = vmatpush3.msra.mxu1 %v6875_v27 }
 0x58e   :  { %1518 = vmatprep.subr.mxu0 %v6772_v35  ;;  %4966 = vmatprep.subr.mxu1 %v8225_v0 }
 0x58f   :  { %1519 = vmatpush1.msra.mxu0 %v6776_v2  ;;  %4967 = vmatpush3.msra.mxu1 %v6881_v28 }
 0x590   :  { %1520 = vmatprep.subr.mxu0 %v6780_v36  ;;  %4968 = vmatprep.subr.mxu1 %v8225_v0 }
 0x591   :  { %1521 = vmatpush1.msra.mxu0 %v6784_v3  ;;  %4969 = vmatpush3.msra.mxu1 %v6887_v29 }
 0x592   :  { %1522 = vmatprep.subr.mxu0 %v6788_v37  ;;  %4970 = vmatprep.subr.mxu1 %v8225_v0 }
 0x593   :  { %1523 = vmatpush1.msra.mxu0 %v6792_v6  ;;  %4971 = vmatpush3.msra.mxu1 %v6893_v30 }
 0x594   :  { %1524 = vmatprep.subr.mxu0 %v6796_v38  ;;  %4972 = vmatprep.subr.mxu1 %v8225_v0 }
 0x595   :  { %1525 = vmatpush1.msra.mxu0 %v6800_v7  ;;  %1558 = vmatprep.mubr.f32.mxu0 %v8225_v0 }
 0x596   :  { %4973 = vmatpush3.msra.mxu1 %v6900_v31  ;;  %4974 = vmatprep.mubr.msk.f32.mxu1 %vm6015_vm0, %v8225_v0 }
 0x597   :  { %1660 = vmatprep.subr.mxu0 %v6663_v53  ;;  %4977 = vmatprep.subr.mxu1 %v8225_v0 }
 0x636   :  { %v1394_v20 = vpop.f32.mrf.mxu0  ;;  %v1465_v45 = vpop.f32.mrf.mxu1 }
 0x637   :  { %v1395_v8 = vadd.f32 %v1394_v20, %v8251_v58  ;;  %v1466_v6 = vadd.f32 %v1465_v45, %v6425_v56  ;;  %v1863_v45 = vld [vmem:[#allocation7 + $0x278] sm:$0xff] }
 0x638   :  { %v1396_v12 = vpop.f32.mrf.mxu0  ;;  %v4941_v9 = vpop.f32.mrf.mxu1 }
 0x639   :  { %v1469_v14 = vadd.f32 %v1395_v8, %v8264_v13  ;;  %v1397_v40 = vadd.f32 %v1396_v12, %v6409_v23  ;;  %v8266_v9 = vld [vmem:[#allocation51_spill] sm:$0xff] }
 0x63b   :  { %v4222_v15 = vmul.f32 -1.442695, %v1469_v14  ;;  %v1476_v55 = vadd.f32 %v1397_v40, %v8265_v24  ;;  %v1879_v40 = vld [vmem:[#allocation7 + $0x2f8] sm:$0xff] }
 0x63d   :  { %5646 = vpow2.f32 %v4222_v15  ;;  %v4223_v31 = vmul.f32 -1.442695, %v1476_v55 }
 0x63f   :  { %5648 = vpow2.f32 %v4223_v31  ;;  %v1865_v31 = vld [vmem:[#allocation7 + $0x288] sm:$0xff] }
 0x64a   :  { %v5647_v7 = vpop.eup %5646 }
 0x64b   :  { %v1473_v53 = vadd.f32 1.0, %v5647_v7  ;;  %v1874_v7 = vld [vmem:[#allocation7 + $0x2d0] sm:$0xff] }
 0x64c   :  { %v5649_v38 = vpop.eup %5648 }
 0x64d   :  { %5650 = vrcp.f32 %v1473_v53  ;;  %v1480_v30 = vadd.f32 1.0, %v5649_v38  ;;  %v1876_v38 = vld [vmem:[#allocation7 + $0x2e0] sm:$0xff] }
 0x64e   :  { %v1864_v53 = vld [vmem:[#allocation7 + $0x280] sm:$0xff] }
 0x64f   :  { %5652 = vrcp.f32 %v1480_v30  ;;  %v1867_v30 = vld [vmem:[#allocation7 + $0x298] sm:$0xff] }
 0x65a   :  { %v5651_v20 = vpop.eup %5650 }
 0x65b   :  { %v1483_v58 = vmul.f32 %v5651_v20, %v1466_v6  ;;  %v1875_v6 = vld [vmem:[#allocation7 + $0x2d8] sm:$0xff]  ;;  %v1862_v20 = vld [vmem:[#allocation7 + $0x270] sm:$0xff] }
 0x65c   :  { %v5653_v13 = vpop.eup %5652 }
 0x65d   :  { %v1484_v8 = vadd.f32 %v1483_v58, %v8266_v9  ;;  %v1486_v12 = vsub.f32 1.0, %v5653_v13  ;;  %v1488_v55 = vmul.f32 %v5653_v13, %v6816_v17  ;;  %v1878_v58 = vld [vmem:[#allocation7 + $0x2f0] sm:$0xff]  ;;  %v1860_v9 = vld [vmem:[#allocation7 + $0x260] sm:$0xff]  ;;  %v1859_v13 = vld [vmem:[#allocation7 + $0x258] sm:$0xff] }
 0x65f   :  { %5654 = vtanh.f32 %v1484_v8  ;;  %v1861_v8 = vld [vmem:[#allocation7 + $0x268] sm:$0xff] }
 0x66c   :  { %v5655_v14 = vpop.eup %5654 }
 0x66d   :  { %v1487_v15 = vmul.f32 %v5655_v14, %v1486_v12  ;;  %v1857_v12 = vld [vmem:[#allocation7 + $0x248] sm:$0xff]  ;;  %v1858_v14 = vld [vmem:[#allocation7 + $0x250] sm:$0xff] }
 0x66f   :  { %v6914_v24 = vadd.f32 %v1488_v55, %v1487_v15  ;;  %v1856_v15 = vld [vmem:[#allocation7 + $0x240] sm:$0xff]  ;;  %v1854_v55 = vld [vmem:[#allocation7 + $0x230] sm:$0xff] }
 0x671   :  { %1559 = vmatmul.mubr.f32.vlgmr.msra.gmra.mxu0 %v6914_v24  ;;  %4975 = vmatmul.mubr.f32.vlgmr.msra.gmra.mxu1 %v6914_v24 }
 0x672   :  { %1661 = vmatpush1.msra.mxu0 %v6588_v10  ;;  %4978 = vmatpush3.msra.mxu1 %v6679_v46  ;;  %v8267_v10 = vld [vmem:[#allocation32_spill] sm:$0xff] }
 0x673   :  { %1662 = vmatprep.subr.mxu0 %v6592_v62  ;;  %4979 = vmatprep.subr.mxu1 %v8225_v0  ;;  %v8268_v62 = vld [vmem:[#allocation24_spill] sm:$0xff] }
 0x674   :  { %1663 = vmatpush1.msra.mxu0 %v6596_v4  ;;  %4980 = vmatpush3.msra.mxu1 %v6685_v48  ;;  %v8269_v4 = vld [vmem:[#allocation33_spill] sm:$0xff] }
 0x675   :  { %1664 = vmatprep.subr.mxu0 %v6600_v16  ;;  %4981 = vmatprep.subr.mxu1 %v8225_v0  ;;  %v8270_v16 = vld [vmem:[#allocation45_spill] sm:$0xff] }
 0x676   :  { %1665 = vmatpush1.msra.mxu0 %v6604_v25  ;;  %4982 = vmatpush3.msra.mxu1 %v6691_v51  ;;  %v8271_v25 = vld [vmem:[#allocation28_spill] sm:$0xff]  ;;  %v8272_v51 = vld [vmem:[#allocation47_spill] sm:$0xff] }
 0x677   :  { %1666 = vmatprep.subr.mxu0 %v6694_v50  ;;  %4983 = vmatprep.subr.mxu1 %v8225_v0 }
 0x678   :  { %1667 = vmatpush1.msra.mxu0 %v6698_v26  ;;  %4984 = vmatpush3.msra.mxu1 %v6701_v39 }
 0x679   :  { %1668 = vmatprep.subr.mxu0 %v6704_v43  ;;  %4985 = vmatprep.subr.mxu1 %v8225_v0  ;;  %v8273_v43 = vld [vmem:[#allocation43_spill] sm:$0xff] }
 0x67a   :  { %1669 = vmatpush1.msra.mxu0 %v6708_v11  ;;  %4986 = vmatpush3.msra.mxu1 %v6711_v49 }
 0x67b   :  { %1670 = vmatprep.subr.mxu0 %v6714_v44  ;;  %4987 = vmatprep.subr.mxu1 %v8225_v0 }
 0x67c   :  { %1671 = vmatpush1.msra.mxu0 %v6718_v61  ;;  %4988 = vmatpush3.msra.mxu1 %v6721_v42  ;;  %v8274_v61 = vld [vmem:[#allocation44_spill] sm:$0xff] }
 0x67d   :  { %1672 = vmatprep.subr.mxu0 %v6724_v41  ;;  %4989 = vmatprep.subr.mxu1 %v8225_v0 }
 0x67e   :  { %1673 = vmatpush1.msra.mxu0 %v6728_v22  ;;  %4990 = vmatpush3.msra.mxu1 %v6845_v47  ;;  %v1872_v47 = vld [vmem:[#allocation7 + $0x2c0] sm:$0xff] }
 0x67f   :  { %1674 = vmatprep.subr.mxu0 %v6732_v5  ;;  %4991 = vmatprep.subr.mxu1 %v8225_v0 }
 0x680   :  { %1675 = vmatpush1.msra.mxu0 %v6736_v54  ;;  %4992 = vmatpush3.msra.mxu1 %v6851_v52  ;;  %v1873_v52 = vld [vmem:[#allocation7 + $0x2c8] sm:$0xff] }
 0x681   :  { %1676 = vmatprep.subr.mxu0 %v6740_v57  ;;  %4993 = vmatprep.subr.mxu1 %v8225_v0 }
 0x682   :  { %1677 = vmatpush1.msra.mxu0 %v6744_v59  ;;  %4994 = vmatpush3.msra.mxu1 %v6857_v18  ;;  %v1871_v18 = vld [vmem:[#allocation7 + $0x2b8] sm:$0xff] }
 0x683   :  { %1678 = vmatprep.subr.mxu0 %v6748_v32  ;;  %4995 = vmatprep.subr.mxu1 %v8225_v0 }
 0x684   :  { %1679 = vmatpush1.msra.mxu0 %v6752_v60  ;;  %4996 = vmatpush3.msra.mxu1 %v6863_v19  ;;  %v8276_v19 = vld [vmem:[#allocation55_spill] sm:$0xff] }
 0x685   :  { %1680 = vmatprep.subr.mxu0 %v6756_v33  ;;  %4997 = vmatprep.subr.mxu1 %v8225_v0  ;;  %v8275_v33 = vld [vmem:[#allocation54_spill] sm:$0xff] }
 0x686   :  { %1681 = vmatpush1.msra.mxu0 %v6760_v63  ;;  %4998 = vmatpush3.msra.mxu1 %v6869_v21  ;;  %v1869_v21 = vld [vmem:[#allocation7 + $0x2a8] sm:$0xff] }
 0x687   :  { %1682 = vmatprep.subr.mxu0 %v6764_v34  ;;  %4999 = vmatprep.subr.mxu1 %v8225_v0 }
 0x688   :  { %1683 = vmatpush1.msra.mxu0 %v6768_v1  ;;  %5000 = vmatpush3.msra.mxu1 %v6875_v27  ;;  %v1870_v27 = vld [vmem:[#allocation7 + $0x2b0] sm:$0xff] }
 0x689   :  { %1684 = vmatprep.subr.mxu0 %v6772_v35  ;;  %5001 = vmatprep.subr.mxu1 %v8225_v0 }
 0x68a   :  { %1685 = vmatpush1.msra.mxu0 %v6776_v2  ;;  %5002 = vmatpush3.msra.mxu1 %v6881_v28  ;;  %v1868_v28 = vld [vmem:[#allocation7 + $0x2a0] sm:$0xff] }
 0x68b   :  { %1686 = vmatprep.subr.mxu0 %v6780_v36  ;;  %5003 = vmatprep.subr.mxu1 %v8225_v0 }
 0x68c   :  { %1687 = vmatpush1.msra.mxu0 %v6784_v3  ;;  %5004 = vmatpush3.msra.mxu1 %v6887_v29  ;;  %v1866_v29 = vld [vmem:[#allocation7 + $0x290] sm:$0xff] }
 0x68d   :  { %1688 = vmatprep.subr.mxu0 %v6788_v37  ;;  %5005 = vmatprep.subr.mxu1 %v8225_v0  ;;  %v1877_v37 = vld [vmem:[#allocation7 + $0x2e8] sm:$0xff] }
 0x68e   :  { %1689 = vmatpush1.msra.mxu0 %v8267_v10  ;;  %5006 = vmatpush3.msra.mxu1 %v8268_v62  ;;  %v1855_v10 = vld [vmem:[#allocation7 + $0x238] sm:$0xff]  ;;  %v1853_v62 = vld [vmem:[#allocation7 + $0x228] sm:$0xff] }
 0x68f   :  { %1690 = vmatprep.subr.mxu0 %v8269_v4  ;;  %5007 = vmatprep.subr.mxu1 %v8225_v0  ;;  %v1851_v4 = vld [vmem:[#allocation7 + $0x218] sm:$0xff] }
 0x690   :  { %1691 = vmatpush1.msra.mxu0 %v8270_v16  ;;  %5008 = vmatpush3.msra.mxu1 %v8271_v25  ;;  %v1852_v16 = vld [vmem:[#allocation7 + $0x220] sm:$0xff]  ;;  %v1850_v25 = vld [vmem:[#allocation7 + $0x210] sm:$0xff] }
 0x691   :  { %1724 = vmatprep.mubr.f32.mxu0 %v8225_v0  ;;  %5009 = vmatprep.mubr.msk.f32.mxu1 %vm6015_vm0, %v8225_v0 }
 0x692   :  { %1898 = vmatprep.subr.mxu0 %v1878_v58  ;;  %5012 = vmatprep.subr.mxu1 %v1879_v40  ;;  %v1848_v58 = vld [vmem:[#allocation7 + $0x200] sm:$0xff] }
 0x731   :  { %v1560_v46 = vpop.f32.mrf.mxu0  ;;  %v1631_v48 = vpop.f32.mrf.mxu1 }
 0x732   :  { %v1561_v50 = vadd.f32 %v1560_v46, %v8272_v51  ;;  %v1632_v59 = vadd.f32 %v1631_v48, %v6425_v56  ;;  %v1847_v46 = vld [vmem:[#allocation7 + $0x1f8] sm:$0xff]  ;;  %v1845_v48 = vld [vmem:[#allocation7 + $0x1e8] sm:$0xff] }
 0x733   :  { %v1562_v26 = vpop.f32.mrf.mxu0  ;;  %v4976_v39 = vpop.f32.mrf.mxu1 }
 0x734   :  { %v1635_v11 = vadd.f32 %v1561_v50, %v8273_v43  ;;  %v1563_v44 = vadd.f32 %v1562_v26, %v6409_v23  ;;  %v1846_v50 = vld [vmem:[#allocation7 + $0x1f0] sm:$0xff]  ;;  %v1844_v26 = vld [vmem:[#allocation7 + $0x1e0] sm:$0xff]  ;;  %v1843_v43 = vld [vmem:[#allocation7 + $0x1d8] sm:$0xff] }
 0x735   :  { %v1842_v39 = vld [vmem:[#allocation7 + $0x1d0] sm:$0xff] }
 0x736   :  { %v4224_v49 = vmul.f32 -1.442695, %v1635_v11  ;;  %v1642_v42 = vadd.f32 %v1563_v44, %v8274_v61  ;;  %v1841_v11 = vld [vmem:[#allocation7 + $0x1c8] sm:$0xff]  ;;  %v1840_v44 = vld [vmem:[#allocation7 + $0x1c0] sm:$0xff]  ;;  %v1838_v61 = vld [vmem:[#allocation7 + $0x1b0] sm:$0xff] }
 0x738   :  { %5656 = vpow2.f32 %v4224_v49  ;;  %v4225_v41 = vmul.f32 -1.442695, %v1642_v42  ;;  %v1839_v49 = vld [vmem:[#allocation7 + $0x1b8] sm:$0xff]  ;;  %v1836_v42 = vld [vmem:[#allocation7 + $0x1a0] sm:$0xff] }
 0x73a   :  { %5658 = vpow2.f32 %v4225_v41  ;;  %v1837_v41 = vld [vmem:[#allocation7 + $0x1a8] sm:$0xff] }
 0x745   :  { %v5657_v22 = vpop.eup %5656 }
 0x746   :  { %v1639_v5 = vadd.f32 1.0, %v5657_v22  ;;  %v1835_v22 = vld [vmem:[#allocation7 + $0x198] sm:$0xff] }
 0x747   :  { %v5659_v54 = vpop.eup %5658 }
 0x748   :  { %5660 = vrcp.f32 %v1639_v5  ;;  %v1646_v57 = vadd.f32 1.0, %v5659_v54  ;;  %v1833_v5 = vld [vmem:[#allocation7 + $0x188] sm:$0xff]  ;;  %v1834_v54 = vld [vmem:[#allocation7 + $0x190] sm:$0xff] }
 0x74a   :  { %5662 = vrcp.f32 %v1646_v57  ;;  %v1832_v57 = vld [vmem:[#allocation7 + $0x180] sm:$0xff] }
 0x755   :  { %v5661_v32 = vpop.eup %5660 }
 0x756   :  { %v1649_v60 = vmul.f32 %v5661_v32, %v1632_v59  ;;  %v8277_v59 = vld [vmem:[#allocation22_spill] sm:$0xff]  ;;  %v8278_v32 = vld [vmem:[#allocation27_spill] sm:$0xff] }
 0x757   :  { %v5663_v34 = vpop.eup %5662 }
 0x758   :  { %v1650_v63 = vadd.f32 %v1649_v60, %v8275_v33  ;;  %v1652_v1 = vsub.f32 1.0, %v5663_v34  ;;  %v1654_v36 = vmul.f32 %v5663_v34, %v6914_v24  ;;  %v8279_v60 = vld [vmem:[#allocation23_spill] sm:$0xff]  ;;  %v7023_v34 = vld [vmem:[#allocation9 + $0x2d8] sm:$0xff] }
 0x759   :  { %v7017_v33 = vld [vmem:[#allocation9 + $0x2f0] sm:$0xff] }
 0x75a   :  { %5664 = vtanh.f32 %v1650_v63  ;;  %8280 = vst [vmem:[#allocation25_spill] sm:$0xff] %v7017_v33  ;;  %v7020_v63 = vld [vmem:[#allocation9 + $0x2e8] sm:$0xff] }
 0x767   :  { %v5665_v35 = vpop.eup %5664 }
 0x768   :  { %v1653_v2 = vmul.f32 %v5665_v35, %v1652_v1  ;;  %v7032_v1 = vld [vmem:[#allocation9 + $0x2b8] sm:$0xff]  ;;  %v7035_v35 = vld [vmem:[#allocation9 + $0x2a8] sm:$0xff] }
 0x76a   :  { %v6990_v3 = vadd.f32 %v1654_v36, %v1653_v2  ;;  %v7038_v2 = vld [vmem:[#allocation9 + $0x2a0] sm:$0xff]  ;;  %v7041_v36 = vld [vmem:[#allocation9 + $0x290] sm:$0xff] }
 0x76c   :  { %1725 = vmatmul.mubr.f32.vlgmr.msra.gmra.mxu0 %v6990_v3  ;;  %5010 = vmatmul.mubr.f32.vlgmr.msra.gmra.mxu1 %v6990_v3 }
 0x76d   :  { %1899 = vmatpush1.msra.mxu0 %v1877_v37  ;;  %5013 = vmatpush3.msra.mxu1 %v1879_v40  ;;  %v1849_v40 = vld [vmem:[#allocation7 + $0x208] sm:$0xff] }
 0x76e   :  { %1900 = vmatprep.subr.mxu0 %v1875_v6  ;;  %5014 = vmatprep.subr.mxu1 %v1876_v38  ;;  %v7044_v37 = vld [vmem:[#allocation9 + $0x288] sm:$0xff]  ;;  %v7047_v6 = vld [vmem:[#allocation9 + $0x278] sm:$0xff] }
 0x76f   :  { %5044 = vmatprep.mubr.f32.mxu1 %v8276_v19  ;;  %1901 = vmatpush1.msra.mxu0 %v1874_v7  ;;  %v7053_v7 = vld [vmem:[#allocation9 + $0x260] sm:$0xff] }
 0x770   :  { %5015 = vmatpush3.msra.mxu1 %v1876_v38  ;;  %1902 = vmatprep.subr.mxu0 %v1872_v47  ;;  %v7050_v38 = vld [vmem:[#allocation9 + $0x270] sm:$0xff]  ;;  %v7056_v47 = vld [vmem:[#allocation9 + $0x258] sm:$0xff] }
 0x771   :  { %5016 = vmatprep.subr.mxu1 %v1873_v52  ;;  %1903 = vmatpush1.msra.mxu0 %v1871_v18  ;;  %v7062_v18 = vld [vmem:[#allocation9 + $0x240] sm:$0xff] }
 0x772   :  { %5017 = vmatpush3.msra.mxu1 %v1873_v52  ;;  %1904 = vmatprep.subr.mxu0 %v1869_v21  ;;  %v7059_v52 = vld [vmem:[#allocation9 + $0x248] sm:$0xff] }
 0x773   :  { %5018 = vmatprep.subr.mxu1 %v1870_v27  ;;  %1905 = vmatpush1.msra.mxu0 %v1868_v28  ;;  %v7068_v21 = vld [vmem:[#allocation9 + $0x228] sm:$0xff]  ;;  %v7074_v28 = vld [vmem:[#allocation9 + $0x210] sm:$0xff] }
 0x774   :  { %5019 = vmatpush3.msra.mxu1 %v1870_v27  ;;  %1906 = vmatprep.subr.mxu0 %v1866_v29  ;;  %v7071_v27 = vld [vmem:[#allocation9 + $0x218] sm:$0xff]  ;;  %v7077_v29 = vld [vmem:[#allocation9 + $0x200] sm:$0xff] }
 0x775   :  { %5020 = vmatprep.subr.mxu1 %v1867_v30  ;;  %1907 = vmatpush1.msra.mxu0 %v1865_v31  ;;  %v7083_v31 = vld [vmem:[#allocation9 + $0x1e8] sm:$0xff] }
 0x776   :  { %5021 = vmatpush3.msra.mxu1 %v1867_v30  ;;  %1908 = vmatprep.subr.mxu0 %v1863_v45  ;;  %v7080_v30 = vld [vmem:[#allocation9 + $0x1f8] sm:$0xff]  ;;  %v7086_v45 = vld [vmem:[#allocation9 + $0x1e0] sm:$0xff] }
 0x777   :  { %5022 = vmatprep.subr.mxu1 %v1864_v53  ;;  %1909 = vmatpush1.msra.mxu0 %v1862_v20  ;;  %v7092_v20 = vld [vmem:[#allocation9 + $0x1c8] sm:$0xff] }
 0x778   :  { %5023 = vmatpush3.msra.mxu1 %v1864_v53  ;;  %1910 = vmatprep.subr.mxu0 %v1860_v9  ;;  %v7089_v53 = vld [vmem:[#allocation9 + $0x1d0] sm:$0xff]  ;;  %v7095_v9 = vld [vmem:[#allocation9 + $0x1b8] sm:$0xff] }
 0x779   :  { %5024 = vmatprep.subr.mxu1 %v1861_v8  ;;  %1911 = vmatpush1.msra.mxu0 %v1859_v13  ;;  %v7101_v13 = vld [vmem:[#allocation9 + $0x1a0] sm:$0xff] }
 0x77a   :  { %5025 = vmatpush3.msra.mxu1 %v1861_v8  ;;  %1912 = vmatprep.subr.mxu0 %v1857_v12  ;;  %v7098_v8 = vld [vmem:[#allocation9 + $0x1b0] sm:$0xff]  ;;  %8282 = vst [vmem:[#allocation29_spill] sm:$0xff] %v7101_v13  ;;  %v7103_v12 = vld [vmem:[#allocation9 + $0x198] sm:$0xff] }
 0x77b   :  { %5026 = vmatprep.subr.mxu1 %v1858_v14  ;;  %1913 = vmatpush1.msra.mxu0 %v1856_v15  ;;  %8281 = vst [vmem:[#allocation26_spill] sm:$0xff] %v7098_v8  ;;  %8283 = vst [vmem:[#allocation21_spill] sm:$0xff] %v7103_v12  ;;  %v7108_v15 = vld [vmem:[#allocation9 + $0x180] sm:$0xff] }
 0x77c   :  { %5027 = vmatpush3.msra.mxu1 %v1858_v14  ;;  %1914 = vmatprep.subr.mxu0 %v1854_v55  ;;  %v7105_v14 = vld [vmem:[#allocation9 + $0x188] sm:$0xff]  ;;  %8285 = vst [vmem:[#allocation35_spill] sm:$0xff] %v7108_v15  ;;  %v7112_v55 = vld [vmem:[#allocation9 + $0x2f8] sm:$0xff] }
 0x77d   :  { %5028 = vmatprep.subr.mxu1 %v1855_v10  ;;  %1915 = vmatpush1.msra.mxu0 %v1853_v62  ;;  %8284 = vst [vmem:[#allocation34_spill] sm:$0xff] %v7105_v14  ;;  %v7119_v62 = vld [vmem:[#allocation9 + $0x2c8] sm:$0xff] }
 0x77e   :  { %5029 = vmatpush3.msra.mxu1 %v1855_v10  ;;  %1916 = vmatprep.subr.mxu0 %v1851_v4  ;;  %v7114_v10 = vld [vmem:[#allocation9 + $0x2e0] sm:$0xff]  ;;  %v7124_v4 = vld [vmem:[#allocation9 + $0x2b0] sm:$0xff] }
 0x77f   :  { %5030 = vmatprep.subr.mxu1 %v1852_v16  ;;  %1917 = vmatpush1.msra.mxu0 %v1850_v25  ;;  %v7132_v25 = vld [vmem:[#allocation9 + $0x280] sm:$0xff] }
 0x780   :  { %5031 = vmatpush3.msra.mxu1 %v1852_v16  ;;  %1918 = vmatprep.subr.mxu0 %v1848_v58  ;;  %v7128_v16 = vld [vmem:[#allocation9 + $0x298] sm:$0xff]  ;;  %v7136_v58 = vld [vmem:[#allocation9 + $0x268] sm:$0xff] }
 0x781   :  { %5032 = vmatprep.subr.mxu1 %v1849_v40  ;;  %1919 = vmatpush1.msra.mxu0 %v1847_v46  ;;  %v7144_v46 = vld [vmem:[#allocation9 + $0x238] sm:$0xff] }
 0x782   :  { %5033 = vmatpush3.msra.mxu1 %v1849_v40  ;;  %1920 = vmatprep.subr.mxu0 %v1845_v48  ;;  %v7140_v40 = vld [vmem:[#allocation9 + $0x250] sm:$0xff]  ;;  %v7148_v48 = vld [vmem:[#allocation9 + $0x220] sm:$0xff] }
 0x783   :  { %5034 = vmatprep.subr.mxu1 %v1846_v50  ;;  %1921 = vmatpush1.msra.mxu0 %v1844_v26  ;;  %v7156_v26 = vld [vmem:[#allocation9 + $0x1f0] sm:$0xff] }
 0x784   :  { %5035 = vmatpush3.msra.mxu1 %v1846_v50  ;;  %1922 = vmatprep.subr.mxu0 %v1842_v39  ;;  %v7152_v50 = vld [vmem:[#allocation9 + $0x208] sm:$0xff]  ;;  %v7160_v39 = vld [vmem:[#allocation9 + $0x1d8] sm:$0xff] }
 0x785   :  { %5036 = vmatprep.subr.mxu1 %v1843_v43  ;;  %1923 = vmatpush1.msra.mxu0 %v1841_v11  ;;  %v7168_v11 = vld [vmem:[#allocation9 + $0x1a8] sm:$0xff] }
 0x786   :  { %5037 = vmatpush3.msra.mxu1 %v1843_v43  ;;  %1924 = vmatprep.subr.mxu0 %v1839_v49  ;;  %v7164_v43 = vld [vmem:[#allocation9 + $0x1c0] sm:$0xff]  ;;  %8287 = vst [vmem:[#allocation36_spill] sm:$0xff] %v7168_v11  ;;  %v7172_v49 = vld [vmem:[#allocation9 + $0x190] sm:$0xff] }
 0x787   :  { %5038 = vmatprep.subr.mxu1 %v1840_v44  ;;  %1925 = vmatpush1.msra.mxu0 %v1838_v61  ;;  %8286 = vst [vmem:[#allocation50_spill] sm:$0xff] %v7164_v43  ;;  %8288 = vst [vmem:[#allocation37_spill] sm:$0xff] %v7172_v49 }
 0x788   :  { %5039 = vmatpush3.msra.mxu1 %v1840_v44  ;;  %1926 = vmatprep.subr.mxu0 %v1836_v42 }
 0x789   :  { %5040 = vmatprep.subr.mxu1 %v1837_v41  ;;  %1927 = vmatpush1.msra.mxu0 %v1835_v22 }
 0x78a   :  { %5041 = vmatpush3.msra.mxu1 %v1837_v41  ;;  %1928 = vmatprep.subr.mxu0 %v1833_v5  ;;  %v8289_v5 = vld [vmem:[#allocation46_spill] sm:$0xff] }
 0x78b   :  { %5042 = vmatprep.subr.mxu1 %v1834_v54  ;;  %1929 = vmatpush1.msra.mxu0 %v1832_v57 }
 0x78c   :  { %1962 = vmatprep.mubr.f32.mxu0 %v8225_v0  ;;  %5043 = vmatpush3.msra.mxu1 %v1834_v54 }
 0x78d   :  { %1963 = vmatmul.mubr.f32.vlgmr.msra.gmra.mxu0 %v8276_v19  ;;  %5045 = vmatmul.mubr.f32.vlgmr.msra.gmra.mxu1 %v8277_v59  ;;  %v7065_v19 = vld [vmem:[#allocation9 + $0x230] sm:$0xff] }
 0x78e   :  { %5047 = vmatprep.mubr.f32.mxu1 %v8278_v32  ;;  %1968 = vmatprep.mubr.f32.mxu0 %v8225_v0 }
 0x78f   :  { %5056 = vmatprep.subr.mxu1 %v8225_v0  ;;  %2210 = vmatprep.subr.mxu0 %v7017_v33 }
 0x790   :  { %2211 = vmatpush1.msra.mxu0 %v7020_v63  ;;  %5057 = vmatpush3.msra.mxu1 %v7112_v55 }
 0x791   :  { %1969 = vmatmul.mubr.f32.gmra.mxu0 %v8277_v59  ;;  %5048 = vmatmul.mubr.f32.gmra.mxu1 %v8279_v60 }
 0x792   :  { %5050 = vmatprep.mubr.f32.mxu1 %v6816_v17  ;;  %1974 = vmatprep.mubr.f32.mxu0 %v8225_v0 }
 0x793   :  { %2212 = vmatprep.subr.mxu0 %v7023_v34  ;;  %5058 = vmatprep.subr.mxu1 %v8225_v0 }
 0x794   :  { %5059 = vmatpush3.msra.mxu1 %v7114_v10 }
 0x795   :  { %1975 = vmatmul.mubr.f32.gmra.mxu0 %v8278_v32  ;;  %5051 = vmatmul.mubr.f32.gmra.mxu1 %v6914_v24  ;;  %v8290_v32 = vld [vmem:[#allocation48_spill] sm:$0xff] }
 0x796   :  { %5053 = vmatprep.mubr.f32.mxu1 %v6990_v3  ;;  %1980 = vmatprep.mubr.f32.mxu0 %v8225_v0 }
 0x797   :  { %5060 = vmatprep.subr.mxu1 %v8225_v0 }
 0x798   :  { %5061 = vmatpush3.msra.mxu1 %v7119_v62 }
 0x799   :  { %1981 = vmatmul.mubr.f32.gmra.mxu0 %v8279_v60  ;;  %5062 = vmatprep.subr.mxu1 %v8225_v0 }
 0x79a   :  { %1986 = vmatprep.mubr.f32.mxu0 %v8225_v0  ;;  %5063 = vmatpush3.msra.mxu1 %v7124_v4 }
 0x79b   :  { %5064 = vmatprep.subr.mxu1 %v8225_v0 }
 0x79c   :  { %5065 = vmatpush3.msra.mxu1 %v7128_v16 }
 0x79d   :  { %1987 = vmatmul.mubr.f32.gmra.mxu0 %v6816_v17  ;;  %v7026_v17 = vld [vmem:[#allocation9 + $0x2d0] sm:$0xff]  ;;  %5066 = vmatprep.subr.mxu1 %v8225_v0 }
 0x79e   :  { %1992 = vmatprep.mubr.f32.mxu0 %v8225_v0  ;;  %2213 = vmatpush1.msra.mxu0 %v7026_v17 }
 0x79f   :  { %5067 = vmatpush3.msra.mxu1 %v7132_v25 }
 0x7a0   :  { %5068 = vmatprep.subr.mxu1 %v8225_v0 }
 0x7a1   :  { %1993 = vmatmul.mubr.f32.gmra.mxu0 %v6914_v24  ;;  %v7029_v24 = vld [vmem:[#allocation9 + $0x2c0] sm:$0xff]  ;;  %5069 = vmatpush3.msra.mxu1 %v7136_v58 }
 0x7a2   :  { %1998 = vmatprep.mubr.f32.mxu0 %v8225_v0  ;;  %2214 = vmatprep.subr.mxu0 %v7029_v24 }
 0x7a3   :  { %2215 = vmatpush1.msra.mxu0 %v7032_v1  ;;  %5070 = vmatprep.subr.mxu1 %v8225_v0 }
 0x7a4   :  { %2216 = vmatprep.subr.mxu0 %v7035_v35  ;;  %5071 = vmatpush3.msra.mxu1 %v7140_v40 }
 0x7a5   :  { %1999 = vmatmul.mubr.f32.gmra.mxu0 %v6990_v3  ;;  %5072 = vmatprep.subr.mxu1 %v8225_v0 }
 0x7a6   :  { %2004 = vmatprep.mubr.f32.mxu0 %v8225_v0  ;;  %2217 = vmatpush1.msra.mxu0 %v7038_v2 }
 0x7a7   :  { %2218 = vmatprep.subr.mxu0 %v7041_v36  ;;  %5073 = vmatpush3.msra.mxu1 %v7144_v46 }
 0x7a8   :  { %2219 = vmatpush1.msra.mxu0 %v7044_v37  ;;  %5074 = vmatprep.subr.mxu1 %v8225_v0 }
 0x7a9   :  { %2220 = vmatprep.subr.mxu0 %v7047_v6  ;;  %5075 = vmatpush3.msra.mxu1 %v7148_v48 }
 0x7aa   :  { %2221 = vmatpush1.msra.mxu0 %v7050_v38  ;;  %5076 = vmatprep.subr.mxu1 %v8225_v0 }
 0x7ab   :  { %2222 = vmatprep.subr.mxu0 %v7053_v7  ;;  %5077 = vmatpush3.msra.mxu1 %v7152_v50 }
 0x7ac   :  { %2223 = vmatpush1.msra.mxu0 %v7056_v47  ;;  %5078 = vmatprep.subr.mxu1 %v8225_v0 }
 0x7ad   :  { %2224 = vmatprep.subr.mxu0 %v7059_v52  ;;  %5079 = vmatpush3.msra.mxu1 %v7156_v26 }
 0x7ae   :  { %2225 = vmatpush1.msra.mxu0 %v7062_v18  ;;  %5080 = vmatprep.subr.mxu1 %v8225_v0 }
 0x7af   :  { %2226 = vmatprep.subr.mxu0 %v7065_v19  ;;  %5081 = vmatpush3.msra.mxu1 %v7160_v39 }
 0x7b0   :  { %2227 = vmatpush1.msra.mxu0 %v7068_v21  ;;  %5082 = vmatprep.subr.mxu1 %v8225_v0 }
 0x7b1   :  { %2228 = vmatprep.subr.mxu0 %v7071_v27  ;;  %5083 = vmatpush3.msra.mxu1 %v7164_v43 }
 0x7b2   :  { %2229 = vmatpush1.msra.mxu0 %v7074_v28  ;;  %5084 = vmatprep.subr.mxu1 %v8225_v0 }
 0x7b3   :  { %2230 = vmatprep.subr.mxu0 %v7077_v29  ;;  %5085 = vmatpush3.msra.mxu1 %v7168_v11 }
 0x7b4   :  { %2231 = vmatpush1.msra.mxu0 %v7080_v30  ;;  %5086 = vmatprep.subr.mxu1 %v8225_v0 }
 0x7b5   :  { %2232 = vmatprep.subr.mxu0 %v7083_v31  ;;  %5087 = vmatpush3.msra.mxu1 %v7172_v49 }
 0x7b6   :  { %2233 = vmatpush1.msra.mxu0 %v7086_v45  ;;  %5091 = vmatprep.subr.mxu1 %v8225_v0 }
 0x7b7   :  { %2234 = vmatprep.subr.mxu0 %v7089_v53 }
 0x7b8   :  { %2235 = vmatpush1.msra.mxu0 %v7092_v20 }
 0x7b9   :  { %2236 = vmatprep.subr.mxu0 %v7095_v9 }
 0x7ba   :  { %2237 = vmatpush1.msra.mxu0 %v7098_v8 }
 0x7bb   :  { %2238 = vmatprep.subr.mxu0 %v7101_v13 }
 0x7bc   :  { %2239 = vmatpush1.msra.mxu0 %v7103_v12 }
 0x7bd   :  { %2240 = vmatprep.subr.mxu0 %v7105_v14 }
 0x7be   :  { %2241 = vmatpush1.msra.mxu0 %v7108_v15 }
 0x7bf   :  { %2376 = vmatprep.subr.mxu0 %v7017_v33 }
 0x82c   :  { %v1726_v44 = vpop.f32.mrf.mxu0  ;;  %v1797_v61 = vpop.f32.mrf.mxu1 }
 0x82d   :  { %v1727_v42 = vadd.f32 %v1726_v44, %v8272_v51  ;;  %v1798_v12 = vadd.f32 %v1797_v61, %v6425_v56  ;;  %v8293_v56 = vld [vmem:[#allocation21_spill] sm:$0xff] }
 0x82e   :  { %v1728_v41 = vpop.f32.mrf.mxu0  ;;  %v5011_v22 = vpop.f32.mrf.mxu1 }
 0x82f   :  { %v1801_v54 = vadd.f32 %v1727_v42, %v8289_v5  ;;  %v1729_v59 = vadd.f32 %v1728_v41, %v6409_v23  ;;  %v8291_v22 = vld [vmem:[#allocation53_spill] sm:$0xff] }
 0x831   :  { %v4226_v57 = vmul.f32 -1.442695, %v1801_v54  ;;  %v1808_v60 = vadd.f32 %v1729_v59, %v8290_v32 }
 0x833   :  { %5666 = vpow2.f32 %v4226_v57  ;;  %v4227_v33 = vmul.f32 -1.442695, %v1808_v60 }
 0x835   :  { %5668 = vpow2.f32 %v4227_v33 }
 0x840   :  { %v5667_v15 = vpop.eup %5666 }
 0x841   :  { %v1805_v49 = vadd.f32 1.0, %v5667_v15  ;;  %v8297_v15 = vld [vmem:[#allocation37_spill] sm:$0xff] }
 0x842   :  { %v5669_v14 = vpop.eup %5668 }
 0x843   :  { %5670 = vrcp.f32 %v1805_v49  ;;  %v1812_v11 = vadd.f32 1.0, %v5669_v14  ;;  %v8296_v14 = vld [vmem:[#allocation35_spill] sm:$0xff] }
 0x845   :  { %5672 = vrcp.f32 %v1812_v11  ;;  %v8298_v11 = vld [vmem:[#allocation25_spill] sm:$0xff] }
 0x84d   :  { %v1964_v49 = vpop.f32.mrf.mxu0 }
 0x84f   :  { %v1966_v61 = vpop.f32.mrf.mxu0 }
 0x850   :  { %v5671_v51 = vpop.eup %5670 }
 0x851   :  { %v1815_v44 = vmul.f32 %v5671_v51, %v1798_v12  ;;  %v8295_v12 = vld [vmem:[#allocation34_spill] sm:$0xff]  ;;  %v7261_v59 = vpop.f32.mrf.mxu0 }
 0x852   :  { %v5673_v5 = vpop.eup %5672  ;;  %8299 = vst [vmem:[#allocation38_spill] sm:$0xff] %v7261_v59 }
 0x853   :  { %v1816_v42 = vadd.f32 %v1815_v44, %v8291_v22  ;;  %v1818_v23 = vsub.f32 1.0, %v5673_v5  ;;  %v1820_v57 = vmul.f32 %v5673_v5, %v6990_v3  ;;  %v8294_v3 = vld [vmem:[#allocation36_spill] sm:$0xff]  ;;  %v7263_v32 = vpop.f32.mrf.mxu0 }
 0x854   :  { %8300 = vst [vmem:[#allocation39_spill] sm:$0xff] %v7263_v32 }
 0x855   :  { %5674 = vtanh.f32 %v1816_v42  ;;  %v7265_v60 = vpop.f32.mrf.mxu0  ;;  %v7273_v42 = vpop.f32.mrf.mxu1 }
 0x856   :  { %8301 = vst [vmem:[#allocation52_spill] sm:$0xff] %v7265_v60  ;;  %8305 = vst [vmem:[#allocation32_spill] sm:$0xff] %v7273_v42 }
 0x857   :  { %v7267_v51 = vpop.f32.mrf.mxu0 }
 0x858   :  { %8302 = vst [vmem:[#allocation41_spill] sm:$0xff] %v7267_v51 }
 0x859   :  { %v7269_v44 = vpop.f32.mrf.mxu0 }
 0x85a   :  { %8303 = vst [vmem:[#allocation42_spill] sm:$0xff] %v7269_v44 }
 0x85b   :  { %v7271_v22 = vpop.f32.mrf.mxu0 }
 0x85c   :  { %8304 = vst [vmem:[#allocation51_spill] sm:$0xff] %v7271_v22  ;;  %v1881_v22 = vld [vmem:[#allocation10 + $0x3] sm:$0x7] }
 0x85d   :  { %v7275_v5 = vpop.f32.mrf.mxu0 }
 0x85e   :  { %8306 = vst [vmem:[#allocation24_spill] sm:$0xff] %v7275_v5 }
 0x862   :  { %v5675_v41 = vpop.eup %5674 }
 0x863   :  { %v1819_v54 = vmul.f32 %v5675_v41, %v1818_v23  ;;  %v2077_v23 = vpop.f32.mrf.mxu1  ;;  %v7277_v41 = vpop.f32.mrf.mxu0 }
 0x864   :  { %8307 = vst [vmem:[#allocation33_spill] sm:$0xff] %v7277_v41  ;;  %v4228_v41 = vld [vmem:[%s8092_s4 + $0x3] sm:$0x7] }
 0x865   :  { %v7185_v33 = vadd.f32 %v1820_v57, %v1819_v54  ;;  %v7279_v54 = vpop.f32.mrf.mxu1  ;;  %v7281_v57 = vpop.f32.mrf.mxu0 }
 0x866   :  { %8308 = vst [vmem:[#allocation45_spill] sm:$0xff] %v7279_v54  ;;  %8309 = vst [vmem:[#allocation28_spill] sm:$0xff] %v7281_v57  ;;  %v8318_v54 = vld [vmem:[#allocation30_spill] sm:$0xff] }
 0x867   :  { %8292 = vst [vmem:[#allocation49_spill] sm:$0xff] %v7185_v33  ;;  %2005 = vmatmul.mubr.f32.gmra.mxu0 %v7185_v33  ;;  %5054 = vmatmul.mubr.f32.gmra.mxu1 %v7185_v33  ;;  %v7283_v33 = vpop.f32.mrf.mxu1  ;;  %v7285_v60 = vpop.f32.mrf.mxu0 }
 0x868   :  { %2274 = vmatprep.mubr.f32.mxu0 %v8225_v0  ;;  %5088 = vmatprep.mubr.msk.f32.mxu1 %vm6015_vm0, %v8225_v0  ;;  %8310 = vst [vmem:[#allocation47_spill] sm:$0xff] %v7283_v33  ;;  %8311 = vst [vmem:[#allocation43_spill] sm:$0xff] %v7285_v60  ;;  %v7303_v33 = vrot.slane %v1881_v22, %v8318_v54 }
 0x869   :  { %v7287_v51 = vpop.f32.mrf.mxu1  ;;  %v7289_v44 = vpop.f32.mrf.mxu0 }
 0x86a   :  { %8312 = vst [vmem:[#allocation44_spill] sm:$0xff] %v7287_v51  ;;  %8313 = vst [vmem:[#allocation54_spill] sm:$0xff] %v7289_v44  ;;  %v7306_v51 = vrot.slane %v4228_v41, %v8318_v54  ;;  %v1965_v59 = vadd.f32 %v1964_v49, %v7303_v33 }
 0x86b   :  { %2275 = vmatmul.mubr.f32.vlgmr.msra.gmra.mxu0 %v8225_v0  ;;  %5089 = vmatmul.mubr.f32.vlgmr.msra.gmra.mxu1 %v8225_v0  ;;  %v7291_v32 = vpop.f32.mrf.mxu1  ;;  %v7293_v42 = vpop.f32.mrf.mxu0  ;;  %8319 = vst [vmem:[#allocation46_spill] sm:$0xff] %v7303_v33 }
 0x86c   :  { %2377 = vmatpush1.msra.mxu0 %v7020_v63  ;;  %5092 = vmatpush3.msra.mxu1 %v7112_v55  ;;  %8314 = vst [vmem:[#allocation55_spill] sm:$0xff] %v7291_v32  ;;  %8315 = vst [vmem:[#allocation22_spill] sm:$0xff] %v7293_v42 }
 0x86d   :  { %2378 = vmatprep.subr.mxu0 %v7023_v34  ;;  %5093 = vmatprep.subr.mxu1 %v8225_v0  ;;  %8320 = vst [vmem:[#allocation48_spill] sm:$0xff] %v7306_v51 }
 0x86e   :  { %2379 = vmatpush1.msra.mxu0 %v7026_v17  ;;  %5094 = vmatpush3.msra.mxu1 %v7114_v10 }
 0x86f   :  { %2380 = vmatprep.subr.mxu0 %v7029_v24  ;;  %5095 = vmatprep.subr.mxu1 %v8225_v0 }
 0x870   :  { %2381 = vmatpush1.msra.mxu0 %v7032_v1  ;;  %5096 = vmatpush3.msra.mxu1 %v7119_v62 }
 0x871   :  { %2382 = vmatprep.subr.mxu0 %v7035_v35  ;;  %5097 = vmatprep.subr.mxu1 %v8225_v0 }
 0x872   :  { %2383 = vmatpush1.msra.mxu0 %v7038_v2  ;;  %5098 = vmatpush3.msra.mxu1 %v7124_v4 }
 0x873   :  { %2384 = vmatprep.subr.mxu0 %v7041_v36  ;;  %5099 = vmatprep.subr.mxu1 %v8225_v0 }
 0x874   :  { %2385 = vmatpush1.msra.mxu0 %v7044_v37  ;;  %5100 = vmatpush3.msra.mxu1 %v7128_v16 }
 0x875   :  { %2386 = vmatprep.subr.mxu0 %v7047_v6  ;;  %5101 = vmatprep.subr.mxu1 %v8225_v0 }
 0x876   :  { %2387 = vmatpush1.msra.mxu0 %v7050_v38  ;;  %5102 = vmatpush3.msra.mxu1 %v7132_v25 }
 0x877   :  { %2388 = vmatprep.subr.mxu0 %v7053_v7  ;;  %5103 = vmatprep.subr.mxu1 %v8225_v0 }
 0x878   :  { %2389 = vmatpush1.msra.mxu0 %v7056_v47  ;;  %5104 = vmatpush3.msra.mxu1 %v7136_v58 }
 0x879   :  { %2390 = vmatprep.subr.mxu0 %v7059_v52  ;;  %5105 = vmatprep.subr.mxu1 %v8225_v0 }
 0x87a   :  { %2391 = vmatpush1.msra.mxu0 %v7062_v18  ;;  %5106 = vmatpush3.msra.mxu1 %v7140_v40 }
 0x87b   :  { %2392 = vmatprep.subr.mxu0 %v7065_v19  ;;  %5107 = vmatprep.subr.mxu1 %v8225_v0 }
 0x87c   :  { %2393 = vmatpush1.msra.mxu0 %v7068_v21  ;;  %5108 = vmatpush3.msra.mxu1 %v7144_v46 }
 0x87d   :  { %2394 = vmatprep.subr.mxu0 %v7071_v27  ;;  %5109 = vmatprep.subr.mxu1 %v8225_v0 }
 0x87e   :  { %2395 = vmatpush1.msra.mxu0 %v7074_v28  ;;  %5110 = vmatpush3.msra.mxu1 %v7148_v48 }
 0x87f   :  { %2396 = vmatprep.subr.mxu0 %v7077_v29  ;;  %5111 = vmatprep.subr.mxu1 %v8225_v0 }
 0x880   :  { %2397 = vmatpush1.msra.mxu0 %v7080_v30  ;;  %5112 = vmatpush3.msra.mxu1 %v7152_v50 }
 0x881   :  { %2398 = vmatprep.subr.mxu0 %v7083_v31  ;;  %5113 = vmatprep.subr.mxu1 %v8225_v0 }
 0x882   :  { %2399 = vmatpush1.msra.mxu0 %v7086_v45  ;;  %5114 = vmatpush3.msra.mxu1 %v7156_v26 }
 0x883   :  { %2400 = vmatprep.subr.mxu0 %v7089_v53  ;;  %5115 = vmatprep.subr.mxu1 %v8225_v0 }
 0x884   :  { %2401 = vmatpush1.msra.mxu0 %v7092_v20  ;;  %5116 = vmatpush3.msra.mxu1 %v7160_v39 }
 0x885   :  { %2402 = vmatprep.subr.mxu0 %v7095_v9  ;;  %5117 = vmatprep.subr.mxu1 %v8225_v0 }
 0x886   :  { %2403 = vmatpush1.msra.mxu0 %v7098_v8  ;;  %5118 = vmatpush3.msra.mxu1 %v7164_v43 }
 0x887   :  { %2404 = vmatprep.subr.mxu0 %v7101_v13  ;;  %5119 = vmatprep.subr.mxu1 %v8225_v0 }
 0x888   :  { %2405 = vmatpush1.msra.mxu0 %v8293_v56  ;;  %5120 = vmatpush3.msra.mxu1 %v8294_v3 }
 0x889   :  { %2406 = vmatprep.subr.mxu0 %v8295_v12  ;;  %5121 = vmatprep.subr.mxu1 %v8225_v0 }
 0x88a   :  { %2407 = vmatpush1.msra.mxu0 %v8296_v14  ;;  %2440 = vmatprep.mubr.f32.mxu0 %v8225_v0 }
 0x88b   :  { %5122 = vmatpush3.msra.mxu1 %v8297_v15  ;;  %5123 = vmatprep.mubr.msk.f32.mxu1 %vm6015_vm0, %v8225_v0  ;;  %v8323_v15 = vld [vmem:[#allocation31_spill] sm:$0xff] }
 0x88c   :  { %2543 = vmatprep.subr.mxu0 %v8298_v11  ;;  %5126 = vmatprep.subr.mxu1 %v8225_v0  ;;  %v7318_v12 = vrot.slane %v1881_v22, %v8323_v15 }
 0x927   :  { %v7298_v5 = vpop.f32.mrf.mxu0  ;;  %v7300_v57 = vpop.f32.mrf.mxu1 }
 0x928   :  { %8316 = vst [vmem:[#allocation27_spill] sm:$0xff] %v7298_v5  ;;  %8317 = vst [vmem:[#allocation23_spill] sm:$0xff] %v7300_v57  ;;  %v7315_v5 = vrot.slane %v4228_v41, %v8323_v15 }
 0x929   :  { %v7308_v44 = vpop.f32.mrf.mxu0  ;;  %v7310_v60 = vpop.f32.mrf.mxu1 }
 0x92a   :  { %8321 = vst [vmem:[#allocation53_spill] sm:$0xff] %v7308_v44  ;;  %8322 = vst [vmem:[#allocation30_spill] sm:$0xff] %v7310_v60  ;;  %v1967_v60 = vadd.f32 %v1966_v61, %v7318_v12 }
 0x92b   :  { %v2276_v32 = vpop.f32.mrf.mxu0  ;;  %v2347_v42 = vpop.f32.mrf.mxu1 }
 0x92c   :  { %v2277_v11 = vadd.f32 %v2276_v32, %v7306_v51  ;;  %v8324_v51 = vld [vmem:[#allocation40_spill] sm:$0xff] }
 0x92d   :  { %v2278_v57 = vpop.f32.mrf.mxu0  ;;  %v5090_v14 = vpop.f32.mrf.mxu1  ;;  %v7323_v33 = vrot.slane %v4228_v41, %v8324_v51 }
 0x92e   :  { %v2351_v54 = vadd.f32 %v2277_v11, %v1965_v59  ;;  %v2279_v44 = vadd.f32 %v2278_v57, %v7315_v5  ;;  %v7327_v11 = vrot.slane %v1881_v22, %v8324_v51  ;;  %v8327_v51 = vld [vmem:[#allocation29_spill] sm:$0xff] }
 0x92f   :  { %v2348_v15 = vadd.f32 %v2347_v42, %v7323_v33  ;;  %v8328_v22 = vld [vmem:[#allocation21_spill] sm:$0xff]  ;;  %v8329_v42 = vld [vmem:[#allocation36_spill] sm:$0xff] }
 0x930   :  { %v4229_v3 = vmul.f32 -1.442695, %v2351_v54  ;;  %v2358_v56 = vadd.f32 %v2279_v44, %v1967_v60  ;;  %v2078_v61 = vadd.f32 %v2077_v23, %v7327_v11  ;;  %v8330_v23 = vld [vmem:[#allocation34_spill] sm:$0xff] }
 0x932   :  { %5676 = vpow2.f32 %v4229_v3  ;;  %v4230_v13 = vmul.f32 -1.442695, %v2358_v56 }
 0x934   :  { %5678 = vpow2.f32 %v4230_v13 }
 0x93f   :  { %v5677_v49 = vpop.eup %5676 }
 0x940   :  { %v2355_v32 = vadd.f32 1.0, %v5677_v49  ;;  %v8331_v49 = vld [vmem:[#allocation35_spill] sm:$0xff] }
 0x941   :  { %v5679_v14 = vpop.eup %5678 }
 0x942   :  { %5680 = vrcp.f32 %v2355_v32  ;;  %v2362_v43 = vadd.f32 1.0, %v5679_v14  ;;  %v8332_v32 = vld [vmem:[#allocation37_spill] sm:$0xff] }
 0x943   :  { %v8333_v14 = vld [vmem:[#allocation25_spill] sm:$0xff] }
 0x944   :  { %5682 = vrcp.f32 %v2362_v43  ;;  %v8326_v43 = vld [vmem:[#allocation50_spill] sm:$0xff] }
 0x94f   :  { %v5681_v59 = vpop.eup %5680 }
 0x950   :  { %v2365_v3 = vmul.f32 %v5681_v59, %v2348_v15 }
 0x951   :  { %v5683_v13 = vpop.eup %5682 }
 0x952   :  { %v2366_v56 = vadd.f32 %v2365_v3, %v2078_v61  ;;  %v2368_v60 = vsub.f32 1.0, %v5683_v13  ;;  %v2370_v41 = vmul.f32 0.0, %v5683_v13  ;;  %v8334_v61 = vld [vmem:[#allocation46_spill] sm:$0xff]  ;;  %v8336_v13 = vld [vmem:[#allocation48_spill] sm:$0xff] }
 0x953   :  { %v8335_v3 = vld [vmem:[#allocation38_spill] sm:$0xff] }
 0x954   :  { %5684 = vtanh.f32 %v2366_v56  ;;  %v1971_v56 = vadd.f32 %v8335_v3, %v8334_v61 }
 0x961   :  { %v5685_v44 = vpop.eup %5684 }
 0x962   :  { %v2369_v57 = vmul.f32 %v5685_v44, %v2368_v60 }
 0x964   :  { %v7330_v54 = vadd.f32 %v2370_v41, %v2369_v57 }
 0x966   :  { %8325 = vst [vmem:[#allocation31_spill] sm:$0xff] %v7330_v54  ;;  %2441 = vmatmul.mubr.f32.vlgmr.msra.gmra.mxu0 %v7330_v54  ;;  %5124 = vmatmul.mubr.f32.vlgmr.msra.gmra.mxu1 %v7330_v54 }
 0x967   :  { %2544 = vmatpush1.msra.mxu0 %v7020_v63  ;;  %5127 = vmatpush3.msra.mxu1 %v7112_v55 }
 0x968   :  { %2545 = vmatprep.subr.mxu0 %v7023_v34  ;;  %5128 = vmatprep.subr.mxu1 %v8225_v0 }
 0x969   :  { %2546 = vmatpush1.msra.mxu0 %v7026_v17  ;;  %5129 = vmatpush3.msra.mxu1 %v7114_v10 }
 0x96a   :  { %2547 = vmatprep.subr.mxu0 %v7029_v24  ;;  %5130 = vmatprep.subr.mxu1 %v8225_v0 }
 0x96b   :  { %2548 = vmatpush1.msra.mxu0 %v7032_v1  ;;  %5131 = vmatpush3.msra.mxu1 %v7119_v62 }
 0x96c   :  { %2549 = vmatprep.subr.mxu0 %v7035_v35  ;;  %5132 = vmatprep.subr.mxu1 %v8225_v0 }
 0x96d   :  { %2550 = vmatpush1.msra.mxu0 %v7038_v2  ;;  %5133 = vmatpush3.msra.mxu1 %v7124_v4 }
 0x96e   :  { %2551 = vmatprep.subr.mxu0 %v7041_v36  ;;  %5134 = vmatprep.subr.mxu1 %v8225_v0 }
 0x96f   :  { %2552 = vmatpush1.msra.mxu0 %v7044_v37  ;;  %5135 = vmatpush3.msra.mxu1 %v7128_v16 }
 0x970   :  { %2553 = vmatprep.subr.mxu0 %v7047_v6  ;;  %5136 = vmatprep.subr.mxu1 %v8225_v0 }
 0x971   :  { %2554 = vmatpush1.msra.mxu0 %v7050_v38  ;;  %5137 = vmatpush3.msra.mxu1 %v7132_v25 }
 0x972   :  { %2555 = vmatprep.subr.mxu0 %v7053_v7  ;;  %5138 = vmatprep.subr.mxu1 %v8225_v0 }
 0x973   :  { %2556 = vmatpush1.msra.mxu0 %v7056_v47  ;;  %5139 = vmatpush3.msra.mxu1 %v7136_v58 }
 0x974   :  { %2557 = vmatprep.subr.mxu0 %v7059_v52  ;;  %5140 = vmatprep.subr.mxu1 %v8225_v0 }
 0x975   :  { %2558 = vmatpush1.msra.mxu0 %v7062_v18  ;;  %5141 = vmatpush3.msra.mxu1 %v7140_v40 }
 0x976   :  { %2559 = vmatprep.subr.mxu0 %v7065_v19  ;;  %5142 = vmatprep.subr.mxu1 %v8225_v0 }
 0x977   :  { %2560 = vmatpush1.msra.mxu0 %v7068_v21  ;;  %5143 = vmatpush3.msra.mxu1 %v7144_v46 }
 0x978   :  { %2561 = vmatprep.subr.mxu0 %v7071_v27  ;;  %5144 = vmatprep.subr.mxu1 %v8225_v0 }
 0x979   :  { %2562 = vmatpush1.msra.mxu0 %v7074_v28  ;;  %5145 = vmatpush3.msra.mxu1 %v7148_v48 }
 0x97a   :  { %2563 = vmatprep.subr.mxu0 %v7077_v29  ;;  %5146 = vmatprep.subr.mxu1 %v8225_v0 }
 0x97b   :  { %2564 = vmatpush1.msra.mxu0 %v7080_v30  ;;  %5147 = vmatpush3.msra.mxu1 %v7152_v50 }
 0x97c   :  { %2565 = vmatprep.subr.mxu0 %v7083_v31  ;;  %5148 = vmatprep.subr.mxu1 %v8225_v0 }
 0x97d   :  { %2566 = vmatpush1.msra.mxu0 %v7086_v45  ;;  %5149 = vmatpush3.msra.mxu1 %v7156_v26 }
 0x97e   :  { %2567 = vmatprep.subr.mxu0 %v7089_v53  ;;  %5150 = vmatprep.subr.mxu1 %v8225_v0 }
 0x97f   :  { %2568 = vmatpush1.msra.mxu0 %v7092_v20  ;;  %5151 = vmatpush3.msra.mxu1 %v7160_v39 }
 0x980   :  { %2569 = vmatprep.subr.mxu0 %v7095_v9  ;;  %5152 = vmatprep.subr.mxu1 %v8225_v0 }
 0x981   :  { %2570 = vmatpush1.msra.mxu0 %v7098_v8  ;;  %5153 = vmatpush3.msra.mxu1 %v8326_v43 }
 0x982   :  { %2571 = vmatprep.subr.mxu0 %v8327_v51  ;;  %5154 = vmatprep.subr.mxu1 %v8225_v0 }
 0x983   :  { %2572 = vmatpush1.msra.mxu0 %v8328_v22  ;;  %5155 = vmatpush3.msra.mxu1 %v8329_v42 }
 0x984   :  { %2573 = vmatprep.subr.mxu0 %v8330_v23  ;;  %5156 = vmatprep.subr.mxu1 %v8225_v0  ;;  %v8337_v23 = vld [vmem:[#allocation39_spill] sm:$0xff] }
 0x985   :  { %2574 = vmatpush1.msra.mxu0 %v8331_v49  ;;  %2607 = vmatprep.mubr.f32.mxu0 %v8225_v0  ;;  %v1973_v42 = vadd.f32 %v8337_v23, %v7318_v12 }
 0x986   :  { %5157 = vmatpush3.msra.mxu1 %v8332_v32  ;;  %5158 = vmatprep.mubr.msk.f32.mxu1 %vm6015_vm0, %v8225_v0 }
 0x987   :  { %2710 = vmatprep.subr.mxu0 %v8333_v14  ;;  %5161 = vmatprep.subr.mxu1 %v8225_v0 }
 0xa26   :  { %v2442_v15 = vpop.f32.mrf.mxu0  ;;  %v2513_v59 = vpop.f32.mrf.mxu1 }
 0xa27   :  { %v2443_v60 = vadd.f32 %v2442_v15, %v8336_v13  ;;  %v2514_v15 = vadd.f32 %v2513_v59, %v7323_v33  ;;  %v8343_v59 = vld [vmem:[#allocation21_spill] sm:$0xff] }
 0xa28   :  { %v2444_v44 = vpop.f32.mrf.mxu0  ;;  %v5125_v57 = vpop.f32.mrf.mxu1 }
 0xa29   :  { %v2517_v41 = vadd.f32 %v2443_v60, %v1971_v56  ;;  %v2445_v32 = vadd.f32 %v2444_v44, %v7315_v5  ;;  %v8338_v56 = vld [vmem:[#allocation32_spill] sm:$0xff] }
 0xa2a   :  { %v2083_v60 = vadd.f32 %v8338_v56, %v7327_v11  ;;  %v8348_v56 = vld [vmem:[#allocation25_spill] sm:$0xff] }
 0xa2b   :  { %v4231_v49 = vmul.f32 -1.442695, %v2517_v41  ;;  %v2524_v14 = vadd.f32 %v2445_v32, %v1973_v42  ;;  %v8345_v41 = vld [vmem:[#allocation34_spill] sm:$0xff] }
 0xa2d   :  { %5686 = vpow2.f32 %v4231_v49  ;;  %v4232_v22 = vmul.f32 -1.442695, %v2524_v14  ;;  %v8342_v14 = vld [vmem:[#allocation29_spill] sm:$0xff] }
 0xa2f   :  { %5688 = vpow2.f32 %v4232_v22 }
 0xa3a   :  { %v5687_v51 = vpop.eup %5686 }
 0xa3b   :  { %v2521_v43 = vadd.f32 1.0, %v5687_v51 }
 0xa3c   :  { %v5689_v8 = vpop.eup %5688 }
 0xa3d   :  { %5690 = vrcp.f32 %v2521_v43  ;;  %v2528_v3 = vadd.f32 1.0, %v5689_v8  ;;  %v8340_v8 = vld [vmem:[#allocation26_spill] sm:$0xff] }
 0xa3e   :  { %v8341_v43 = vld [vmem:[#allocation50_spill] sm:$0xff] }
 0xa3f   :  { %5692 = vrcp.f32 %v2528_v3  ;;  %v8346_v3 = vld [vmem:[#allocation35_spill] sm:$0xff] }
 0xa4a   :  { %v5691_v13 = vpop.eup %5690 }
 0xa4b   :  { %v2531_v57 = vmul.f32 %v5691_v13, %v2514_v15  ;;  %v8344_v13 = vld [vmem:[#allocation36_spill] sm:$0xff]  ;;  %v8347_v15 = vld [vmem:[#allocation37_spill] sm:$0xff] }
 0xa4c   :  { %v5693_v23 = vpop.eup %5692 }
 0xa4d   :  { %v2532_v44 = vadd.f32 %v2531_v57, %v2083_v60  ;;  %v2534_v49 = vsub.f32 1.0, %v5693_v23  ;;  %v2536_v22 = vmul.f32 %v5693_v23, %v7330_v54 }
 0xa4f   :  { %5694 = vtanh.f32 %v2532_v44  ;;  %v8349_v44 = vld [vmem:[#allocation52_spill] sm:$0xff] }
 0xa50   :  { %v1977_v23 = vadd.f32 %v8349_v44, %v8334_v61 }
 0xa5c   :  { %v5695_v42 = vpop.eup %5694 }
 0xa5d   :  { %v2535_v32 = vmul.f32 %v5695_v42, %v2534_v49  ;;  %v8350_v49 = vld [vmem:[#allocation48_spill] sm:$0xff] }
 0xa5f   :  { %v7411_v51 = vadd.f32 %v2536_v22, %v2535_v32 }
 0xa61   :  { %8339 = vst [vmem:[#allocation40_spill] sm:$0xff] %v7411_v51  ;;  %2608 = vmatmul.mubr.f32.vlgmr.msra.gmra.mxu0 %v7411_v51  ;;  %5159 = vmatmul.mubr.f32.vlgmr.msra.gmra.mxu1 %v7411_v51 }
 0xa62   :  { %2711 = vmatpush1.msra.mxu0 %v7020_v63  ;;  %5162 = vmatpush3.msra.mxu1 %v7112_v55 }
 0xa63   :  { %2712 = vmatprep.subr.mxu0 %v7023_v34  ;;  %5163 = vmatprep.subr.mxu1 %v8225_v0 }
 0xa64   :  { %2713 = vmatpush1.msra.mxu0 %v7026_v17  ;;  %5164 = vmatpush3.msra.mxu1 %v7114_v10 }
 0xa65   :  { %2714 = vmatprep.subr.mxu0 %v7029_v24  ;;  %5165 = vmatprep.subr.mxu1 %v8225_v0 }
 0xa66   :  { %2715 = vmatpush1.msra.mxu0 %v7032_v1  ;;  %5166 = vmatpush3.msra.mxu1 %v7119_v62 }
 0xa67   :  { %2716 = vmatprep.subr.mxu0 %v7035_v35  ;;  %5167 = vmatprep.subr.mxu1 %v8225_v0 }
 0xa68   :  { %2717 = vmatpush1.msra.mxu0 %v7038_v2  ;;  %5168 = vmatpush3.msra.mxu1 %v7124_v4 }
 0xa69   :  { %2718 = vmatprep.subr.mxu0 %v7041_v36  ;;  %5169 = vmatprep.subr.mxu1 %v8225_v0 }
 0xa6a   :  { %2719 = vmatpush1.msra.mxu0 %v7044_v37  ;;  %5170 = vmatpush3.msra.mxu1 %v7128_v16 }
 0xa6b   :  { %2720 = vmatprep.subr.mxu0 %v7047_v6  ;;  %5171 = vmatprep.subr.mxu1 %v8225_v0 }
 0xa6c   :  { %2721 = vmatpush1.msra.mxu0 %v7050_v38  ;;  %5172 = vmatpush3.msra.mxu1 %v7132_v25 }
 0xa6d   :  { %2722 = vmatprep.subr.mxu0 %v7053_v7  ;;  %5173 = vmatprep.subr.mxu1 %v8225_v0 }
 0xa6e   :  { %2723 = vmatpush1.msra.mxu0 %v7056_v47  ;;  %5174 = vmatpush3.msra.mxu1 %v7136_v58 }
 0xa6f   :  { %2724 = vmatprep.subr.mxu0 %v7059_v52  ;;  %5175 = vmatprep.subr.mxu1 %v8225_v0 }
 0xa70   :  { %2725 = vmatpush1.msra.mxu0 %v7062_v18  ;;  %5176 = vmatpush3.msra.mxu1 %v7140_v40 }
 0xa71   :  { %2726 = vmatprep.subr.mxu0 %v7065_v19  ;;  %5177 = vmatprep.subr.mxu1 %v8225_v0 }
 0xa72   :  { %2727 = vmatpush1.msra.mxu0 %v7068_v21  ;;  %5178 = vmatpush3.msra.mxu1 %v7144_v46 }
 0xa73   :  { %2728 = vmatprep.subr.mxu0 %v7071_v27  ;;  %5179 = vmatprep.subr.mxu1 %v8225_v0 }
 0xa74   :  { %2729 = vmatpush1.msra.mxu0 %v7074_v28  ;;  %5180 = vmatpush3.msra.mxu1 %v7148_v48 }
 0xa75   :  { %2730 = vmatprep.subr.mxu0 %v7077_v29  ;;  %5181 = vmatprep.subr.mxu1 %v8225_v0 }
 0xa76   :  { %2731 = vmatpush1.msra.mxu0 %v7080_v30  ;;  %5182 = vmatpush3.msra.mxu1 %v7152_v50 }
 0xa77   :  { %2732 = vmatprep.subr.mxu0 %v7083_v31  ;;  %5183 = vmatprep.subr.mxu1 %v8225_v0 }
 0xa78   :  { %2733 = vmatpush1.msra.mxu0 %v7086_v45  ;;  %5184 = vmatpush3.msra.mxu1 %v7156_v26 }
 0xa79   :  { %2734 = vmatprep.subr.mxu0 %v7089_v53  ;;  %5185 = vmatprep.subr.mxu1 %v8225_v0 }
 0xa7a   :  { %2735 = vmatpush1.msra.mxu0 %v7092_v20  ;;  %5186 = vmatpush3.msra.mxu1 %v7160_v39 }
 0xa7b   :  { %2736 = vmatprep.subr.mxu0 %v7095_v9  ;;  %5187 = vmatprep.subr.mxu1 %v8225_v0 }
 0xa7c   :  { %2737 = vmatpush1.msra.mxu0 %v8340_v8  ;;  %5188 = vmatpush3.msra.mxu1 %v8341_v43 }
 0xa7d   :  { %2738 = vmatprep.subr.mxu0 %v8342_v14  ;;  %5189 = vmatprep.subr.mxu1 %v8225_v0 }
 0xa7e   :  { %2739 = vmatpush1.msra.mxu0 %v8343_v59  ;;  %5190 = vmatpush3.msra.mxu1 %v8344_v13 }
 0xa7f   :  { %2740 = vmatprep.subr.mxu0 %v8345_v41  ;;  %5191 = vmatprep.subr.mxu1 %v8225_v0  ;;  %v8351_v41 = vld [vmem:[#allocation41_spill] sm:$0xff] }
 0xa80   :  { %2741 = vmatpush1.msra.mxu0 %v8346_v3  ;;  %2774 = vmatprep.mubr.f32.mxu0 %v8225_v0  ;;  %v1979_v13 = vadd.f32 %v8351_v41, %v7318_v12 }
 0xa81   :  { %5192 = vmatpush3.msra.mxu1 %v8347_v15  ;;  %5193 = vmatprep.mubr.msk.f32.mxu1 %vm6015_vm0, %v8225_v0 }
 0xa82   :  { %2877 = vmatprep.subr.mxu0 %v8348_v56  ;;  %5196 = vmatprep.subr.mxu1 %v8225_v0 }
 0xb21   :  { %v2609_v60 = vpop.f32.mrf.mxu0  ;;  %v2680_v57 = vpop.f32.mrf.mxu1 }
 0xb22   :  { %v2610_v42 = vadd.f32 %v2609_v60, %v8350_v49  ;;  %v2681_v60 = vadd.f32 %v2680_v57, %v7323_v33  ;;  %v7582_v57 = vld [vmem:[#allocation9 + $0x2f8] sm:$0xff] }
 0xb23   :  { %v2611_v32 = vpop.f32.mrf.mxu0  ;;  %v5160_v22 = vpop.f32.mrf.mxu1 }
 0xb24   :  { %v2684_v54 = vadd.f32 %v2610_v42, %v1977_v23  ;;  %v2612_v15 = vadd.f32 %v2611_v32, %v7315_v5  ;;  %v8352_v23 = vld [vmem:[#allocation47_spill] sm:$0xff] }
 0xb25   :  { %v7589_v22 = vld [vmem:[#allocation9 + $0x2d0] sm:$0xff] }
 0xb26   :  { %v4233_v3 = vmul.f32 -1.442695, %v2684_v54  ;;  %v2691_v56 = vadd.f32 %v2612_v15, %v1979_v13  ;;  %v2088_v54 = vadd.f32 %v8352_v23, %v7327_v11  ;;  %v7602_v23 = vld [vmem:[#allocation9 + $0x2c8] sm:$0xff] }
 0xb28   :  { %5696 = vpow2.f32 %v4233_v3  ;;  %v4234_v59 = vmul.f32 -1.442695, %v2691_v56  ;;  %v7592_v56 = vld [vmem:[#allocation9 + $0x2e0] sm:$0xff] }
 0xb2a   :  { %5698 = vpow2.f32 %v4234_v59 }
 0xb35   :  { %v5697_v14 = vpop.eup %5696 }
 0xb36   :  { %v2688_v43 = vadd.f32 1.0, %v5697_v14 }
 0xb37   :  { %v5699_v8 = vpop.eup %5698 }
 0xb38   :  { %5700 = vrcp.f32 %v2688_v43  ;;  %v2695_v44 = vadd.f32 1.0, %v5699_v8  ;;  %v7579_v43 = vld [vmem:[#allocation9 + $0x2e8] sm:$0xff] }
 0xb3a   :  { %5702 = vrcp.f32 %v2695_v44  ;;  %v7595_v44 = vld [vmem:[#allocation9 + $0x2c0] sm:$0xff] }
 0xb45   :  { %v5701_v49 = vpop.eup %5700 }
 0xb46   :  { %v2698_v42 = vmul.f32 %v5701_v49, %v2681_v60  ;;  %v7585_v49 = vld [vmem:[#allocation9 + $0x2d8] sm:$0xff] }
 0xb47   :  { %v5703_v41 = vpop.eup %5702  ;;  %v7599_v60 = vld [vmem:[#allocation9 + $0x2b8] sm:$0xff] }
 0xb48   :  { %v2699_v32 = vadd.f32 %v2698_v42, %v2088_v54  ;;  %v2701_v3 = vsub.f32 1.0, %v5703_v41  ;;  %v2703_v59 = vmul.f32 %v5703_v41, %v7411_v51  ;;  %v7605_v54 = vld [vmem:[#allocation9 + $0x2a8] sm:$0xff]  ;;  %v7609_v42 = vld [vmem:[#allocation9 + $0x2a0] sm:$0xff]  ;;  %v7615_v41 = vld [vmem:[#allocation9 + $0x290] sm:$0xff] }
 0xb4a   :  { %5704 = vtanh.f32 %v2699_v32  ;;  %v7612_v32 = vld [vmem:[#allocation9 + $0x2b0] sm:$0xff] }
 0xb57   :  { %v5705_v13 = vpop.eup %5704 }
 0xb58   :  { %v2702_v15 = vmul.f32 %v5705_v13, %v2701_v3  ;;  %v7619_v3 = vld [vmem:[#allocation9 + $0x288] sm:$0xff]  ;;  %v7622_v13 = vld [vmem:[#allocation9 + $0x298] sm:$0xff] }
 0xb5a   :  { %v7492_v14 = vadd.f32 %v2703_v59, %v2702_v15  ;;  %v7625_v15 = vld [vmem:[#allocation9 + $0x278] sm:$0xff]  ;;  %v7629_v59 = vld [vmem:[#allocation9 + $0x270] sm:$0xff] }
 0xb5c   :  { %8353 = vst [vmem:[#allocation46_spill] sm:$0xff] %v7492_v14  ;;  %2775 = vmatmul.mubr.f32.vlgmr.msra.gmra.mxu0 %v7492_v14  ;;  %5194 = vmatmul.mubr.f32.vlgmr.msra.gmra.mxu1 %v7492_v14 }
 0xb5d   :  { %2878 = vmatpush1.msra.mxu0 %v7020_v63  ;;  %5197 = vmatpush3.msra.mxu1 %v7112_v55  ;;  %v8354_v63 = vld [vmem:[#allocation26_spill] sm:$0xff] }
 0xb5e   :  { %2879 = vmatprep.subr.mxu0 %v7023_v34  ;;  %5198 = vmatprep.subr.mxu1 %v8225_v0  ;;  %v8355_v34 = vld [vmem:[#allocation50_spill] sm:$0xff] }
 0xb5f   :  { %2880 = vmatpush1.msra.mxu0 %v7026_v17  ;;  %5199 = vmatpush3.msra.mxu1 %v7114_v10  ;;  %v8356_v17 = vld [vmem:[#allocation29_spill] sm:$0xff] }
 0xb60   :  { %2881 = vmatprep.subr.mxu0 %v7029_v24  ;;  %5200 = vmatprep.subr.mxu1 %v8225_v0  ;;  %v8357_v24 = vld [vmem:[#allocation21_spill] sm:$0xff] }
 0xb61   :  { %2882 = vmatpush1.msra.mxu0 %v7032_v1  ;;  %5201 = vmatpush3.msra.mxu1 %v7119_v62  ;;  %v8358_v1 = vld [vmem:[#allocation36_spill] sm:$0xff] }
 0xb62   :  { %2883 = vmatprep.subr.mxu0 %v7035_v35  ;;  %5202 = vmatprep.subr.mxu1 %v8225_v0  ;;  %v8359_v35 = vld [vmem:[#allocation34_spill] sm:$0xff] }
 0xb63   :  { %2884 = vmatpush1.msra.mxu0 %v7038_v2  ;;  %5203 = vmatpush3.msra.mxu1 %v7124_v4  ;;  %v8360_v2 = vld [vmem:[#allocation35_spill] sm:$0xff] }
 0xb64   :  { %2885 = vmatprep.subr.mxu0 %v7041_v36  ;;  %5204 = vmatprep.subr.mxu1 %v8225_v0  ;;  %v8361_v36 = vld [vmem:[#allocation37_spill] sm:$0xff] }
 0xb65   :  { %2886 = vmatpush1.msra.mxu0 %v7044_v37  ;;  %5205 = vmatpush3.msra.mxu1 %v7128_v16  ;;  %v7561_v37 = vld [vmem:[#allocation9 + $0x2f0] sm:$0xff]  ;;  %v8366_v16 = vld [vmem:[#allocation45_spill] sm:$0xff] }
 0xb66   :  { %2887 = vmatprep.subr.mxu0 %v7047_v6  ;;  %5206 = vmatprep.subr.mxu1 %v8225_v0  ;;  %8362 = vst [vmem:[#allocation38_spill] sm:$0xff] %v7561_v37 }
 0xb67   :  { %2888 = vmatpush1.msra.mxu0 %v7050_v38  ;;  %5207 = vmatpush3.msra.mxu1 %v7132_v25  ;;  %v2093_v25 = vadd.f32 %v8366_v16, %v7327_v11  ;;  %v7725_v16 = vld [vmem:[#allocation9 + $0x188] sm:$0xff] }
 0xb68   :  { %2889 = vmatprep.subr.mxu0 %v7053_v7  ;;  %5208 = vmatprep.subr.mxu1 %v8225_v0  ;;  %v8363_v7 = vld [vmem:[#allocation42_spill] sm:$0xff]  ;;  %8373 = vst [vmem:[#allocation26_spill] sm:$0xff] %v7725_v16 }
 0xb69   :  { %2890 = vmatpush1.msra.mxu0 %v7056_v47  ;;  %5209 = vmatpush3.msra.mxu1 %v7136_v58  ;;  %v1983_v47 = vadd.f32 %v8363_v7, %v8334_v61  ;;  %v7665_v7 = vld [vmem:[#allocation9 + $0x218] sm:$0xff] }
 0xb6a   :  { %2891 = vmatprep.subr.mxu0 %v7059_v52  ;;  %5210 = vmatprep.subr.mxu1 %v8225_v0  ;;  %v8364_v52 = vld [vmem:[#allocation48_spill] sm:$0xff] }
 0xb6b   :  { %2892 = vmatpush1.msra.mxu0 %v7062_v18  ;;  %5211 = vmatpush3.msra.mxu1 %v7140_v40 }
 0xb6c   :  { %2893 = vmatprep.subr.mxu0 %v7065_v19  ;;  %5212 = vmatprep.subr.mxu1 %v8225_v0 }
 0xb6d   :  { %2894 = vmatpush1.msra.mxu0 %v7068_v21  ;;  %5213 = vmatpush3.msra.mxu1 %v7144_v46 }
 0xb6e   :  { %2895 = vmatprep.subr.mxu0 %v7071_v27  ;;  %5214 = vmatprep.subr.mxu1 %v8225_v0 }
 0xb6f   :  { %2896 = vmatpush1.msra.mxu0 %v7074_v28  ;;  %5215 = vmatpush3.msra.mxu1 %v7148_v48 }
 0xb70   :  { %2897 = vmatprep.subr.mxu0 %v7077_v29  ;;  %5216 = vmatprep.subr.mxu1 %v8225_v0 }
 0xb71   :  { %2898 = vmatpush1.msra.mxu0 %v7080_v30  ;;  %5217 = vmatpush3.msra.mxu1 %v7152_v50  ;;  %v8365_v30 = vld [vmem:[#allocation51_spill] sm:$0xff] }
 0xb72   :  { %2899 = vmatprep.subr.mxu0 %v7083_v31  ;;  %5218 = vmatprep.subr.mxu1 %v8225_v0  ;;  %v1985_v31 = vadd.f32 %v8365_v30, %v7318_v12  ;;  %v7692_v30 = vld [vmem:[#allocation9 + $0x1f0] sm:$0xff] }
 0xb73   :  { %2900 = vmatpush1.msra.mxu0 %v7086_v45  ;;  %5219 = vmatpush3.msra.mxu1 %v7156_v26 }
 0xb74   :  { %2901 = vmatprep.subr.mxu0 %v7089_v53  ;;  %5220 = vmatprep.subr.mxu1 %v8225_v0 }
 0xb75   :  { %2902 = vmatpush1.msra.mxu0 %v7092_v20  ;;  %5221 = vmatpush3.msra.mxu1 %v7160_v39 }
 0xb76   :  { %2903 = vmatprep.subr.mxu0 %v7095_v9  ;;  %5222 = vmatprep.subr.mxu1 %v8225_v0 }
 0xb77   :  { %2904 = vmatpush1.msra.mxu0 %v8354_v63  ;;  %5223 = vmatpush3.msra.mxu1 %v8355_v34  ;;  %v7632_v63 = vld [vmem:[#allocation9 + $0x280] sm:$0xff] }
 0xb78   :  { %2905 = vmatprep.subr.mxu0 %v8356_v17  ;;  %5224 = vmatprep.subr.mxu1 %v8225_v0  ;;  %v7635_v34 = vld [vmem:[#allocation9 + $0x260] sm:$0xff]  ;;  %v7639_v17 = vld [vmem:[#allocation9 + $0x258] sm:$0xff] }
 0xb79   :  { %2906 = vmatpush1.msra.mxu0 %v8357_v24  ;;  %5225 = vmatpush3.msra.mxu1 %v8358_v1  ;;  %v7642_v24 = vld [vmem:[#allocation9 + $0x268] sm:$0xff] }
 0xb7a   :  { %2907 = vmatprep.subr.mxu0 %v8359_v35  ;;  %5226 = vmatprep.subr.mxu1 %v8225_v0  ;;  %v7645_v1 = vld [vmem:[#allocation9 + $0x248] sm:$0xff]  ;;  %v7649_v35 = vld [vmem:[#allocation9 + $0x240] sm:$0xff] }
 0xb7b   :  { %2908 = vmatpush1.msra.mxu0 %v8360_v2  ;;  %2941 = vmatprep.mubr.f32.mxu0 %v8225_v0  ;;  %v7652_v2 = vld [vmem:[#allocation9 + $0x250] sm:$0xff] }
 0xb7c   :  { %5227 = vmatpush3.msra.mxu1 %v8361_v36  ;;  %5228 = vmatprep.mubr.msk.f32.mxu1 %vm6015_vm0, %v8225_v0  ;;  %v7655_v36 = vld [vmem:[#allocation9 + $0x230] sm:$0xff] }
 0xb7d   :  { %3044 = vmatprep.subr.mxu0 %v7561_v37  ;;  %5231 = vmatprep.subr.mxu1 %v8225_v0 }
 0xc1c   :  { %v2776_v6 = vpop.f32.mrf.mxu0  ;;  %v2847_v38 = vpop.f32.mrf.mxu1 }
 0xc1d   :  { %v2777_v18 = vadd.f32 %v2776_v6, %v8364_v52  ;;  %v2848_v62 = vadd.f32 %v2847_v38, %v7323_v33  ;;  %v7659_v6 = vld [vmem:[#allocation9 + $0x228] sm:$0xff]  ;;  %v7662_v38 = vld [vmem:[#allocation9 + $0x238] sm:$0xff] }
 0xc1e   :  { %v2778_v19 = vpop.f32.mrf.mxu0  ;;  %v5195_v21 = vpop.f32.mrf.mxu1 }
 0xc1f   :  { %v2851_v27 = vadd.f32 %v2777_v18, %v1983_v47  ;;  %v2779_v29 = vadd.f32 %v2778_v19, %v7315_v5  ;;  %v7669_v47 = vld [vmem:[#allocation9 + $0x210] sm:$0xff]  ;;  %v7672_v18 = vld [vmem:[#allocation9 + $0x220] sm:$0xff]  ;;  %v7679_v21 = vld [vmem:[#allocation9 + $0x1f8] sm:$0xff] }
 0xc20   :  { %v7675_v19 = vld [vmem:[#allocation9 + $0x200] sm:$0xff] }
 0xc21   :  { %v4235_v28 = vmul.f32 -1.442695, %v2851_v27  ;;  %v2858_v45 = vadd.f32 %v2779_v29, %v1985_v31  ;;  %v7682_v27 = vld [vmem:[#allocation9 + $0x208] sm:$0xff]  ;;  %v7689_v29 = vld [vmem:[#allocation9 + $0x1e0] sm:$0xff]  ;;  %v7695_v31 = vld [vmem:[#allocation9 + $0x1d0] sm:$0xff] }
 0xc23   :  { %5706 = vpow2.f32 %v4235_v28  ;;  %v4236_v53 = vmul.f32 -1.442695, %v2858_v45  ;;  %v7685_v28 = vld [vmem:[#allocation9 + $0x1e8] sm:$0xff] }
 0xc24   :  { %v7699_v45 = vld [vmem:[#allocation9 + $0x1c8] sm:$0xff] }
 0xc25   :  { %5708 = vpow2.f32 %v4236_v53  ;;  %v7702_v53 = vld [vmem:[#allocation9 + $0x1d8] sm:$0xff] }
 0xc30   :  { %v5707_v20 = vpop.eup %5706 }
 0xc31   :  { %v2855_v9 = vadd.f32 1.0, %v5707_v20  ;;  %v7705_v20 = vld [vmem:[#allocation9 + $0x1b8] sm:$0xff] }
 0xc32   :  { %v5709_v55 = vpop.eup %5708 }
 0xc33   :  { %5710 = vrcp.f32 %v2855_v9  ;;  %v2862_v10 = vadd.f32 1.0, %v5709_v55  ;;  %v7709_v9 = vld [vmem:[#allocation9 + $0x1b0] sm:$0xff]  ;;  %v7712_v55 = vld [vmem:[#allocation9 + $0x1c0] sm:$0xff] }
 0xc34   :  { %8368 = vst [vmem:[#allocation32_spill] sm:$0xff] %v7709_v9  ;;  %8369 = vst [vmem:[#allocation25_spill] sm:$0xff] %v7712_v55 }
 0xc35   :  { %5712 = vrcp.f32 %v2862_v10  ;;  %v7715_v10 = vld [vmem:[#allocation9 + $0x1a0] sm:$0xff] }
 0xc36   :  { %8370 = vst [vmem:[#allocation52_spill] sm:$0xff] %v7715_v10 }
 0xc40   :  { %v5711_v4 = vpop.eup %5710 }
 0xc41   :  { %v2865_v58 = vmul.f32 %v5711_v4, %v2848_v62  ;;  %v7719_v62 = vld [vmem:[#allocation9 + $0x198] sm:$0xff]  ;;  %v7722_v4 = vld [vmem:[#allocation9 + $0x1a8] sm:$0xff] }
 0xc42   :  { %v5713_v46 = vpop.eup %5712  ;;  %8371 = vst [vmem:[#allocation41_spill] sm:$0xff] %v7719_v62  ;;  %8372 = vst [vmem:[#allocation47_spill] sm:$0xff] %v7722_v4 }
 0xc43   :  { %v2866_v40 = vadd.f32 %v2865_v58, %v2093_v25  ;;  %v2868_v48 = vsub.f32 1.0, %v5713_v46  ;;  %v2870_v39 = vmul.f32 %v5713_v46, %v7492_v14  ;;  %v7729_v25 = vld [vmem:[#allocation9 + $0x180] sm:$0xff]  ;;  %v7733_v58 = vld [vmem:[#allocation9 + $0x190] sm:$0xff] }
 0xc44   :  { %8374 = vst [vmem:[#allocation50_spill] sm:$0xff] %v7729_v25  ;;  %8375 = vst [vmem:[#allocation29_spill] sm:$0xff] %v7733_v58 }
 0xc45   :  { %5714 = vtanh.f32 %v2866_v40 }
 0xc52   :  { %v5715_v50 = vpop.eup %5714 }
 0xc53   :  { %v2869_v26 = vmul.f32 %v5715_v50, %v2868_v48  ;;  %v8376_v48 = vld [vmem:[#allocation24_spill] sm:$0xff] }
 0xc54   :  { %v1989_v50 = vadd.f32 %v8376_v48, %v8334_v61 }
 0xc55   :  { %v7575_v8 = vadd.f32 %v2870_v39, %v2869_v26 }
 0xc57   :  { %8367 = vst [vmem:[#allocation39_spill] sm:$0xff] %v7575_v8  ;;  %2942 = vmatmul.mubr.f32.vlgmr.msra.gmra.mxu0 %v7575_v8  ;;  %5229 = vmatmul.mubr.f32.vlgmr.msra.gmra.mxu1 %v7575_v8 }
 0xc58   :  { %3045 = vmatpush1.msra.mxu0 %v7579_v43  ;;  %5232 = vmatpush3.msra.mxu1 %v7582_v57 }
 0xc59   :  { %3046 = vmatprep.subr.mxu0 %v7585_v49  ;;  %5233 = vmatprep.subr.mxu1 %v8225_v0 }
 0xc5a   :  { %3047 = vmatpush1.msra.mxu0 %v7589_v22  ;;  %5234 = vmatpush3.msra.mxu1 %v7592_v56 }
 0xc5b   :  { %3048 = vmatprep.subr.mxu0 %v7595_v44  ;;  %5235 = vmatprep.subr.mxu1 %v8225_v0 }
 0xc5c   :  { %3049 = vmatpush1.msra.mxu0 %v7599_v60  ;;  %5236 = vmatpush3.msra.mxu1 %v7602_v23 }
 0xc5d   :  { %3050 = vmatprep.subr.mxu0 %v7605_v54  ;;  %5237 = vmatprep.subr.mxu1 %v8225_v0 }
 0xc5e   :  { %3051 = vmatpush1.msra.mxu0 %v7609_v42  ;;  %5238 = vmatpush3.msra.mxu1 %v7612_v32 }
 0xc5f   :  { %3052 = vmatprep.subr.mxu0 %v7615_v41  ;;  %5239 = vmatprep.subr.mxu1 %v8225_v0 }
 0xc60   :  { %3053 = vmatpush1.msra.mxu0 %v7619_v3  ;;  %5240 = vmatpush3.msra.mxu1 %v7622_v13 }
 0xc61   :  { %3054 = vmatprep.subr.mxu0 %v7625_v15  ;;  %5241 = vmatprep.subr.mxu1 %v8225_v0 }
 0xc62   :  { %3055 = vmatpush1.msra.mxu0 %v7629_v59  ;;  %5242 = vmatpush3.msra.mxu1 %v7632_v63 }
 0xc63   :  { %3056 = vmatprep.subr.mxu0 %v7635_v34  ;;  %5243 = vmatprep.subr.mxu1 %v8225_v0 }
 0xc64   :  { %3057 = vmatpush1.msra.mxu0 %v7639_v17  ;;  %5244 = vmatpush3.msra.mxu1 %v7642_v24 }
 0xc65   :  { %3058 = vmatprep.subr.mxu0 %v7645_v1  ;;  %5245 = vmatprep.subr.mxu1 %v8225_v0 }
 0xc66   :  { %3059 = vmatpush1.msra.mxu0 %v7649_v35  ;;  %5246 = vmatpush3.msra.mxu1 %v7652_v2 }
 0xc67   :  { %3060 = vmatprep.subr.mxu0 %v7655_v36  ;;  %5247 = vmatprep.subr.mxu1 %v8225_v0 }
 0xc68   :  { %3061 = vmatpush1.msra.mxu0 %v7659_v6  ;;  %5248 = vmatpush3.msra.mxu1 %v7662_v38 }
 0xc69   :  { %3062 = vmatprep.subr.mxu0 %v7665_v7  ;;  %5249 = vmatprep.subr.mxu1 %v8225_v0 }
 0xc6a   :  { %3063 = vmatpush1.msra.mxu0 %v7669_v47  ;;  %5250 = vmatpush3.msra.mxu1 %v7672_v18 }
 0xc6b   :  { %3064 = vmatprep.subr.mxu0 %v7675_v19  ;;  %5251 = vmatprep.subr.mxu1 %v8225_v0 }
 0xc6c   :  { %3065 = vmatpush1.msra.mxu0 %v7679_v21  ;;  %5252 = vmatpush3.msra.mxu1 %v7682_v27 }
 0xc6d   :  { %3066 = vmatprep.subr.mxu0 %v7685_v28  ;;  %5253 = vmatprep.subr.mxu1 %v8225_v0 }
 0xc6e   :  { %3067 = vmatpush1.msra.mxu0 %v7689_v29  ;;  %5254 = vmatpush3.msra.mxu1 %v7692_v30 }
 0xc6f   :  { %3068 = vmatprep.subr.mxu0 %v7695_v31  ;;  %5255 = vmatprep.subr.mxu1 %v8225_v0 }
 0xc70   :  { %3069 = vmatpush1.msra.mxu0 %v7699_v45  ;;  %5256 = vmatpush3.msra.mxu1 %v7702_v53 }
 0xc71   :  { %3070 = vmatprep.subr.mxu0 %v7705_v20  ;;  %5257 = vmatprep.subr.mxu1 %v8225_v0 }
 0xc72   :  { %3071 = vmatpush1.msra.mxu0 %v7709_v9  ;;  %5258 = vmatpush3.msra.mxu1 %v7712_v55 }
 0xc73   :  { %3072 = vmatprep.subr.mxu0 %v7715_v10  ;;  %5259 = vmatprep.subr.mxu1 %v8225_v0 }
 0xc74   :  { %3073 = vmatpush1.msra.mxu0 %v7719_v62  ;;  %5260 = vmatpush3.msra.mxu1 %v7722_v4 }
 0xc75   :  { %3074 = vmatprep.subr.mxu0 %v7725_v16  ;;  %5261 = vmatprep.subr.mxu1 %v8225_v0  ;;  %v8377_v16 = vld [vmem:[#allocation33_spill] sm:$0xff] }
 0xc76   :  { %3075 = vmatpush1.msra.mxu0 %v7729_v25  ;;  %3108 = vmatprep.mubr.f32.mxu0 %v8225_v0  ;;  %v1991_v4 = vadd.f32 %v8377_v16, %v7318_v12 }
 0xc77   :  { %5262 = vmatpush3.msra.mxu1 %v7733_v58  ;;  %5263 = vmatprep.mubr.msk.f32.mxu1 %vm6015_vm0, %v8225_v0 }
 0xc78   :  { %3211 = vmatprep.subr.mxu0 %v7561_v37  ;;  %5266 = vmatprep.subr.mxu1 %v8225_v0 }
 0xd17   :  { %v2943_v40 = vpop.f32.mrf.mxu0  ;;  %v3014_v46 = vpop.f32.mrf.mxu1 }
 0xd18   :  { %v2944_v26 = vadd.f32 %v2943_v40, %v8364_v52  ;;  %v3015_v40 = vadd.f32 %v3014_v46, %v7323_v33  ;;  %v8383_v46 = vld [vmem:[#allocation47_spill] sm:$0xff] }
 0xd19   :  { %v2945_v39 = vpop.f32.mrf.mxu0  ;;  %v5230_v14 = vpop.f32.mrf.mxu1 }
 0xd1a   :  { %v3018_v51 = vadd.f32 %v2944_v26, %v1989_v50  ;;  %v2946_v58 = vadd.f32 %v2945_v39, %v7315_v5  ;;  %v8378_v14 = vld [vmem:[#allocation55_spill] sm:$0xff]  ;;  %v8384_v39 = vld [vmem:[#allocation26_spill] sm:$0xff] }
 0xd1c   :  { %v4237_v25 = vmul.f32 -1.442695, %v3018_v51  ;;  %v3025_v37 = vadd.f32 %v2946_v58, %v1991_v4  ;;  %v2098_v51 = vadd.f32 %v8378_v14, %v7327_v11  ;;  %v8382_v58 = vld [vmem:[#allocation41_spill] sm:$0xff]  ;;  %v8387_v14 = vld [vmem:[#allocation38_spill] sm:$0xff] }
 0xd1e   :  { %5716 = vpow2.f32 %v4237_v25  ;;  %v4238_v62 = vmul.f32 -1.442695, %v3025_v37 }
 0xd20   :  { %5718 = vpow2.f32 %v4238_v62 }
 0xd2b   :  { %v5717_v10 = vpop.eup %5716 }
 0xd2c   :  { %v3022_v55 = vadd.f32 1.0, %v5717_v10 }
 0xd2d   :  { %v5719_v9 = vpop.eup %5718 }
 0xd2e   :  { %5720 = vrcp.f32 %v3022_v55  ;;  %v3029_v48 = vadd.f32 1.0, %v5719_v9  ;;  %v8380_v9 = vld [vmem:[#allocation25_spill] sm:$0xff]  ;;  %v8381_v55 = vld [vmem:[#allocation52_spill] sm:$0xff] }
 0xd30   :  { %5722 = vrcp.f32 %v3029_v48  ;;  %v8385_v48 = vld [vmem:[#allocation50_spill] sm:$0xff] }
 0xd3b   :  { %v5721_v52 = vpop.eup %5720 }
 0xd3c   :  { %v3032_v50 = vmul.f32 %v5721_v52, %v3015_v40  ;;  %v8379_v52 = vld [vmem:[#allocation32_spill] sm:$0xff]  ;;  %v8386_v40 = vld [vmem:[#allocation29_spill] sm:$0xff] }
 0xd3d   :  { %v5723_v16 = vpop.eup %5722 }
 0xd3e   :  { %v3033_v26 = vadd.f32 %v3032_v50, %v2098_v51  ;;  %v3035_v25 = vsub.f32 1.0, %v5723_v16  ;;  %v3037_v62 = vmul.f32 %v5723_v16, %v7575_v8 }
 0xd40   :  { %5724 = vtanh.f32 %v3033_v26  ;;  %v8388_v26 = vld [vmem:[#allocation28_spill] sm:$0xff] }
 0xd41   :  { %v1995_v16 = vadd.f32 %v8388_v26, %v8334_v61 }
 0xd4d   :  { %v5725_v4 = vpop.eup %5724 }
 0xd4e   :  { %v3036_v37 = vmul.f32 %v5725_v4, %v3035_v25  ;;  %v8389_v25 = vld [vmem:[#allocation48_spill] sm:$0xff] }
 0xd50   :  { %v7750_v10 = vadd.f32 %v3037_v62, %v3036_v37 }
 0xd52   :  { %3109 = vmatmul.mubr.f32.vlgmr.msra.gmra.mxu0 %v7750_v10  ;;  %5264 = vmatmul.mubr.f32.vlgmr.msra.gmra.mxu1 %v7750_v10 }
 0xd53   :  { %3212 = vmatpush1.msra.mxu0 %v7579_v43  ;;  %5267 = vmatpush3.msra.mxu1 %v7582_v57 }
 0xd54   :  { %3213 = vmatprep.subr.mxu0 %v7585_v49  ;;  %5268 = vmatprep.subr.mxu1 %v8225_v0 }
 0xd55   :  { %3214 = vmatpush1.msra.mxu0 %v7589_v22  ;;  %5269 = vmatpush3.msra.mxu1 %v7592_v56 }
 0xd56   :  { %3215 = vmatprep.subr.mxu0 %v7595_v44  ;;  %5270 = vmatprep.subr.mxu1 %v8225_v0 }
 0xd57   :  { %3216 = vmatpush1.msra.mxu0 %v7599_v60  ;;  %5271 = vmatpush3.msra.mxu1 %v7602_v23 }
 0xd58   :  { %3217 = vmatprep.subr.mxu0 %v7605_v54  ;;  %5272 = vmatprep.subr.mxu1 %v8225_v0 }
 0xd59   :  { %3218 = vmatpush1.msra.mxu0 %v7609_v42  ;;  %5273 = vmatpush3.msra.mxu1 %v7612_v32 }
 0xd5a   :  { %3219 = vmatprep.subr.mxu0 %v7615_v41  ;;  %5274 = vmatprep.subr.mxu1 %v8225_v0 }
 0xd5b   :  { %3220 = vmatpush1.msra.mxu0 %v7619_v3  ;;  %5275 = vmatpush3.msra.mxu1 %v7622_v13 }
 0xd5c   :  { %3221 = vmatprep.subr.mxu0 %v7625_v15  ;;  %5276 = vmatprep.subr.mxu1 %v8225_v0 }
 0xd5d   :  { %3222 = vmatpush1.msra.mxu0 %v7629_v59  ;;  %5277 = vmatpush3.msra.mxu1 %v7632_v63 }
 0xd5e   :  { %3223 = vmatprep.subr.mxu0 %v7635_v34  ;;  %5278 = vmatprep.subr.mxu1 %v8225_v0 }
 0xd5f   :  { %3224 = vmatpush1.msra.mxu0 %v7639_v17  ;;  %5279 = vmatpush3.msra.mxu1 %v7642_v24 }
 0xd60   :  { %3225 = vmatprep.subr.mxu0 %v7645_v1  ;;  %5280 = vmatprep.subr.mxu1 %v8225_v0 }
 0xd61   :  { %3226 = vmatpush1.msra.mxu0 %v7649_v35  ;;  %5281 = vmatpush3.msra.mxu1 %v7652_v2 }
 0xd62   :  { %3227 = vmatprep.subr.mxu0 %v7655_v36  ;;  %5282 = vmatprep.subr.mxu1 %v8225_v0 }
 0xd63   :  { %3228 = vmatpush1.msra.mxu0 %v7659_v6  ;;  %5283 = vmatpush3.msra.mxu1 %v7662_v38 }
 0xd64   :  { %3229 = vmatprep.subr.mxu0 %v7665_v7  ;;  %5284 = vmatprep.subr.mxu1 %v8225_v0 }
 0xd65   :  { %3230 = vmatpush1.msra.mxu0 %v7669_v47  ;;  %5285 = vmatpush3.msra.mxu1 %v7672_v18 }
 0xd66   :  { %3231 = vmatprep.subr.mxu0 %v7675_v19  ;;  %5286 = vmatprep.subr.mxu1 %v8225_v0 }
 0xd67   :  { %3232 = vmatpush1.msra.mxu0 %v7679_v21  ;;  %5287 = vmatpush3.msra.mxu1 %v7682_v27 }
 0xd68   :  { %3233 = vmatprep.subr.mxu0 %v7685_v28  ;;  %5288 = vmatprep.subr.mxu1 %v8225_v0 }
 0xd69   :  { %3234 = vmatpush1.msra.mxu0 %v7689_v29  ;;  %5289 = vmatpush3.msra.mxu1 %v7692_v30 }
 0xd6a   :  { %3235 = vmatprep.subr.mxu0 %v7695_v31  ;;  %5290 = vmatprep.subr.mxu1 %v8225_v0 }
 0xd6b   :  { %3236 = vmatpush1.msra.mxu0 %v7699_v45  ;;  %5291 = vmatpush3.msra.mxu1 %v7702_v53 }
 0xd6c   :  { %3237 = vmatprep.subr.mxu0 %v7705_v20  ;;  %5292 = vmatprep.subr.mxu1 %v8225_v0 }
 0xd6d   :  { %3238 = vmatpush1.msra.mxu0 %v8379_v52  ;;  %5293 = vmatpush3.msra.mxu1 %v8380_v9 }
 0xd6e   :  { %3239 = vmatprep.subr.mxu0 %v8381_v55  ;;  %5294 = vmatprep.subr.mxu1 %v8225_v0 }
 0xd6f   :  { %3240 = vmatpush1.msra.mxu0 %v8382_v58  ;;  %5295 = vmatpush3.msra.mxu1 %v8383_v46 }
 0xd70   :  { %3241 = vmatprep.subr.mxu0 %v8384_v39  ;;  %5296 = vmatprep.subr.mxu1 %v8225_v0  ;;  %v8390_v39 = vld [vmem:[#allocation43_spill] sm:$0xff] }
 0xd71   :  { %3242 = vmatpush1.msra.mxu0 %v8385_v48  ;;  %3275 = vmatprep.mubr.f32.mxu0 %v8225_v0  ;;  %v1997_v46 = vadd.f32 %v8390_v39, %v7318_v12 }
 0xd72   :  { %5297 = vmatpush3.msra.mxu1 %v8386_v40  ;;  %5298 = vmatprep.mubr.msk.f32.mxu1 %vm6015_vm0, %v8225_v0 }
 0xd73   :  { %3378 = vmatprep.subr.mxu0 %v8387_v14  ;;  %5301 = vmatprep.subr.mxu1 %v8225_v0 }
 0xe12   :  { %v3110_v51 = vpop.f32.mrf.mxu0  ;;  %v3181_v50 = vpop.f32.mrf.mxu1 }
 0xe13   :  { %v3111_v4 = vadd.f32 %v3110_v51, %v8389_v25  ;;  %v3182_v51 = vadd.f32 %v3181_v50, %v7323_v33  ;;  %v3558_v50 = vld [vmem:[#allocation12 + $0x78] sm:$0xff] }
 0xe14   :  { %v3112_v37 = vpop.f32.mrf.mxu0  ;;  %v5265_v62 = vpop.f32.mrf.mxu1 }
 0xe15   :  { %v3185_v8 = vadd.f32 %v3111_v4, %v1995_v16  ;;  %v3113_v40 = vadd.f32 %v3112_v37, %v7315_v5  ;;  %v8391_v16 = vld [vmem:[#allocation44_spill] sm:$0xff] }
 0xe16   :  { %v3557_v62 = vld [vmem:[#allocation12 + $0x70] sm:$0xff] }
 0xe17   :  { %v4239_v48 = vmul.f32 -1.442695, %v3185_v8  ;;  %v3192_v14 = vadd.f32 %v3113_v40, %v1997_v46  ;;  %v2103_v8 = vadd.f32 %v8391_v16, %v7327_v11  ;;  %v3555_v16 = vld [vmem:[#allocation12 + $0x60] sm:$0xff] }
 0xe19   :  { %5726 = vpow2.f32 %v4239_v48  ;;  %v4240_v58 = vmul.f32 -1.442695, %v3192_v14  ;;  %v3572_v14 = vld [vmem:[#allocation12 + $0xe0] sm:$0xff] }
 0xe1b   :  { %5728 = vpow2.f32 %v4240_v58 }
 0xe26   :  { %v5727_v55 = vpop.eup %5726 }
 0xe27   :  { %v3189_v9 = vadd.f32 1.0, %v5727_v55 }
 0xe28   :  { %v5729_v52 = vpop.eup %5728 }
 0xe29   :  { %5730 = vrcp.f32 %v3189_v9  ;;  %v3196_v26 = vadd.f32 1.0, %v5729_v52  ;;  %v3575_v52 = vld [vmem:[#allocation12 + $0xf8] sm:$0xff]  ;;  %v3574_v9 = vld [vmem:[#allocation12 + $0xf0] sm:$0xff] }
 0xe2b   :  { %5732 = vrcp.f32 %v3196_v26  ;;  %v3556_v26 = vld [vmem:[#allocation12 + $0x68] sm:$0xff] }
 0xe36   :  { %v5731_v25 = vpop.eup %5730 }
 0xe37   :  { %v3199_v4 = vmul.f32 %v5731_v25, %v3182_v51  ;;  %v3573_v25 = vld [vmem:[#allocation12 + $0xe8] sm:$0xff]  ;;  %v3571_v51 = vld [vmem:[#allocation12 + $0xd8] sm:$0xff] }
 0xe38   :  { %v5733_v39 = vpop.eup %5732 }
 0xe39   :  { %v3200_v37 = vadd.f32 %v3199_v4, %v2103_v8  ;;  %v3202_v48 = vsub.f32 1.0, %v5733_v39  ;;  %v3204_v58 = vmul.f32 %v5733_v39, %v7750_v10  ;;  %v3570_v8 = vld [vmem:[#allocation12 + $0xd0] sm:$0xff]  ;;  %v3554_v4 = vld [vmem:[#allocation12 + $0x58] sm:$0xff] }
 0xe3a   :  { %v3553_v39 = vld [vmem:[#allocation12 + $0x50] sm:$0xff] }
 0xe3b   :  { %5734 = vtanh.f32 %v3200_v37  ;;  %v3569_v37 = vld [vmem:[#allocation12 + $0xc8] sm:$0xff] }
 0xe48   :  { %v5735_v46 = vpop.eup %5734 }
 0xe49   :  { %v3203_v40 = vmul.f32 %v5735_v46, %v3202_v48  ;;  %v3568_v48 = vld [vmem:[#allocation12 + $0xc0] sm:$0xff]  ;;  %v3552_v46 = vld [vmem:[#allocation12 + $0x48] sm:$0xff] }
 0xe4b   :  { %v7831_v55 = vadd.f32 %v3204_v58, %v3203_v40  ;;  %v3567_v40 = vld [vmem:[#allocation12 + $0xb8] sm:$0xff]  ;;  %v3551_v58 = vld [vmem:[#allocation12 + $0x40] sm:$0xff] }
 0xe4d   :  { %3276 = vmatmul.mubr.f32.vlgmr.msra.gmra.mxu0 %v7831_v55  ;;  %5299 = vmatmul.mubr.f32.vlgmr.msra.gmra.mxu1 %v7831_v55 }
 0xe4e   :  { %3379 = vmatpush1.msra.mxu0 %v7579_v43  ;;  %5302 = vmatpush3.msra.mxu1 %v7582_v57  ;;  %v8392_v43 = vld [vmem:[#allocation32_spill] sm:$0xff]  ;;  %v8393_v57 = vld [vmem:[#allocation25_spill] sm:$0xff] }
 0xe4f   :  { %3380 = vmatprep.subr.mxu0 %v7585_v49  ;;  %5303 = vmatprep.subr.mxu1 %v8225_v0  ;;  %v8394_v49 = vld [vmem:[#allocation52_spill] sm:$0xff] }
 0xe50   :  { %3381 = vmatpush1.msra.mxu0 %v7589_v22  ;;  %5304 = vmatpush3.msra.mxu1 %v7592_v56  ;;  %v8395_v22 = vld [vmem:[#allocation41_spill] sm:$0xff]  ;;  %v8396_v56 = vld [vmem:[#allocation47_spill] sm:$0xff] }
 0xe51   :  { %3382 = vmatprep.subr.mxu0 %v7595_v44  ;;  %5305 = vmatprep.subr.mxu1 %v8225_v0  ;;  %v8397_v44 = vld [vmem:[#allocation26_spill] sm:$0xff] }
 0xe52   :  { %3383 = vmatpush1.msra.mxu0 %v7599_v60  ;;  %5306 = vmatpush3.msra.mxu1 %v7602_v23  ;;  %v8398_v60 = vld [vmem:[#allocation50_spill] sm:$0xff]  ;;  %v8399_v23 = vld [vmem:[#allocation29_spill] sm:$0xff] }
 0xe53   :  { %3384 = vmatprep.subr.mxu0 %v7605_v54  ;;  %5307 = vmatprep.subr.mxu1 %v8225_v0 }
 0xe54   :  { %3385 = vmatpush1.msra.mxu0 %v7609_v42  ;;  %5308 = vmatpush3.msra.mxu1 %v7612_v32  ;;  %v8400_v32 = vld [vmem:[#allocation54_spill] sm:$0xff] }
 0xe55   :  { %3386 = vmatprep.subr.mxu0 %v7615_v41  ;;  %5309 = vmatprep.subr.mxu1 %v8225_v0  ;;  %v2001_v41 = vadd.f32 %v8400_v32, %v8334_v61  ;;  %v3561_v32 = vld [vmem:[#allocation12 + $0x88] sm:$0xff] }
 0xe56   :  { %3387 = vmatpush1.msra.mxu0 %v7619_v3  ;;  %5310 = vmatpush3.msra.mxu1 %v7622_v13  ;;  %v8401_v3 = vld [vmem:[#allocation48_spill] sm:$0xff] }
 0xe57   :  { %3388 = vmatprep.subr.mxu0 %v7625_v15  ;;  %5311 = vmatprep.subr.mxu1 %v8225_v0 }
 0xe58   :  { %3389 = vmatpush1.msra.mxu0 %v7629_v59  ;;  %5312 = vmatpush3.msra.mxu1 %v7632_v63 }
 0xe59   :  { %3390 = vmatprep.subr.mxu0 %v7635_v34  ;;  %5313 = vmatprep.subr.mxu1 %v8225_v0 }
 0xe5a   :  { %3391 = vmatpush1.msra.mxu0 %v7639_v17  ;;  %5314 = vmatpush3.msra.mxu1 %v7642_v24  ;;  %v8402_v24 = vld [vmem:[#allocation22_spill] sm:$0xff] }
 0xe5b   :  { %3392 = vmatprep.subr.mxu0 %v7645_v1  ;;  %5315 = vmatprep.subr.mxu1 %v8225_v0  ;;  %v2003_v1 = vadd.f32 %v8402_v24, %v7318_v12 }
 0xe5c   :  { %3393 = vmatpush1.msra.mxu0 %v7649_v35  ;;  %5316 = vmatpush3.msra.mxu1 %v7652_v2 }
 0xe5d   :  { %3394 = vmatprep.subr.mxu0 %v7655_v36  ;;  %5317 = vmatprep.subr.mxu1 %v8225_v0 }
 0xe5e   :  { %3395 = vmatpush1.msra.mxu0 %v7659_v6  ;;  %5318 = vmatpush3.msra.mxu1 %v7662_v38 }
 0xe5f   :  { %3396 = vmatprep.subr.mxu0 %v7665_v7  ;;  %5319 = vmatprep.subr.mxu1 %v8225_v0 }
 0xe60   :  { %3397 = vmatpush1.msra.mxu0 %v7669_v47  ;;  %5320 = vmatpush3.msra.mxu1 %v7672_v18 }
 0xe61   :  { %3398 = vmatprep.subr.mxu0 %v7675_v19  ;;  %5321 = vmatprep.subr.mxu1 %v8225_v0  ;;  %v8403_v19 = vld [vmem:[#allocation30_spill] sm:$0xff] }
 0xe62   :  { %3399 = vmatpush1.msra.mxu0 %v7679_v21  ;;  %5322 = vmatpush3.msra.mxu1 %v7682_v27  ;;  %v2108_v21 = vadd.f32 %v8403_v19, %v7327_v11 }
 0xe63   :  { %3400 = vmatprep.subr.mxu0 %v7685_v28  ;;  %5323 = vmatprep.subr.mxu1 %v8225_v0 }
 0xe64   :  { %3401 = vmatpush1.msra.mxu0 %v7689_v29  ;;  %5324 = vmatpush3.msra.mxu1 %v7692_v30 }
 0xe65   :  { %3402 = vmatprep.subr.mxu0 %v7695_v31  ;;  %5325 = vmatprep.subr.mxu1 %v8225_v0 }
 0xe66   :  { %3403 = vmatpush1.msra.mxu0 %v7699_v45  ;;  %5326 = vmatpush3.msra.mxu1 %v7702_v53 }
 0xe67   :  { %3404 = vmatprep.subr.mxu0 %v7705_v20  ;;  %5327 = vmatprep.subr.mxu1 %v8225_v0 }
 0xe68   :  { %3405 = vmatpush1.msra.mxu0 %v8392_v43  ;;  %5328 = vmatpush3.msra.mxu1 %v8393_v57  ;;  %v3566_v43 = vld [vmem:[#allocation12 + $0xb0] sm:$0xff]  ;;  %v3550_v57 = vld [vmem:[#allocation12 + $0x38] sm:$0xff] }
 0xe69   :  { %3406 = vmatprep.subr.mxu0 %v8394_v49  ;;  %5329 = vmatprep.subr.mxu1 %v8225_v0  ;;  %v3565_v49 = vld [vmem:[#allocation12 + $0xa8] sm:$0xff] }
 0xe6a   :  { %3407 = vmatpush1.msra.mxu0 %v8395_v22  ;;  %5330 = vmatpush3.msra.mxu1 %v8396_v56  ;;  %v3549_v22 = vld [vmem:[#allocation12 + $0x30] sm:$0xff]  ;;  %v3564_v56 = vld [vmem:[#allocation12 + $0xa0] sm:$0xff] }
 0xe6b   :  { %3408 = vmatprep.subr.mxu0 %v8397_v44  ;;  %5331 = vmatprep.subr.mxu1 %v8225_v0  ;;  %v3548_v44 = vld [vmem:[#allocation12 + $0x28] sm:$0xff] }
 0xe6c   :  { %3409 = vmatpush1.msra.mxu0 %v8398_v60  ;;  %3442 = vmatprep.mubr.f32.mxu0 %v8225_v0  ;;  %v3563_v60 = vld [vmem:[#allocation12 + $0x98] sm:$0xff] }
 0xe6d   :  { %5332 = vmatpush3.msra.mxu1 %v8399_v23  ;;  %5333 = vmatprep.mubr.msk.f32.mxu1 %vm6015_vm0, %v8225_v0  ;;  %v3547_v23 = vld [vmem:[#allocation12 + $0x20] sm:$0xff] }
 0xe6e   :  { %5336 = vmatprep.subr.mxu0 %v8225_v0  ;;  %5371 = vmatprep.subr.mxu1 %v8225_v0 }
 0xf0d   :  { %v3277_v54 = vpop.f32.mrf.mxu0  ;;  %v3348_v42 = vpop.f32.mrf.mxu1 }
 0xf0e   :  { %v3278_v13 = vadd.f32 %v3277_v54, %v8401_v3  ;;  %v3349_v47 = vadd.f32 %v3348_v42, %v7323_v33  ;;  %v3562_v54 = vld [vmem:[#allocation12 + $0x90] sm:$0xff]  ;;  %v3546_v42 = vld [vmem:[#allocation12 + $0x18] sm:$0xff] }
 0xf0f   :  { %v3279_v15 = vpop.f32.mrf.mxu0  ;;  %v5300_v59 = vpop.f32.mrf.mxu1 }
 0xf10   :  { %v3352_v63 = vadd.f32 %v3278_v13, %v2001_v41  ;;  %v3280_v17 = vadd.f32 %v3279_v15, %v7315_v5  ;;  %v3545_v41 = vld [vmem:[#allocation12 + $0x10] sm:$0xff]  ;;  %v3560_v13 = vld [vmem:[#allocation12 + $0x80] sm:$0xff]  ;;  %v3544_v15 = vld [vmem:[#allocation12 + $0x8] sm:$0xff] }
 0xf11   :  { %v3543_v59 = vld [vmem:[#allocation12] sm:$0xff] }
 0xf12   :  { %v4241_v34 = vmul.f32 -1.442695, %v3352_v63  ;;  %v3359_v35 = vadd.f32 %v3280_v17, %v2003_v1  ;;  %v8404_v17 = vld [vmem:[#allocation27_spill] sm:$0xff] }
 0xf13   :  { %v2007_v24 = vadd.f32 %v8404_v17, %v8334_v61  ;;  %v3825_v17 = vld [vmem:[#allocation13 + $0x40] sm:$0xff] }
 0xf14   :  { %5736 = vpow2.f32 %v4241_v34  ;;  %v4242_v2 = vmul.f32 -1.442695, %v3359_v35 }
 0xf16   :  { %5738 = vpow2.f32 %v4242_v2 }
 0xf21   :  { %v5737_v36 = vpop.eup %5736 }
 0xf22   :  { %v3356_v6 = vadd.f32 1.0, %v5737_v36 }
 0xf23   :  { %v5739_v38 = vpop.eup %5738 }
 0xf24   :  { %5740 = vrcp.f32 %v3356_v6  ;;  %v3363_v7 = vadd.f32 1.0, %v5739_v38 }
 0xf26   :  { %5742 = vrcp.f32 %v3363_v7  ;;  %v8405_v7 = vld [vmem:[#allocation53_spill] sm:$0xff] }
 0xf31   :  { %v5741_v18 = vpop.eup %5740 }
 0xf32   :  { %v3366_v27 = vmul.f32 %v5741_v18, %v3349_v47  ;;  %v2009_v47 = vadd.f32 %v8405_v7, %v7318_v12  ;;  %v8407_v12 = vld [vmem:[#allocation40_spill] sm:$0xff]  ;;  %v3821_v7 = vld [vmem:[#allocation13 + $0x20] sm:$0xff] }
 0xf33   :  { %v5743_v29 = vpop.eup %5742 }
 0xf34   :  { %v3367_v28 = vadd.f32 %v3366_v27, %v2108_v21  ;;  %v3369_v30 = vsub.f32 1.0, %v5743_v29  ;;  %v3371_v53 = vmul.f32 %v5743_v29, %v7831_v55 }
 0xf36   :  { %5744 = vtanh.f32 %v3367_v28 }
 0xf43   :  { %v5745_v31 = vpop.eup %5744 }
 0xf44   :  { %v3370_v45 = vmul.f32 %v5745_v31, %v3369_v30  ;;  %v8406_v30 = vld [vmem:[#allocation23_spill] sm:$0xff] }
 0xf45   :  { %v2113_v31 = vadd.f32 %v8406_v30, %v7327_v11  ;;  %v4021_v30 = vld [vmem:[#allocation13 + $0x178] sm:$0xff] }
 0xf46   :  { %v7912_v20 = vadd.f32 %v3371_v53, %v3370_v45  ;;  %v8408_v53 = vld [vmem:[#allocation31_spill] sm:$0xff] }
 0xf48   :  { %3443 = vmatmul.mubr.f32.vlgmr.msra.gmra.mxu0 %v7912_v20  ;;  %5334 = vmatmul.mubr.f32.vlgmr.msra.gmra.mxu1 %v7912_v20 }
 0xf49   :  { %5368 = vmatprep.mubr.msk.f32.mxu0 %vm6015_vm0, %v8225_v0  ;;  %5403 = vmatprep.mubr.msk.f32.mxu1 %vm6015_vm0, %v8225_v0 }
 0xf4a   :  { %5337 = vmatpush3.msra.mxu0 %v3575_v52  ;;  %5372 = vmatpush3.msra.mxu1 %v3558_v50  ;;  %v2539_v52 = vmax.f32 %v8408_v53, %v8407_v12  ;;  %v8409_v50 = vld [vmem:[#allocation46_spill] sm:$0xff] }
 0xf4b   :  { %5338 = vmatprep.subr.mxu0 %v8225_v0  ;;  %5373 = vmatprep.subr.mxu1 %v8225_v0 }
 0xf4c   :  { %5339 = vmatpush3.msra.mxu0 %v3574_v9  ;;  %5374 = vmatpush3.msra.mxu1 %v3557_v62  ;;  %v2538_v9 = vadd.f32 %v8407_v12, %v8408_v53  ;;  %v3923_v12 = vld [vmem:[#allocation13 + $0xe0] sm:$0xff]  ;;  %v4019_v53 = vld [vmem:[#allocation13 + $0x168] sm:$0xff] }
 0xf4d   :  { %5340 = vmatprep.subr.mxu0 %v8225_v0  ;;  %5375 = vmatprep.subr.mxu1 %v8225_v0 }
 0xf4e   :  { %5341 = vmatpush3.msra.mxu0 %v3573_v25  ;;  %5376 = vmatpush3.msra.mxu1 %v3556_v26  ;;  %v2706_v25 = vmax.f32 %v2539_v52, %v8409_v50  ;;  %v2705_v62 = vadd.f32 %v8409_v50, %v2538_v9  ;;  %v3922_v52 = vld [vmem:[#allocation13 + $0xd8] sm:$0xff]  ;;  %v4018_v9 = vld [vmem:[#allocation13 + $0x160] sm:$0xff]  ;;  %v3921_v50 = vld [vmem:[#allocation13 + $0xd0] sm:$0xff] }
 0xf4f   :  { %5342 = vmatprep.subr.mxu0 %v8225_v0  ;;  %5377 = vmatprep.subr.mxu1 %v8225_v0 }
 0xf50   :  { %5343 = vmatpush3.msra.mxu0 %v3572_v14  ;;  %5378 = vmatpush3.msra.mxu1 %v3555_v16 }
 0xf51   :  { %5344 = vmatprep.subr.mxu0 %v8225_v0  ;;  %5379 = vmatprep.subr.mxu1 %v8225_v0 }
 0xf52   :  { %5345 = vmatpush3.msra.mxu0 %v3571_v51  ;;  %5380 = vmatpush3.msra.mxu1 %v3554_v4 }
 0xf53   :  { %5346 = vmatprep.subr.mxu0 %v8225_v0  ;;  %5381 = vmatprep.subr.mxu1 %v8225_v0 }
 0xf54   :  { %5347 = vmatpush3.msra.mxu0 %v3570_v8  ;;  %5382 = vmatpush3.msra.mxu1 %v3553_v39 }
 0xf55   :  { %5348 = vmatprep.subr.mxu0 %v8225_v0  ;;  %5383 = vmatprep.subr.mxu1 %v8225_v0 }
 0xf56   :  { %5349 = vmatpush3.msra.mxu0 %v3569_v37  ;;  %5384 = vmatpush3.msra.mxu1 %v3552_v46 }
 0xf57   :  { %5350 = vmatprep.subr.mxu0 %v8225_v0  ;;  %5385 = vmatprep.subr.mxu1 %v8225_v0 }
 0xf58   :  { %5351 = vmatpush3.msra.mxu0 %v3568_v48  ;;  %5386 = vmatpush3.msra.mxu1 %v3551_v58 }
 0xf59   :  { %5352 = vmatprep.subr.mxu0 %v8225_v0  ;;  %5387 = vmatprep.subr.mxu1 %v8225_v0 }
 0xf5a   :  { %5353 = vmatpush3.msra.mxu0 %v3567_v40  ;;  %5388 = vmatpush3.msra.mxu1 %v3550_v57 }
 0xf5b   :  { %5354 = vmatprep.subr.mxu0 %v8225_v0  ;;  %5389 = vmatprep.subr.mxu1 %v8225_v0 }
 0xf5c   :  { %5355 = vmatpush3.msra.mxu0 %v3566_v43  ;;  %5390 = vmatpush3.msra.mxu1 %v3549_v22 }
 0xf5d   :  { %5356 = vmatprep.subr.mxu0 %v8225_v0  ;;  %5391 = vmatprep.subr.mxu1 %v8225_v0 }
 0xf5e   :  { %5357 = vmatpush3.msra.mxu0 %v3565_v49  ;;  %5392 = vmatpush3.msra.mxu1 %v3548_v44  ;;  %v3732_v49 = vld [vmem:[#allocation12 + $0x178] sm:$0xff] }
 0xf5f   :  { %5358 = vmatprep.subr.mxu0 %v8225_v0  ;;  %5393 = vmatprep.subr.mxu1 %v8225_v0  ;;  %v3832_v44 = vld [vmem:[#allocation13 + $0x78] sm:$0xff] }
 0xf60   :  { %5359 = vmatpush3.msra.mxu0 %v3564_v56  ;;  %5394 = vmatpush3.msra.mxu1 %v3547_v23  ;;  %v3731_v56 = vld [vmem:[#allocation12 + $0x170] sm:$0xff]  ;;  %v3830_v23 = vld [vmem:[#allocation13 + $0x68] sm:$0xff] }
 0xf61   :  { %5360 = vmatprep.subr.mxu0 %v8225_v0  ;;  %5395 = vmatprep.subr.mxu1 %v8225_v0 }
 0xf62   :  { %5361 = vmatpush3.msra.mxu0 %v3563_v60  ;;  %5396 = vmatpush3.msra.mxu1 %v3546_v42  ;;  %v3831_v60 = vld [vmem:[#allocation13 + $0x70] sm:$0xff]  ;;  %v3829_v42 = vld [vmem:[#allocation13 + $0x60] sm:$0xff] }
 0xf63   :  { %5362 = vmatprep.subr.mxu0 %v8225_v0  ;;  %5397 = vmatprep.subr.mxu1 %v8225_v0 }
 0xf64   :  { %5363 = vmatpush3.msra.mxu0 %v3562_v54  ;;  %5398 = vmatpush3.msra.mxu1 %v3545_v41  ;;  %v3728_v54 = vld [vmem:[#allocation12 + $0x158] sm:$0xff] }
 0xf65   :  { %5364 = vmatprep.subr.mxu0 %v8225_v0  ;;  %5399 = vmatprep.subr.mxu1 %v8225_v0  ;;  %v3828_v41 = vld [vmem:[#allocation13 + $0x58] sm:$0xff] }
 0xf66   :  { %5365 = vmatpush3.msra.mxu0 %v3561_v32  ;;  %5400 = vmatpush3.msra.mxu1 %v3544_v15  ;;  %v3727_v32 = vld [vmem:[#allocation12 + $0x150] sm:$0xff] }
 0xf67   :  { %5366 = vmatprep.subr.mxu0 %v8225_v0  ;;  %5401 = vmatprep.subr.mxu1 %v8225_v0  ;;  %v3827_v15 = vld [vmem:[#allocation13 + $0x50] sm:$0xff] }
 0xf68   :  { %5367 = vmatpush3.msra.mxu0 %v3560_v13  ;;  %5402 = vmatpush3.msra.mxu1 %v3543_v59  ;;  %v3726_v13 = vld [vmem:[#allocation12 + $0x148] sm:$0xff]  ;;  %v3725_v59 = vld [vmem:[#allocation12 + $0x140] sm:$0xff] }
 0xf69   :  { %5406 = vmatprep.subr.mxu0 %v8225_v0  ;;  %5441 = vmatprep.subr.mxu1 %v8225_v0 }
0x1008   :  { %v3444_v63 = vpop.f32.mrf.mxu0  ;;  %v3515_v34 = vpop.f32.mrf.mxu1 }
0x1009   :  { %v3445_v1 = vadd.f32 %v3444_v63, %v8401_v3  ;;  %v3516_v3 = vadd.f32 %v3515_v34, %v7323_v33  ;;  %v8410_v33 = vld [vmem:[#allocation39_spill] sm:$0xff]  ;;  %v3724_v34 = vld [vmem:[#allocation12 + $0x138] sm:$0xff] }
0x100a   :  { %v3446_v35 = vpop.f32.mrf.mxu0  ;;  %v5335_v2 = vpop.f32.mrf.mxu1  ;;  %v2873_v26 = vmax.f32 %v2706_v25, %v8410_v33  ;;  %v2872_v51 = vadd.f32 %v8410_v33, %v2705_v62  ;;  %v3826_v63 = vld [vmem:[#allocation13 + $0x48] sm:$0xff]  ;;  %v4017_v25 = vld [vmem:[#allocation13 + $0x158] sm:$0xff]  ;;  %v3919_v33 = vld [vmem:[#allocation13 + $0xc0] sm:$0xff] }
0x100b   :  { %v3519_v36 = vadd.f32 %v3445_v1, %v2007_v24  ;;  %v3447_v38 = vadd.f32 %v3446_v35, %v7315_v5  ;;  %v3723_v24 = vld [vmem:[#allocation12 + $0x130] sm:$0xff]  ;;  %v3824_v1 = vld [vmem:[#allocation13 + $0x38] sm:$0xff]  ;;  %v3722_v35 = vld [vmem:[#allocation12 + $0x128] sm:$0xff] }
0x100c   :  { %v3040_v16 = vmax.f32 %v2873_v26, %v7750_v10  ;;  %v3039_v8 = vadd.f32 %v7750_v10, %v2872_v51  ;;  %v3823_v2 = vld [vmem:[#allocation13 + $0x30] sm:$0xff]  ;;  %v3920_v62 = vld [vmem:[#allocation13 + $0xc8] sm:$0xff]  ;;  %v3918_v51 = vld [vmem:[#allocation13 + $0xb8] sm:$0xff] }
0x100d   :  { %v4243_v6 = vmul.f32 -1.442695, %v3519_v36  ;;  %v3526_v18 = vadd.f32 %v3447_v38, %v2009_v47  ;;  %v3721_v36 = vld [vmem:[#allocation12 + $0x120] sm:$0xff]  ;;  %v3720_v38 = vld [vmem:[#allocation12 + $0x118] sm:$0xff]  ;;  %v3719_v47 = vld [vmem:[#allocation12 + $0x110] sm:$0xff] }
0x100e   :  { %v3207_v39 = vmax.f32 %v3040_v16, %v7831_v55  ;;  %v3206_v46 = vadd.f32 %v7831_v55, %v3039_v8  ;;  %v3730_v55 = vld [vmem:[#allocation12 + $0x168] sm:$0xff]  ;;  %v3917_v16 = vld [vmem:[#allocation13 + $0xb0] sm:$0xff]  ;;  %v4013_v8 = vld [vmem:[#allocation13 + $0x138] sm:$0xff] }
0x100f   :  { %5746 = vpow2.f32 %v4243_v6  ;;  %v4244_v19 = vmul.f32 -1.442695, %v3526_v18  ;;  %v3822_v6 = vld [vmem:[#allocation13 + $0x28] sm:$0xff]  ;;  %v3820_v18 = vld [vmem:[#allocation13 + $0x18] sm:$0xff] }
0x1010   :  { %v3374_v40 = vmax.f32 %v3207_v39, %v7912_v20  ;;  %v3373_v43 = vadd.f32 %v7912_v20, %v3206_v46  ;;  %v4015_v26 = vld [vmem:[#allocation13 + $0x148] sm:$0xff]  ;;  %v3915_v39 = vld [vmem:[#allocation13 + $0xa0] sm:$0xff]  ;;  %v3914_v46 = vld [vmem:[#allocation13 + $0x98] sm:$0xff] }
0x1011   :  { %5748 = vpow2.f32 %v4244_v19  ;;  %v3718_v19 = vld [vmem:[#allocation12 + $0x108] sm:$0xff] }
0x101c   :  { %v5747_v21 = vpop.eup %5746 }
0x101d   :  { %v3523_v27 = vadd.f32 1.0, %v5747_v21  ;;  %v3819_v21 = vld [vmem:[#allocation13 + $0x10] sm:$0xff] }
0x101e   :  { %v5749_v28 = vpop.eup %5748 }
0x101f   :  { %5750 = vrcp.f32 %v3523_v27  ;;  %v3530_v61 = vadd.f32 1.0, %v5749_v28  ;;  %v3717_v27 = vld [vmem:[#allocation12 + $0x100] sm:$0xff]  ;;  %v3818_v28 = vld [vmem:[#allocation13 + $0x8] sm:$0xff] }
0x1021   :  { %5752 = vrcp.f32 %v3530_v61  ;;  %v3817_v61 = vld [vmem:[#allocation13] sm:$0xff] }
0x102c   :  { %v5751_v29 = vpop.eup %5750 }
0x102d   :  { %v3533_v45 = vmul.f32 %v5751_v29, %v3516_v3  ;;  %v3926_v3 = vld [vmem:[#allocation13 + $0xf8] sm:$0xff]  ;;  %v3925_v29 = vld [vmem:[#allocation13 + $0xf0] sm:$0xff] }
0x102e   :  { %v5753_v14 = vpop.eup %5752 }
0x102f   :  { %v3534_v5 = vadd.f32 %v3533_v45, %v2113_v31  ;;  %v3536_v11 = vsub.f32 1.0, %v5753_v14  ;;  %v3538_v37 = vmul.f32 %v5753_v14, %v7912_v20  ;;  %v3729_v20 = vld [vmem:[#allocation12 + $0x160] sm:$0xff]  ;;  %v8411_v31 = vld [vmem:[#allocation49_spill] sm:$0xff]  ;;  %v3924_v45 = vld [vmem:[#allocation13 + $0xe8] sm:$0xff] }
0x1030   :  { %v4016_v14 = vld [vmem:[#allocation13 + $0x150] sm:$0xff] }
0x1031   :  { %5754 = vtanh.f32 %v3534_v5  ;;  %v4020_v5 = vld [vmem:[#allocation13 + $0x170] sm:$0xff] }
0x103e   :  { %v5755_v4 = vpop.eup %5754 }
0x103f   :  { %v3537_v48 = vmul.f32 %v5755_v4, %v3536_v11  ;;  %v4014_v11 = vld [vmem:[#allocation13 + $0x140] sm:$0xff]  ;;  %v3916_v4 = vld [vmem:[#allocation13 + $0xa8] sm:$0xff] }
0x1041   :  { %v7975_v58 = vadd.f32 %v3538_v37, %v3537_v48  ;;  %v4012_v37 = vld [vmem:[#allocation13 + $0x130] sm:$0xff]  ;;  %v4011_v48 = vld [vmem:[#allocation13 + $0x128] sm:$0xff] }
0x1043   :  { %v3541_v57 = vmax.f32 %v3374_v40, %v7975_v58  ;;  %v3540_v22 = vadd.f32 %v7975_v58, %v3373_v43  ;;  %v4010_v40 = vld [vmem:[#allocation13 + $0x120] sm:$0xff]  ;;  %v3913_v43 = vld [vmem:[#allocation13 + $0x90] sm:$0xff] }
0x1045   :  { %5369 = vmatmul.mubr.f32.vlgmr.msra.gmra.mxu0 %v3541_v57  ;;  %v3542_v10 = vmul.f32 0.125, %v3540_v22  ;;  %v4009_v57 = vld [vmem:[#allocation13 + $0x118] sm:$0xff]  ;;  %v4008_v22 = vld [vmem:[#allocation13 + $0x110] sm:$0xff] }
0x1046   :  { %5407 = vmatpush3.msra.mxu0 %v3732_v49  ;;  %5438 = vmatprep.mubr.msk.f32.mxu0 %vm6015_vm0, %v8225_v0  ;;  %v3912_v49 = vld [vmem:[#allocation13 + $0x88] sm:$0xff] }
0x1047   :  { %5408 = vmatprep.subr.mxu0 %v8225_v0  ;;  %5404 = vmatmul.mubr.f32.vlgmr.msra.gmra.mxu1 %v3542_v10  ;;  %v3911_v10 = vld [vmem:[#allocation13 + $0x80] sm:$0xff] }
0x1048   :  { %5409 = vmatpush3.msra.mxu0 %v3731_v56  ;;  %5442 = vmatpush3.msra.mxu1 %v3832_v44  ;;  %v4007_v56 = vld [vmem:[#allocation13 + $0x108] sm:$0xff]  ;;  %v4006_v44 = vld [vmem:[#allocation13 + $0x100] sm:$0xff] }
0x1049   :  { %5410 = vmatprep.subr.mxu0 %v8225_v0  ;;  %5443 = vmatprep.subr.mxu1 %v8225_v0 }
0x104a   :  { %5411 = vmatpush3.msra.mxu0 %v3730_v55  ;;  %5444 = vmatpush3.msra.mxu1 %v3831_v60  ;;  %v4115_v55 = vld [vmem:[#allocation13 + $0x1f8] sm:$0xff]  ;;  %v4114_v60 = vld [vmem:[#allocation13 + $0x1f0] sm:$0xff] }
0x104b   :  { %5412 = vmatprep.subr.mxu0 %v8225_v0  ;;  %5445 = vmatprep.subr.mxu1 %v8225_v0 }
0x104c   :  { %5413 = vmatpush3.msra.mxu0 %v3729_v20  ;;  %5446 = vmatpush3.msra.mxu1 %v3830_v23  ;;  %v4113_v20 = vld [vmem:[#allocation13 + $0x1e8] sm:$0xff]  ;;  %v4112_v23 = vld [vmem:[#allocation13 + $0x1e0] sm:$0xff] }
0x104d   :  { %5414 = vmatprep.subr.mxu0 %v8225_v0  ;;  %5447 = vmatprep.subr.mxu1 %v8225_v0 }
0x104e   :  { %5415 = vmatpush3.msra.mxu0 %v3728_v54  ;;  %5448 = vmatpush3.msra.mxu1 %v3829_v42  ;;  %v4111_v54 = vld [vmem:[#allocation13 + $0x1d8] sm:$0xff]  ;;  %v4110_v42 = vld [vmem:[#allocation13 + $0x1d0] sm:$0xff] }
0x104f   :  { %5416 = vmatprep.subr.mxu0 %v8225_v0  ;;  %5449 = vmatprep.subr.mxu1 %v8225_v0 }
0x1050   :  { %5417 = vmatpush3.msra.mxu0 %v3727_v32  ;;  %5450 = vmatpush3.msra.mxu1 %v3828_v41  ;;  %v4109_v32 = vld [vmem:[#allocation13 + $0x1c8] sm:$0xff]  ;;  %v4108_v41 = vld [vmem:[#allocation13 + $0x1c0] sm:$0xff] }
0x1051   :  { %5418 = vmatprep.subr.mxu0 %v8225_v0  ;;  %5451 = vmatprep.subr.mxu1 %v8225_v0 }
0x1052   :  { %5419 = vmatpush3.msra.mxu0 %v3726_v13  ;;  %5452 = vmatpush3.msra.mxu1 %v3827_v15  ;;  %v4107_v13 = vld [vmem:[#allocation13 + $0x1b8] sm:$0xff]  ;;  %v4106_v15 = vld [vmem:[#allocation13 + $0x1b0] sm:$0xff] }
0x1053   :  { %5420 = vmatprep.subr.mxu0 %v8225_v0  ;;  %5453 = vmatprep.subr.mxu1 %v8225_v0 }
0x1054   :  { %5421 = vmatpush3.msra.mxu0 %v3725_v59  ;;  %5454 = vmatpush3.msra.mxu1 %v3826_v63  ;;  %v4105_v59 = vld [vmem:[#allocation13 + $0x1a8] sm:$0xff]  ;;  %v4104_v63 = vld [vmem:[#allocation13 + $0x1a0] sm:$0xff] }
0x1055   :  { %5422 = vmatprep.subr.mxu0 %v8225_v0  ;;  %5455 = vmatprep.subr.mxu1 %v8225_v0 }
0x1056   :  { %5423 = vmatpush3.msra.mxu0 %v3724_v34  ;;  %5456 = vmatpush3.msra.mxu1 %v3825_v17  ;;  %v4103_v34 = vld [vmem:[#allocation13 + $0x198] sm:$0xff]  ;;  %v4102_v17 = vld [vmem:[#allocation13 + $0x190] sm:$0xff] }
0x1057   :  { %5424 = vmatprep.subr.mxu0 %v8225_v0  ;;  %5457 = vmatprep.subr.mxu1 %v8225_v0 }
0x1058   :  { %5425 = vmatpush3.msra.mxu0 %v3723_v24  ;;  %5458 = vmatpush3.msra.mxu1 %v3824_v1  ;;  %v4101_v24 = vld [vmem:[#allocation13 + $0x188] sm:$0xff]  ;;  %v4100_v1 = vld [vmem:[#allocation13 + $0x180] sm:$0xff] }
0x1059   :  { %5426 = vmatprep.subr.mxu0 %v8225_v0  ;;  %5459 = vmatprep.subr.mxu1 %v8225_v0 }
0x105a   :  { %5427 = vmatpush3.msra.mxu0 %v3722_v35  ;;  %5460 = vmatpush3.msra.mxu1 %v3823_v2 }
0x105b   :  { %5428 = vmatprep.subr.mxu0 %v8225_v0  ;;  %5461 = vmatprep.subr.mxu1 %v8225_v0 }
0x105c   :  { %5429 = vmatpush3.msra.mxu0 %v3721_v36  ;;  %5462 = vmatpush3.msra.mxu1 %v3822_v6 }
0x105d   :  { %5430 = vmatprep.subr.mxu0 %v8225_v0  ;;  %5463 = vmatprep.subr.mxu1 %v8225_v0 }
0x105e   :  { %5431 = vmatpush3.msra.mxu0 %v3720_v38  ;;  %5464 = vmatpush3.msra.mxu1 %v3821_v7 }
0x105f   :  { %5432 = vmatprep.subr.mxu0 %v8225_v0  ;;  %5465 = vmatprep.subr.mxu1 %v8225_v0 }
0x1060   :  { %5433 = vmatpush3.msra.mxu0 %v3719_v47  ;;  %5466 = vmatpush3.msra.mxu1 %v3820_v18  ;;  %v4245_v47 = vld [vmem:[%s8094_s6] ss:$0 sm:$0xff] }
0x1061   :  { %5434 = vmatprep.subr.mxu0 %v8225_v0  ;;  %5467 = vmatprep.subr.mxu1 %v8225_v0 }
0x1062   :  { %5435 = vmatpush3.msra.mxu0 %v3718_v19  ;;  %5468 = vmatpush3.msra.mxu1 %v3819_v21 }
0x1063   :  { %5436 = vmatprep.subr.mxu0 %v8225_v0  ;;  %5469 = vmatprep.subr.mxu1 %v8225_v0 }
0x1064   :  { %5437 = vmatpush3.msra.mxu0 %v3717_v27  ;;  %5470 = vmatpush3.msra.mxu1 %v3818_v28 }
0x1065   :  { %5439 = vmatmul.mubr.f32.vlgmr.msra.gmra.mxu0 %v7975_v58  ;;  %5471 = vmatprep.subr.mxu1 %v8225_v0 }
0x1066   :  { %5476 = vmatprep.subr.mxu0 %v8225_v0  ;;  %5472 = vmatpush3.msra.mxu1 %v3817_v61 }
0x1067   :  { %5473 = vmatprep.mubr.msk.f32.mxu1 %vm6015_vm0, %v8225_v0  ;;  %5477 = vmatpush3.msra.mxu0 %v3926_v3 }
0x1068   :  { %5474 = vmatmul.mubr.f32.vlgmr.msra.gmra.mxu1 %v8411_v31  ;;  %5478 = vmatprep.subr.mxu0 %v8225_v0 }
0x1069   :  { %5511 = vmatprep.subr.mxu1 %v8225_v0  ;;  %5479 = vmatpush3.msra.mxu0 %v3925_v29 }
0x106a   :  { %5512 = vmatpush3.msra.mxu1 %v4021_v30  ;;  %5480 = vmatprep.subr.mxu0 %v8225_v0 }
0x106b   :  { %5513 = vmatprep.subr.mxu1 %v8225_v0  ;;  %5481 = vmatpush3.msra.mxu0 %v3924_v45 }
0x106c   :  { %5514 = vmatpush3.msra.mxu1 %v4020_v5  ;;  %5482 = vmatprep.subr.mxu0 %v8225_v0 }
0x106d   :  { %5515 = vmatprep.subr.mxu1 %v8225_v0  ;;  %5483 = vmatpush3.msra.mxu0 %v3923_v12 }
0x106e   :  { %5516 = vmatpush3.msra.mxu1 %v4019_v53  ;;  %5484 = vmatprep.subr.mxu0 %v8225_v0 }
0x106f   :  { %5517 = vmatprep.subr.mxu1 %v8225_v0  ;;  %5485 = vmatpush3.msra.mxu0 %v3922_v52  ;;  %v4248_v52 = vld [vmem:[%s8096_s8 + $0x1] ss:$0 sm:$0xff] }
0x1070   :  { %5518 = vmatpush3.msra.mxu1 %v4018_v9  ;;  %5486 = vmatprep.subr.mxu0 %v8225_v0 }
0x1071   :  { %5519 = vmatprep.subr.mxu1 %v8225_v0  ;;  %5487 = vmatpush3.msra.mxu0 %v3921_v50 }
0x1072   :  { %5520 = vmatpush3.msra.mxu1 %v4017_v25  ;;  %5488 = vmatprep.subr.mxu0 %v8225_v0 }
0x1073   :  { %5521 = vmatprep.subr.mxu1 %v8225_v0  ;;  %5489 = vmatpush3.msra.mxu0 %v3920_v62 }
0x1074   :  { %5522 = vmatpush3.msra.mxu1 %v4016_v14  ;;  %5490 = vmatprep.subr.mxu0 %v8225_v0 }
0x1075   :  { %5523 = vmatprep.subr.mxu1 %v8225_v0  ;;  %5491 = vmatpush3.msra.mxu0 %v3919_v33 }
0x1076   :  { %5524 = vmatpush3.msra.mxu1 %v4015_v26  ;;  %5492 = vmatprep.subr.mxu0 %v8225_v0 }
0x1077   :  { %5525 = vmatprep.subr.mxu1 %v8225_v0  ;;  %5493 = vmatpush3.msra.mxu0 %v3918_v51 }
0x1078   :  { %5526 = vmatpush3.msra.mxu1 %v4014_v11  ;;  %5494 = vmatprep.subr.mxu0 %v8225_v0 }
0x1079   :  { %5527 = vmatprep.subr.mxu1 %v8225_v0  ;;  %5495 = vmatpush3.msra.mxu0 %v3917_v16 }
0x107a   :  { %5528 = vmatpush3.msra.mxu1 %v4013_v8  ;;  %5496 = vmatprep.subr.mxu0 %v8225_v0 }
0x107b   :  { %5529 = vmatprep.subr.mxu1 %v8225_v0  ;;  %5497 = vmatpush3.msra.mxu0 %v3916_v4 }
0x107c   :  { %5530 = vmatpush3.msra.mxu1 %v4012_v37  ;;  %5498 = vmatprep.subr.mxu0 %v8225_v0 }
0x107d   :  { %5531 = vmatprep.subr.mxu1 %v8225_v0  ;;  %5499 = vmatpush3.msra.mxu0 %v3915_v39 }
0x107e   :  { %5532 = vmatpush3.msra.mxu1 %v4011_v48  ;;  %5500 = vmatprep.subr.mxu0 %v8225_v0 }
0x107f   :  { %5533 = vmatprep.subr.mxu1 %v8225_v0  ;;  %5501 = vmatpush3.msra.mxu0 %v3914_v46 }
0x1080   :  { %5534 = vmatpush3.msra.mxu1 %v4010_v40  ;;  %5502 = vmatprep.subr.mxu0 %v8225_v0 }
0x1081   :  { %5535 = vmatprep.subr.mxu1 %v8225_v0  ;;  %5503 = vmatpush3.msra.mxu0 %v3913_v43 }
0x1082   :  { %5536 = vmatpush3.msra.mxu1 %v4009_v57  ;;  %5504 = vmatprep.subr.mxu0 %v8225_v0 }
0x1083   :  { %5537 = vmatprep.subr.mxu1 %v8225_v0  ;;  %5505 = vmatpush3.msra.mxu0 %v3912_v49 }
0x1084   :  { %5538 = vmatpush3.msra.mxu1 %v4008_v22  ;;  %5506 = vmatprep.subr.mxu0 %v8225_v0 }
0x1085   :  { %5539 = vmatprep.subr.mxu1 %v8225_v0  ;;  %5507 = vmatpush3.msra.mxu0 %v3911_v10 }
0x1086   :  { %5508 = vmatprep.mubr.msk.f32.mxu0 %vm6015_vm0, %v8225_v0  ;;  %5540 = vmatpush3.msra.mxu1 %v4007_v56 }
0x1087   :  { %5509 = vmatmul.mubr.f32.vlgmr.msra.gmra.mxu0 %v7975_v58  ;;  %5541 = vmatprep.subr.mxu1 %v8225_v0 }
0x1088   :  { %5546 = vmatprep.subr.mxu0 %v8225_v0  ;;  %5542 = vmatpush3.msra.mxu1 %v4006_v44 }
0x1089   :  { %5543 = vmatprep.mubr.msk.f32.mxu1 %vm6015_vm0, %v8225_v0  ;;  %5547 = vmatpush3.msra.mxu0 %v4115_v55 }
0x108a   :  { %5544 = vmatmul.mubr.f32.vlgmr.msra.gmra.mxu1 %v8411_v31  ;;  %5548 = vmatprep.subr.mxu0 %v8225_v0 }
0x108b   :  { %5549 = vmatpush3.msra.mxu0 %v4114_v60  ;;  %5578 = vmatprep.mubr.msk.f32.mxu0 %vm6015_vm0, %v8225_v0 }
0x108c   :  { %5550 = vmatprep.subr.mxu0 %v8225_v0 }
0x108d   :  { %5551 = vmatpush3.msra.mxu0 %v4113_v20 }
0x108e   :  { %5552 = vmatprep.subr.mxu0 %v8225_v0 }
0x108f   :  { %5553 = vmatpush3.msra.mxu0 %v4112_v23 }
0x1090   :  { %5554 = vmatprep.subr.mxu0 %v8225_v0 }
0x1091   :  { %5555 = vmatpush3.msra.mxu0 %v4111_v54 }
0x1092   :  { %5556 = vmatprep.subr.mxu0 %v8225_v0 }
0x1093   :  { %5557 = vmatpush3.msra.mxu0 %v4110_v42 }
0x1094   :  { %5558 = vmatprep.subr.mxu0 %v8225_v0 }
0x1095   :  { %5559 = vmatpush3.msra.mxu0 %v4109_v32 }
0x1096   :  { %5560 = vmatprep.subr.mxu0 %v8225_v0 }
0x1097   :  { %5561 = vmatpush3.msra.mxu0 %v4108_v41 }
0x1098   :  { %5562 = vmatprep.subr.mxu0 %v8225_v0 }
0x1099   :  { %5563 = vmatpush3.msra.mxu0 %v4107_v13 }
0x109a   :  { %5564 = vmatprep.subr.mxu0 %v8225_v0 }
0x109b   :  { %5565 = vmatpush3.msra.mxu0 %v4106_v15 }
0x109c   :  { %5566 = vmatprep.subr.mxu0 %v8225_v0 }
0x109d   :  { %5567 = vmatpush3.msra.mxu0 %v4105_v59 }
0x109e   :  { %5568 = vmatprep.subr.mxu0 %v8225_v0 }
0x109f   :  { %5569 = vmatpush3.msra.mxu0 %v4104_v63 }
0x10a0   :  { %5570 = vmatprep.subr.mxu0 %v8225_v0 }
0x10a1   :  { %5571 = vmatpush3.msra.mxu0 %v4103_v34 }
0x10a2   :  { %5572 = vmatprep.subr.mxu0 %v8225_v0 }
0x10a3   :  { %5573 = vmatpush3.msra.mxu0 %v4102_v17 }
0x10a4   :  { %5574 = vmatprep.subr.mxu0 %v8225_v0 }
0x10a5   :  { %5575 = vmatpush3.msra.mxu0 %v4101_v24 }
0x10a6   :  { %5576 = vmatprep.subr.mxu0 %v8225_v0 }
0x10a7   :  { %5577 = vmatpush3.msra.mxu0 %v4100_v1 }
0x10a8   :  { %5579 = vmatmul.mubr.f32.vlgmr.msra.gmra.mxu0 %v7975_v58  ;;  %v4246_v58 = vld [vmem:[%s8096_s8] ss:$0 sm:$0xff] }
0x1105   :  { %v3642_v35 = vpop.f32.mrf.mxu0 }
0x1107   :  { %v5370_v2 = vpop.f32.mrf.mxu0  ;;  %v3712_v36 = vpop.f32.mrf.mxu1 }
0x1108   :  { %v3713_v38 = vadd.f32 %v3712_v36, %v3642_v35 }
0x1109   :  { %v5405_v6 = vpop.f32.mrf.mxu1 }
0x1125   :  { %v3799_v7 = vpop.f32.mrf.mxu0 }
0x1126   :  { %v3803_v18 = vadd.f32 %v3799_v7, %v3713_v38 }
0x1127   :  { %v5440_v19 = vpop.f32.mrf.mxu0 }
0x1128   :  { %v3811_v21 = vadd.f32 %v4245_v47, %v3803_v18  ;;  %v3899_v27 = vpop.f32.mrf.mxu1 }
0x1129   :  { %v3909_v3 = vadd.f32 %v4246_v58, %v3899_v27 }
0x112a   :  { %vm3812_vm1 = vcmp.ge.f32.partialorder %v3811_v21, 0.0  ;;  %v3813_v28 = vmul.f32 0.2, %v3811_v21  ;;  %v5475_v0 = vpop.f32.mrf.mxu1 }
0x112c   :  { %v3814_v61 = vsel %vm3812_vm1, %v3811_v21, %v3813_v28 }
0x112d   :  { %3815 = vst [vmem:[#allocation15] sm:$0xff] %v3814_v61 }
0x1147   :  { %v3993_v29 = vpop.f32.mrf.mxu0 }
0x1148   :  { %v3997_v30 = vadd.f32 %v3993_v29, %v3909_v3 }
0x1149   :  { %v5510_v31 = vpop.f32.mrf.mxu0 }
0x114a   :  { %vm3998_vm2 = vcmp.ge.f32.partialorder %v3997_v30, 0.0  ;;  %v3999_v45 = vmul.f32 0.2, %v3997_v30  ;;  %v4088_v5 = vpop.f32.mrf.mxu1 }
0x114b   :  { %v4098_v9 = vadd.f32 %v4248_v52, %v4088_v5 }
0x114c   :  { %v4000_v12 = vsel %vm3998_vm2, %v3997_v30, %v3999_v45  ;;  %v5545_v53 = vpop.f32.mrf.mxu1 }
0x114d   :  { %4002 = vst [vmem:[#allocation15 + $0x8] sm:$0xff] %v4000_v12 }
0x1168   :  { %v4182_v50 = vpop.f32.mrf.mxu0 }
0x1169   :  { %v4186_v25 = vadd.f32 %v4182_v50, %v4098_v9 }
0x116a   :  { %v5580_v62 = vpop.f32.mrf.mxu0 }
0x116b   :  { %vm4187_vm3 = vcmp.ge.f32.partialorder %v4186_v25, 0.0  ;;  %v4188_v14 = vmul.f32 0.2, %v4186_v25 }
0x116d   :  { %v4189_v33 = vsel %vm4187_vm3, %v4186_v25, %v4188_v14 }
0x116e   :  { %4191 = vst [vmem:[#allocation15 + $0x10] sm:$0xff] %v4189_v33 }
0x116f   :  { %5983 = shalt.err (!%p5980_p6)
}
0x1170   :  { %4203 = dma.vmem_to_hbm [thread:$0]  %s4198_s28, 384, %s8097_s9, [#allocation6], %s6009_s25, %s6009_s25, %s6010_s26  }
0x1171   :  { %6000 = dma.done.wait [#allocation6], 384  }
0x1172   :  { %6001 = vsyncadd [#allocation6], 4294966912 }
0x1173   :  { %4207 = vsyncpa [#allocation5], 1 }
0x1174   :  { %4208 = vsyncpa [#allocation8], 1 }
0x1175   :  { %4209 = vsyncpa [#allocation11], 1 }
0x1176   :  { %4210 = vsyncpa [#allocation14], 1 }
0x1177   :  { %4211 = vsyncpa [#allocation6], 1 }

</bundles_post_ra>
